<compile_context>
chip_gen: v7x
topology: tpu7x:2x2x1
jax: 0.10.0
libtpu: 0.0.40
codegen_flags: <defaults>
</compile_context>

<pallas_src>
import jax
import jax.numpy as jnp
from jax.experimental import pallas as pl
from jax.experimental.pallas import tpu as pltpu

INPUT_DIM = 64                   # channels C (torch `input_dim` default)
CONTEXT_SIZES = (3, 4, 5)        # Conv1d kernel sizes (branches, in concat order)
SE_REDUCTION = 16
NUM_CLASSES = 8
OUT_PAD = 128                    # lane-dense padded output width (>= NUM_CLASSES)
NEG_SLOPE = 0.01                 # torch.nn.LeakyReLU default
BATCH_ALIGN = 16                 # bf16 sublane packing -> keep batch tiles % 16 == 0
NEG_LARGE = -1.0e30              # "-inf" stand-in for masked max
REF_PRECISION = jax.lax.Precision.HIGHEST

K_MAX = max(CONTEXT_SIZES)
K_MIN = min(CONTEXT_SIZES)
N_BRANCH = len(CONTEXT_SIZES)


def _leaky(v):
    return jnp.where(v > 0, v, NEG_SLOPE * v)


def _sigmoid(v):
    return 1.0 / (1.0 + jnp.exp(-v))


def _round_up(n, m):
    return ((n + m - 1) // m) * m


# ------------------------------------------------------------------------------ kernel
def _textcnn_kernel(x_ref,      # (L_pad, TB, C)   bf16  length-major batch tile
                    wcat_ref,   # (K_MAX, C, 3C)   bf16  branch-fused conv taps
                    bcat_ref,   # (1, 3C)          f32   branch-fused conv bias
                    sa_ref,     # (3C, 3R)         bf16  block-diag SE fc1 (rows / l_out)
                    sb_ref,     # (3R, 3C)         bf16  block-diag SE fc2
                    fc1w_ref,   # (3C, C)          bf16
                    fc1b_ref,   # (1, C)           f32
                    fc2w_ref,   # (C, OUT_PAD)     bf16  (zero-padded beyond 8 classes)
                    fc2b_ref,   # (1, OUT_PAD)     f32
                    o_ref,      # (TB, OUT_PAD)    f32
                    acc_ref,    # VMEM (N_POS*TB, 3C) f32  conv accumulator
                    ysum_ref,   # VMEM (TB, 3C)       f32  running sum  (avg pool)
                    ymax_ref):  # VMEM (TB, 3C)       f32  running max  (max pool)
    l_pad, tb, chan = x_ref.shape
    k_max = wcat_ref.shape[0]
    width = wcat_ref.shape[2]                       # 3C: all branches side by side
    n_branch = width // chan
    n_pos = l_pad - k_max + 1                       # = seq_len - min(ks) + 1
    m = n_pos * tb

    # ---- Conv1d, all branches fused along N, tap-major: k_max large MXU matmuls -----
    # (L_pad, TB, C) -> (L_pad*TB, C): slow-axis merge (TB % 16 == 0 keeps it aligned).
    xf = x_ref[...].reshape(l_pad * tb, chan)
    acc_ref[...] = jnp.dot(xf[0:m], wcat_ref[0],
                           preferred_element_type=jnp.float32)
    for k in range(1, k_max):
        acc_ref[...] += jnp.dot(xf[k * tb:k * tb + m], wcat_ref[k],
                                preferred_element_type=jnp.float32)

    # ---- bias + LeakyReLU + running sum / max over conv positions --------------------
    # Branch b (kernel size K_MIN+b) owns lanes [b*C, (b+1)*C) and is valid at position
    # t iff t < n_pos - b; only the last (K_MAX-K_MIN) positions need lane masks.
    bias = bcat_ref[...]                            # (1, 3C), loaded once
    lane = jax.lax.broadcasted_iota(jnp.int32, (1, width), 1)

    y0 = _leaky(acc_ref[pl.ds(0, tb), :] + bias)    # position 0 valid for every branch
    ysum_ref[...] = y0
    ymax_ref[...] = y0
    # Static unroll: n_pos is small (seq_len - 2); accumulators live in VMEM scratch so
    # the unroll carries no long register live-ranges.
    for t in range(1, n_pos):
        y_t = _leaky(acc_ref[pl.ds(t * tb, tb), :] + bias)
        n_valid = min(n_pos - t, n_branch)          # branches still valid at position t
        if n_valid >= n_branch:                     # bulk: every branch valid
            ysum_ref[...] += y_t
            ymax_ref[...] = jnp.maximum(ymax_ref[...], y_t)
        else:                                       # tail: mask out finished branches
            valid = lane < n_valid * chan
            ysum_ref[...] += jnp.where(valid, y_t, 0.0)
            ymax_ref[...] = jnp.maximum(ymax_ref[...],
                                        jnp.where(valid, y_t, NEG_LARGE))

    # ---- SELayer (all 3 branches fused via block-diagonal weights) -------------------
    # AdaptiveAvgPool1d's 1/l_out is folded into sa's rows; sigmoid output > 0, so the
    # gate commutes with AdaptiveMaxPool1d: gate * max_t(y) == max_t(gate * y).
    z = jnp.dot(ysum_ref[...].astype(jnp.bfloat16), sa_ref[...],
                preferred_element_type=jnp.float32)
    z = jnp.maximum(z, 0.0)                                   # ReLU, (TB, 3R)
    g = jnp.dot(z.astype(jnp.bfloat16), sb_ref[...],
                preferred_element_type=jnp.float32)           # (TB, 3C)
    gate = pl.reciprocal(1.0 + jnp.exp(-g), approx=True)      # sigmoid on the EUP
    pooled = gate * ymax_ref[...]                             # concat of branch outputs

    # ---- fc head: Linear(3C,C) + LeakyReLU + Linear(C,8->OUT_PAD); Dropout = identity
    h = jnp.dot(pooled.astype(jnp.bfloat16), fc1w_ref[...],
                preferred_element_type=jnp.float32) + fc1b_ref[...]
    h = _leaky(h)
    out = jnp.dot(h.astype(jnp.bfloat16), fc2w_ref[...],
                  preferred_element_type=jnp.float32) + fc2b_ref[...]
    o_ref[...] = out.astype(o_ref.dtype)


# ----------------------------------------------------------------------------- wrapper
def _replicated_spec(arr):
    """Full-array block, VMEM-resident and identical for every grid step."""
    zeros = (0,) * arr.ndim
    return pl.BlockSpec(arr.shape, lambda i, _z=zeros: _z)


def _fuse_params(params, seq_len):
    """Fold the per-branch torch parameters into branch-fused kernel operands."""
    assert len(params) == 4 * N_BRANCH + 4
    chan = INPUT_DIM
    width = N_BRANCH * chan
    red = chan // SE_REDUCTION
    fc1w, fc1b, fc2w, fc2b = params[-4:]

    wcat = jnp.zeros((K_MAX, chan, width), jnp.float32)
    bcat = jnp.zeros((1, width), jnp.float32)
    sa = jnp.zeros((width, N_BRANCH * red), jnp.float32)
    sb = jnp.zeros((N_BRANCH * red, width), jnp.float32)
    for b_idx in range(N_BRANCH):
        w, b, wa, wb = params[4 * b_idx:4 * b_idx + 4]
        ks = CONTEXT_SIZES[b_idx]
        l_out = seq_len - ks + 1
        c0, r0 = b_idx * chan, b_idx * red
        wcat = wcat.at[:ks, :, c0:c0 + chan].set(w)            # taps k >= ks stay zero
        bcat = bcat.at[:, c0:c0 + chan].set(b)
        sa = sa.at[c0:c0 + chan, r0:r0 + red].set(wa / l_out)  # fold AdaptiveAvgPool 1/L
        sb = sb.at[r0:r0 + red, c0:c0 + chan].set(wb)

    fc2w_p = jnp.zeros((chan, OUT_PAD), jnp.float32).at[:, :NUM_CLASSES].set(fc2w)
    fc2b_p = jnp.zeros((1, OUT_PAD), jnp.float32).at[:, :NUM_CLASSES].set(fc2b)

    bf16 = jnp.bfloat16
    return (wcat.astype(bf16), bcat, sa.astype(bf16), sb.astype(bf16),
            fc1w.astype(bf16), fc1b, fc2w_p.astype(bf16), fc2b_p)


def textcnn_forward(x, params, *, block_b=512):
    """TextCNN forward. x: (B, L, C) with C == INPUT_DIM and L >= max(CONTEXT_SIZES)."""
    batch, seq_len, chan = x.shape
    assert chan == INPUT_DIM, "channel dim must equal input_dim"
    assert seq_len >= K_MAX, "sequence must be at least the largest kernel size"

    # Balanced batch tiles (minimal dead-row padding); use >= 2 tiles for large batches
    # so v7x's two TensorCores both get work on the "parallel" batch axis.
    num_tiles = max(1, -(-batch // block_b))
    if num_tiles == 1 and batch >= 4 * BATCH_ALIGN:
        num_tiles = 2
    tile_b = _round_up(-(-batch // num_tiles), BATCH_ALIGN)
    padded_b = num_tiles * tile_b

    n_pos = seq_len - K_MIN + 1                      # fused conv output positions
    l_pad = seq_len + (K_MAX - K_MIN)                # zero rows so every tap slab exists
    width = N_BRANCH * chan

    # Length-major (L, B, C) + bf16: every conv tap becomes a clean batch-major MXU
    # matmul. (Single extra HBM round trip of x; feed x length-major upstream to drop it.)
    x_lm = jnp.transpose(x.astype(jnp.bfloat16), (1, 0, 2))
    x_lm = jnp.pad(x_lm, ((0, l_pad - seq_len), (0, padded_b - batch), (0, 0)))

    fused = _fuse_params(params, seq_len)

    grid_spec = pltpu.PrefetchScalarGridSpec(
        num_scalar_prefetch=0,
        grid=(num_tiles,),
        in_specs=[pl.BlockSpec((l_pad, tile_b, chan), lambda i: (0, i, 0))]
                 + [_replicated_spec(p) for p in fused],
        out_specs=pl.BlockSpec((tile_b, OUT_PAD), lambda i: (i, 0)),
        scratch_shapes=[
            pltpu.VMEM((n_pos * tile_b, width), jnp.float32),   # conv accumulator
            pltpu.VMEM((tile_b, width), jnp.float32),           # running sum (avg pool)
            pltpu.VMEM((tile_b, width), jnp.float32),           # running max (max pool)
        ],
    )
    out = pl.pallas_call(
        _textcnn_kernel,
        out_shape=jax.ShapeDtypeStruct((padded_b, OUT_PAD), jnp.float32),
        grid_spec=grid_spec,
        compiler_params=pltpu.CompilerParams(
            dimension_semantics=("parallel",),       # batch tiles are independent
            vmem_limit_bytes=48 * 1024 * 1024,       # headroom for larger block_b
        ),
    )(x_lm, *fused)
    return out[:batch, :NUM_CLASSES]


# --------------------------------------------------------------------------- reference
def textcnn_reference(x, params):
    """Pure-JAX eval-mode TextCNN forward (mirrors the PyTorch module), f32 HIGHEST."""
    (w3, b3, s3a, s3b, w4, b4, s4a, s4b, w5, b5, s5a, s5b,
     fc1w, fc1b, fc2w, fc2b) = params
    seq_len = x.shape[1]
    feats = []
    for w, b, sa, sb in ((w3, b3, s3a, s3b), (w4, b4, s4a, s4b), (w5, b5, s5a, s5b)):
        ks = w.shape[0]
        l_out = seq_len - ks + 1
        y = b[None]                                   # (1, 1, C) conv bias
        for k in range(ks):
            y = y + jnp.einsum('blc,cd->bld', x[:, k:k + l_out, :], w[k],
                               precision=REF_PRECISION)
        y = jnp.where(y > 0, y, NEG_SLOPE * y)        # LeakyReLU
        s = jnp.mean(y, axis=1)                       # AdaptiveAvgPool1d(1)
        z = jnp.maximum(jnp.dot(s, sa, precision=REF_PRECISION), 0.0)
        g = _sigmoid(jnp.dot(z, sb, precision=REF_PRECISION))
        y = y * g[:, None, :]                         # SE channel gate
        feats.append(jnp.max(y, axis=1))              # AdaptiveMaxPool1d(1)
    f = jnp.concatenate(feats, axis=1)                # (B, 3C); Dropout = identity (eval)
    h = jnp.dot(f, fc1w, precision=REF_PRECISION) + fc1b
    h = jnp.where(h > 0, h, NEG_SLOPE * h)
    return jnp.dot(h, fc2w, precision=REF_PRECISION) + fc2b


def init_params(key):
    """PyTorch-style uniform init; weights stored (in, out) / (ks, Cin, Cout)."""
    chan = INPUT_DIM
    red = chan // SE_REDUCTION
    keys = iter(jax.random.split(key, 4 * N_BRANCH + 4))

    def unif(shape, fan_in):
        bound = 1.0 / (float(fan_in) ** 0.5)
        return jax.random.uniform(next(keys), shape, jnp.float32, -bound, bound)

    params = []
    for ks in CONTEXT_SIZES:
        params.append(unif((ks, chan, chan), chan * ks))    # Conv1d weight (ks, Cin, Cout)
        params.append(unif((1, chan), chan * ks))           # Conv1d bias
        params.append(unif((chan, red), chan))              # SE Linear(C, C/r), no bias
        params.append(unif((red, chan), red))               # SE Linear(C/r, C), no bias
    params.append(unif((N_BRANCH * chan, chan), N_BRANCH * chan))   # fc Linear(3C, C) W
    params.append(unif((1, chan), N_BRANCH * chan))                 # fc Linear(3C, C) b
    params.append(unif((chan, NUM_CLASSES), chan))                  # fc Linear(C, 8) W
    params.append(unif((1, NUM_CLASSES), chan))                     # fc Linear(C, 8) b
    return tuple(params)


if __name__ == "__main__":
    key = jax.random.PRNGKey(0)
    kx, kp = jax.random.split(key)
    batch, seq_len = 2, 16                                   # (batch, seq, input_dim=64)
    x = jax.random.normal(kx, (batch, seq_len, INPUT_DIM), jnp.float32)
    params = init_params(kp)

    out = jax.block_until_ready(textcnn_forward(x, params))
    assert out.shape == (batch, NUM_CLASSES)

    ref = textcnn_reference(x, params)
    max_err = float(jnp.max(jnp.abs(out - ref)))
    # bf16 MXU operands vs. a HIGHEST-precision f32 reference; structural bugs would be
    # orders of magnitude larger than this tolerance.
    assert jnp.allclose(out, ref, atol=3e-2, rtol=3e-2), f"max abs err {max_err}"
    print("KERNEL_OK")
</pallas_src>

<mosaic_0001>
module attributes {stable_mosaic.version = 11 : i64} {
  func.func @_textcnn_kernel(%arg0: i32, %arg1: memref<18x16x64xbf16, #tpu.memory_space<vmem>>, %arg2: memref<5x64x192xbf16, #tpu.memory_space<vmem>>, %arg3: memref<1x192xf32, #tpu.memory_space<vmem>>, %arg4: memref<192x12xbf16, #tpu.memory_space<vmem>>, %arg5: memref<12x192xbf16, #tpu.memory_space<vmem>>, %arg6: memref<192x64xbf16, #tpu.memory_space<vmem>>, %arg7: memref<1x64xf32, #tpu.memory_space<vmem>>, %arg8: memref<64x128xbf16, #tpu.memory_space<vmem>>, %arg9: memref<1x128xf32, #tpu.memory_space<vmem>>, %arg10: memref<16x128xf32, #tpu.memory_space<vmem>>, %arg11: memref<224x192xf32, #tpu.memory_space<vmem>>, %arg12: memref<16x192xf32, #tpu.memory_space<vmem>>, %arg13: memref<16x192xf32, #tpu.memory_space<vmem>>) attributes {dimension_semantics = [#tpu.dimension_semantics<parallel>], iteration_bounds = array<i64: 1>, scalar_prefetch = 0 : i64, scratch_operands = 3 : i64, tpu.core_type = #tpu.core_type<tc>, window_params = [{transform_indices = @transform_0, window_bounds = array<i64: 18, 16, 64>}, {pipeline_mode = #tpu.pipeline_mode<synchronous>, transform_indices = @transform_1, window_bounds = array<i64: 5, 64, 192>}, {pipeline_mode = #tpu.pipeline_mode<synchronous>, transform_indices = @transform_2, window_bounds = array<i64: 1, 192>}, {pipeline_mode = #tpu.pipeline_mode<synchronous>, transform_indices = @transform_3, window_bounds = array<i64: 192, 12>}, {pipeline_mode = #tpu.pipeline_mode<synchronous>, transform_indices = @transform_4, window_bounds = array<i64: 12, 192>}, {pipeline_mode = #tpu.pipeline_mode<synchronous>, transform_indices = @transform_5, window_bounds = array<i64: 192, 64>}, {pipeline_mode = #tpu.pipeline_mode<synchronous>, transform_indices = @transform_6, window_bounds = array<i64: 1, 64>}, {pipeline_mode = #tpu.pipeline_mode<synchronous>, transform_indices = @transform_7, window_bounds = array<i64: 64, 128>}, {pipeline_mode = #tpu.pipeline_mode<synchronous>, transform_indices = @transform_8, window_bounds = array<i64: 1, 128>}, {transform_indices = @transform_9, window_bounds = array<i64: 16, 128>}]} {
    %c0 = arith.constant 0 : index
    %c0_0 = arith.constant 0 : index
    %c0_1 = arith.constant 0 : index
    %0 = vector.load %arg1[%c0, %c0_0, %c0_1] : memref<18x16x64xbf16, #tpu.memory_space<vmem>>, vector<18x16x64xbf16>
    %1 = vector.shape_cast %0 : vector<18x16x64xbf16> to vector<288x64xbf16>
    %2 = vector.extract_strided_slice %1 {offsets = [0, 0], sizes = [224, 64], strides = [1, 1]} : vector<288x64xbf16> to vector<224x64xbf16>
    %c0_2 = arith.constant 0 : index
    %c0_3 = arith.constant 0 : index
    %c0_4 = arith.constant 0 : index
    %3 = vector.load %arg2[%c0_2, %c0_3, %c0_4] : memref<5x64x192xbf16, #tpu.memory_space<vmem>>, vector<1x64x192xbf16>
    %4 = vector.shape_cast %3 : vector<1x64x192xbf16> to vector<64x192xbf16>
    %cst = arith.constant dense<0.000000e+00> : vector<224x192xf32>
    %5 = tpu.matmul %2, %4, %cst {dimension_numbers = #tpu.dot_dimension_numbers<[1], [0], [0], [1], [0, 0, 1, 1], [], []>} : vector<224x64xbf16>, vector<64x192xbf16>, vector<224x192xf32> -> vector<224x192xf32>
    %c0_5 = arith.constant 0 : index
    %c0_6 = arith.constant 0 : index
    %6 = vector.load %arg11[%c0_5, %c0_6] : memref<224x192xf32, #tpu.memory_space<vmem>>, vector<224x192xf32>
    tpu.vector_store %arg11[%c0_5, %c0_6], %5 {strides = array<i32>} : memref<224x192xf32, #tpu.memory_space<vmem>>, vector<224x192xf32>,
    %c0_7 = arith.constant 0 : index
    %c0_8 = arith.constant 0 : index
    %7 = vector.load %arg11[%c0_7, %c0_8] : memref<224x192xf32, #tpu.memory_space<vmem>>, vector<224x192xf32>
    %8 = vector.extract_strided_slice %1 {offsets = [16, 0], sizes = [224, 64], strides = [1, 1]} : vector<288x64xbf16> to vector<224x64xbf16>
    %c1 = arith.constant 1 : index
    %c0_9 = arith.constant 0 : index
    %c0_10 = arith.constant 0 : index
    %9 = vector.load %arg2[%c1, %c0_9, %c0_10] : memref<5x64x192xbf16, #tpu.memory_space<vmem>>, vector<1x64x192xbf16>
    %10 = vector.shape_cast %9 : vector<1x64x192xbf16> to vector<64x192xbf16>
    %cst_11 = arith.constant dense<0.000000e+00> : vector<224x192xf32>
    %11 = tpu.matmul %8, %10, %cst_11 {dimension_numbers = #tpu.dot_dimension_numbers<[1], [0], [0], [1], [0, 0, 1, 1], [], []>} : vector<224x64xbf16>, vector<64x192xbf16>, vector<224x192xf32> -> vector<224x192xf32>
    %12 = arith.addf %7, %11 : vector<224x192xf32>
    %c0_12 = arith.constant 0 : index
    %c0_13 = arith.constant 0 : index
    %13 = vector.load %arg11[%c0_12, %c0_13] : memref<224x192xf32, #tpu.memory_space<vmem>>, vector<224x192xf32>
    tpu.vector_store %arg11[%c0_12, %c0_13], %12 {strides = array<i32>} : memref<224x192xf32, #tpu.memory_space<vmem>>, vector<224x192xf32>,
    %c0_14 = arith.constant 0 : index
    %c0_15 = arith.constant 0 : index
    %14 = vector.load %arg11[%c0_14, %c0_15] : memref<224x192xf32, #tpu.memory_space<vmem>>, vector<224x192xf32>
    %15 = vector.extract_strided_slice %1 {offsets = [32, 0], sizes = [224, 64], strides = [1, 1]} : vector<288x64xbf16> to vector<224x64xbf16>
    %c2 = arith.constant 2 : index
    %c0_16 = arith.constant 0 : index
    %c0_17 = arith.constant 0 : index
    %16 = vector.load %arg2[%c2, %c0_16, %c0_17] : memref<5x64x192xbf16, #tpu.memory_space<vmem>>, vector<1x64x192xbf16>
    %17 = vector.shape_cast %16 : vector<1x64x192xbf16> to vector<64x192xbf16>
    %cst_18 = arith.constant dense<0.000000e+00> : vector<224x192xf32>
    %18 = tpu.matmul %15, %17, %cst_18 {dimension_numbers = #tpu.dot_dimension_numbers<[1], [0], [0], [1], [0, 0, 1, 1], [], []>} : vector<224x64xbf16>, vector<64x192xbf16>, vector<224x192xf32> -> vector<224x192xf32>
    %19 = arith.addf %14, %18 : vector<224x192xf32>
    %c0_19 = arith.constant 0 : index
    %c0_20 = arith.constant 0 : index
    %20 = vector.load %arg11[%c0_19, %c0_20] : memref<224x192xf32, #tpu.memory_space<vmem>>, vector<224x192xf32>
    tpu.vector_store %arg11[%c0_19, %c0_20], %19 {strides = array<i32>} : memref<224x192xf32, #tpu.memory_space<vmem>>, vector<224x192xf32>,
    %c0_21 = arith.constant 0 : index
    %c0_22 = arith.constant 0 : index
    %21 = vector.load %arg11[%c0_21, %c0_22] : memref<224x192xf32, #tpu.memory_space<vmem>>, vector<224x192xf32>
    %22 = vector.extract_strided_slice %1 {offsets = [48, 0], sizes = [224, 64], strides = [1, 1]} : vector<288x64xbf16> to vector<224x64xbf16>
    %c3 = arith.constant 3 : index
    %c0_23 = arith.constant 0 : index
    %c0_24 = arith.constant 0 : index
    %23 = vector.load %arg2[%c3, %c0_23, %c0_24] : memref<5x64x192xbf16, #tpu.memory_space<vmem>>, vector<1x64x192xbf16>
    %24 = vector.shape_cast %23 : vector<1x64x192xbf16> to vector<64x192xbf16>
    %cst_25 = arith.constant dense<0.000000e+00> : vector<224x192xf32>
    %25 = tpu.matmul %22, %24, %cst_25 {dimension_numbers = #tpu.dot_dimension_numbers<[1], [0], [0], [1], [0, 0, 1, 1], [], []>} : vector<224x64xbf16>, vector<64x192xbf16>, vector<224x192xf32> -> vector<224x192xf32>
    %26 = arith.addf %21, %25 : vector<224x192xf32>
    %c0_26 = arith.constant 0 : index
    %c0_27 = arith.constant 0 : index
    %27 = vector.load %arg11[%c0_26, %c0_27] : memref<224x192xf32, #tpu.memory_space<vmem>>, vector<224x192xf32>
    tpu.vector_store %arg11[%c0_26, %c0_27], %26 {strides = array<i32>} : memref<224x192xf32, #tpu.memory_space<vmem>>, vector<224x192xf32>,
    %c0_28 = arith.constant 0 : index
    %c0_29 = arith.constant 0 : index
    %28 = vector.load %arg11[%c0_28, %c0_29] : memref<224x192xf32, #tpu.memory_space<vmem>>, vector<224x192xf32>
    %29 = vector.extract_strided_slice %1 {offsets = [64, 0], sizes = [224, 64], strides = [1, 1]} : vector<288x64xbf16> to vector<224x64xbf16>
    %c4 = arith.constant 4 : index
    %c0_30 = arith.constant 0 : index
    %c0_31 = arith.constant 0 : index
    %30 = vector.load %arg2[%c4, %c0_30, %c0_31] : memref<5x64x192xbf16, #tpu.memory_space<vmem>>, vector<1x64x192xbf16>
    %31 = vector.shape_cast %30 : vector<1x64x192xbf16> to vector<64x192xbf16>
    %cst_32 = arith.constant dense<0.000000e+00> : vector<224x192xf32>
    %32 = tpu.matmul %29, %31, %cst_32 {dimension_numbers = #tpu.dot_dimension_numbers<[1], [0], [0], [1], [0, 0, 1, 1], [], []>} : vector<224x64xbf16>, vector<64x192xbf16>, vector<224x192xf32> -> vector<224x192xf32>
    %33 = arith.addf %28, %32 : vector<224x192xf32>
    %c0_33 = arith.constant 0 : index
    %c0_34 = arith.constant 0 : index
    %34 = vector.load %arg11[%c0_33, %c0_34] : memref<224x192xf32, #tpu.memory_space<vmem>>, vector<224x192xf32>
    tpu.vector_store %arg11[%c0_33, %c0_34], %33 {strides = array<i32>} : memref<224x192xf32, #tpu.memory_space<vmem>>, vector<224x192xf32>,
    %c0_35 = arith.constant 0 : index
    %c0_36 = arith.constant 0 : index
    %35 = vector.load %arg3[%c0_35, %c0_36] : memref<1x192xf32, #tpu.memory_space<vmem>>, vector<1x192xf32>
    %36 = tpu.iota {dimensions = array<i32: 1>} : vector<1x192xi32>
    %c0_37 = arith.constant 0 : index
    %c0_38 = arith.constant 0 : index
    %37 = vector.load %arg11[%c0_37, %c0_38] : memref<224x192xf32, #tpu.memory_space<vmem>>, vector<16x192xf32>
    %38 = vector.broadcast %35 : vector<1x192xf32> to vector<16x192xf32>
    %39 = arith.addf %37, %38 : vector<16x192xf32>
    %cst_39 = arith.constant 0.000000e+00 : f32
    %40 = vector.broadcast %cst_39 : f32 to vector<16x192xf32>
    %41 = arith.cmpf ogt, %39, %40 : vector<16x192xf32>
    %cst_40 = arith.constant 0.00999999977 : f32
    %42 = vector.broadcast %cst_40 : f32 to vector<16x192xf32>
    %43 = arith.mulf %42, %39 : vector<16x192xf32>
    %44 = arith.select %41, %39, %43 : vector<16x192xi1>, vector<16x192xf32>
    %c0_41 = arith.constant 0 : index
    %c0_42 = arith.constant 0 : index
    %45 = vector.load %arg12[%c0_41, %c0_42] : memref<16x192xf32, #tpu.memory_space<vmem>>, vector<16x192xf32>
    tpu.vector_store %arg12[%c0_41, %c0_42], %44 {strides = array<i32>} : memref<16x192xf32, #tpu.memory_space<vmem>>, vector<16x192xf32>,
    %c0_43 = arith.constant 0 : index
    %c0_44 = arith.constant 0 : index
    %46 = vector.load %arg13[%c0_43, %c0_44] : memref<16x192xf32, #tpu.memory_space<vmem>>, vector<16x192xf32>
    tpu.vector_store %arg13[%c0_43, %c0_44], %44 {strides = array<i32>} : memref<16x192xf32, #tpu.memory_space<vmem>>, vector<16x192xf32>,
    %c16 = arith.constant 16 : index
    %c0_45 = arith.constant 0 : index
    %47 = vector.load %arg11[%c16, %c0_45] : memref<224x192xf32, #tpu.memory_space<vmem>>, vector<16x192xf32>
    %48 = vector.broadcast %35 : vector<1x192xf32> to vector<16x192xf32>
    %49 = arith.addf %47, %48 : vector<16x192xf32>
    %cst_46 = arith.constant 0.000000e+00 : f32
    %50 = vector.broadcast %cst_46 : f32 to vector<16x192xf32>
    %51 = arith.cmpf ogt, %49, %50 : vector<16x192xf32>
    %cst_47 = arith.constant 0.00999999977 : f32
    %52 = vector.broadcast %cst_47 : f32 to vector<16x192xf32>
    %53 = arith.mulf %52, %49 : vector<16x192xf32>
    %54 = arith.select %51, %49, %53 : vector<16x192xi1>, vector<16x192xf32>
    %c0_48 = arith.constant 0 : index
    %c0_49 = arith.constant 0 : index
    %55 = vector.load %arg12[%c0_48, %c0_49] : memref<16x192xf32, #tpu.memory_space<vmem>>, vector<16x192xf32>
    %56 = arith.addf %55, %54 : vector<16x192xf32>
    %c0_50 = arith.constant 0 : index
    %c0_51 = arith.constant 0 : index
    %57 = vector.load %arg12[%c0_50, %c0_51] : memref<16x192xf32, #tpu.memory_space<vmem>>, vector<16x192xf32>
    tpu.vector_store %arg12[%c0_50, %c0_51], %56 {strides = array<i32>} : memref<16x192xf32, #tpu.memory_space<vmem>>, vector<16x192xf32>,
    %c0_52 = arith.constant 0 : index
    %c0_53 = arith.constant 0 : index
    %58 = vector.load %arg13[%c0_52, %c0_53] : memref<16x192xf32, #tpu.memory_space<vmem>>, vector<16x192xf32>
    %59 = arith.maximumf %58, %54 : vector<16x192xf32>
    %c0_54 = arith.constant 0 : index
    %c0_55 = arith.constant 0 : index
    %60 = vector.load %arg13[%c0_54, %c0_55] : memref<16x192xf32, #tpu.memory_space<vmem>>, vector<16x192xf32>
    tpu.vector_store %arg13[%c0_54, %c0_55], %59 {strides = array<i32>} : memref<16x192xf32, #tpu.memory_space<vmem>>, vector<16x192xf32>,
    %c32 = arith.constant 32 : index
    %c0_56 = arith.constant 0 : index
    %61 = vector.load %arg11[%c32, %c0_56] : memref<224x192xf32, #tpu.memory_space<vmem>>, vector<16x192xf32>
    %62 = vector.broadcast %35 : vector<1x192xf32> to vector<16x192xf32>
    %63 = arith.addf %61, %62 : vector<16x192xf32>
    %cst_57 = arith.constant 0.000000e+00 : f32
    %64 = vector.broadcast %cst_57 : f32 to vector<16x192xf32>
    %65 = arith.cmpf ogt, %63, %64 : vector<16x192xf32>
    %cst_58 = arith.constant 0.00999999977 : f32
    %66 = vector.broadcast %cst_58 : f32 to vector<16x192xf32>
    %67 = arith.mulf %66, %63 : vector<16x192xf32>
    %68 = arith.select %65, %63, %67 : vector<16x192xi1>, vector<16x192xf32>
    %c0_59 = arith.constant 0 : index
    %c0_60 = arith.constant 0 : index
    %69 = vector.load %arg12[%c0_59, %c0_60] : memref<16x192xf32, #tpu.memory_space<vmem>>, vector<16x192xf32>
    %70 = arith.addf %69, %68 : vector<16x192xf32>
    %c0_61 = arith.constant 0 : index
    %c0_62 = arith.constant 0 : index
    %71 = vector.load %arg12[%c0_61, %c0_62] : memref<16x192xf32, #tpu.memory_space<vmem>>, vector<16x192xf32>
    tpu.vector_store %arg12[%c0_61, %c0_62], %70 {strides = array<i32>} : memref<16x192xf32, #tpu.memory_space<vmem>>, vector<16x192xf32>,
    %c0_63 = arith.constant 0 : index
    %c0_64 = arith.constant 0 : index
    %72 = vector.load %arg13[%c0_63, %c0_64] : memref<16x192xf32, #tpu.memory_space<vmem>>, vector<16x192xf32>
    %73 = arith.maximumf %72, %68 : vector<16x192xf32>
    %c0_65 = arith.constant 0 : index
    %c0_66 = arith.constant 0 : index
    %74 = vector.load %arg13[%c0_65, %c0_66] : memref<16x192xf32, #tpu.memory_space<vmem>>, vector<16x192xf32>
    tpu.vector_store %arg13[%c0_65, %c0_66], %73 {strides = array<i32>} : memref<16x192xf32, #tpu.memory_space<vmem>>, vector<16x192xf32>,
    %c48 = arith.constant 48 : index
    %c0_67 = arith.constant 0 : index
    %75 = vector.load %arg11[%c48, %c0_67] : memref<224x192xf32, #tpu.memory_space<vmem>>, vector<16x192xf32>
    %76 = vector.broadcast %35 : vector<1x192xf32> to vector<16x192xf32>
    %77 = arith.addf %75, %76 : vector<16x192xf32>
    %cst_68 = arith.constant 0.000000e+00 : f32
    %78 = vector.broadcast %cst_68 : f32 to vector<16x192xf32>
    %79 = arith.cmpf ogt, %77, %78 : vector<16x192xf32>
    %cst_69 = arith.constant 0.00999999977 : f32
    %80 = vector.broadcast %cst_69 : f32 to vector<16x192xf32>
    %81 = arith.mulf %80, %77 : vector<16x192xf32>
    %82 = arith.select %79, %77, %81 : vector<16x192xi1>, vector<16x192xf32>
    %c0_70 = arith.constant 0 : index
    %c0_71 = arith.constant 0 : index
    %83 = vector.load %arg12[%c0_70, %c0_71] : memref<16x192xf32, #tpu.memory_space<vmem>>, vector<16x192xf32>
    %84 = arith.addf %83, %82 : vector<16x192xf32>
    %c0_72 = arith.constant 0 : index
    %c0_73 = arith.constant 0 : index
    %85 = vector.load %arg12[%c0_72, %c0_73] : memref<16x192xf32, #tpu.memory_space<vmem>>, vector<16x192xf32>
    tpu.vector_store %arg12[%c0_72, %c0_73], %84 {strides = array<i32>} : memref<16x192xf32, #tpu.memory_space<vmem>>, vector<16x192xf32>,
    %c0_74 = arith.constant 0 : index
    %c0_75 = arith.constant 0 : index
    %86 = vector.load %arg13[%c0_74, %c0_75] : memref<16x192xf32, #tpu.memory_space<vmem>>, vector<16x192xf32>
    %87 = arith.maximumf %86, %82 : vector<16x192xf32>
    %c0_76 = arith.constant 0 : index
    %c0_77 = arith.constant 0 : index
    %88 = vector.load %arg13[%c0_76, %c0_77] : memref<16x192xf32, #tpu.memory_space<vmem>>, vector<16x192xf32>
    tpu.vector_store %arg13[%c0_76, %c0_77], %87 {strides = array<i32>} : memref<16x192xf32, #tpu.memory_space<vmem>>, vector<16x192xf32>,
    %c64 = arith.constant 64 : index
    %c0_78 = arith.constant 0 : index
    %89 = vector.load %arg11[%c64, %c0_78] : memref<224x192xf32, #tpu.memory_space<vmem>>, vector<16x192xf32>
    %90 = vector.broadcast %35 : vector<1x192xf32> to vector<16x192xf32>
    %91 = arith.addf %89, %90 : vector<16x192xf32>
    %cst_79 = arith.constant 0.000000e+00 : f32
    %92 = vector.broadcast %cst_79 : f32 to vector<16x192xf32>
    %93 = arith.cmpf ogt, %91, %92 : vector<16x192xf32>
    %cst_80 = arith.constant 0.00999999977 : f32
    %94 = vector.broadcast %cst_80 : f32 to vector<16x192xf32>
    %95 = arith.mulf %94, %91 : vector<16x192xf32>
    %96 = arith.select %93, %91, %95 : vector<16x192xi1>, vector<16x192xf32>
    %c0_81 = arith.constant 0 : index
    %c0_82 = arith.constant 0 : index
    %97 = vector.load %arg12[%c0_81, %c0_82] : memref<16x192xf32, #tpu.memory_space<vmem>>, vector<16x192xf32>
    %98 = arith.addf %97, %96 : vector<16x192xf32>
    %c0_83 = arith.constant 0 : index
    %c0_84 = arith.constant 0 : index
    %99 = vector.load %arg12[%c0_83, %c0_84] : memref<16x192xf32, #tpu.memory_space<vmem>>, vector<16x192xf32>
    tpu.vector_store %arg12[%c0_83, %c0_84], %98 {strides = array<i32>} : memref<16x192xf32, #tpu.memory_space<vmem>>, vector<16x192xf32>,
    %c0_85 = arith.constant 0 : index
    %c0_86 = arith.constant 0 : index
    %100 = vector.load %arg13[%c0_85, %c0_86] : memref<16x192xf32, #tpu.memory_space<vmem>>, vector<16x192xf32>
    %101 = arith.maximumf %100, %96 : vector<16x192xf32>
    %c0_87 = arith.constant 0 : index
    %c0_88 = arith.constant 0 : index
    %102 = vector.load %arg13[%c0_87, %c0_88] : memref<16x192xf32, #tpu.memory_space<vmem>>, vector<16x192xf32>
    tpu.vector_store %arg13[%c0_87, %c0_88], %101 {strides = array<i32>} : memref<16x192xf32, #tpu.memory_space<vmem>>, vector<16x192xf32>,
    %c80 = arith.constant 80 : index
    %c0_89 = arith.constant 0 : index
    %103 = vector.load %arg11[%c80, %c0_89] : memref<224x192xf32, #tpu.memory_space<vmem>>, vector<16x192xf32>
    %104 = vector.broadcast %35 : vector<1x192xf32> to vector<16x192xf32>
    %105 = arith.addf %103, %104 : vector<16x192xf32>
    %cst_90 = arith.constant 0.000000e+00 : f32
    %106 = vector.broadcast %cst_90 : f32 to vector<16x192xf32>
    %107 = arith.cmpf ogt, %105, %106 : vector<16x192xf32>
    %cst_91 = arith.constant 0.00999999977 : f32
    %108 = vector.broadcast %cst_91 : f32 to vector<16x192xf32>
    %109 = arith.mulf %108, %105 : vector<16x192xf32>
    %110 = arith.select %107, %105, %109 : vector<16x192xi1>, vector<16x192xf32>
    %c0_92 = arith.constant 0 : index
    %c0_93 = arith.constant 0 : index
    %111 = vector.load %arg12[%c0_92, %c0_93] : memref<16x192xf32, #tpu.memory_space<vmem>>, vector<16x192xf32>
    %112 = arith.addf %111, %110 : vector<16x192xf32>
    %c0_94 = arith.constant 0 : index
    %c0_95 = arith.constant 0 : index
    %113 = vector.load %arg12[%c0_94, %c0_95] : memref<16x192xf32, #tpu.memory_space<vmem>>, vector<16x192xf32>
    tpu.vector_store %arg12[%c0_94, %c0_95], %112 {strides = array<i32>} : memref<16x192xf32, #tpu.memory_space<vmem>>, vector<16x192xf32>,
    %c0_96 = arith.constant 0 : index
    %c0_97 = arith.constant 0 : index
    %114 = vector.load %arg13[%c0_96, %c0_97] : memref<16x192xf32, #tpu.memory_space<vmem>>, vector<16x192xf32>
    %115 = arith.maximumf %114, %110 : vector<16x192xf32>
    %c0_98 = arith.constant 0 : index
    %c0_99 = arith.constant 0 : index
    %116 = vector.load %arg13[%c0_98, %c0_99] : memref<16x192xf32, #tpu.memory_space<vmem>>, vector<16x192xf32>
    tpu.vector_store %arg13[%c0_98, %c0_99], %115 {strides = array<i32>} : memref<16x192xf32, #tpu.memory_space<vmem>>, vector<16x192xf32>,
    %c96 = arith.constant 96 : index
    %c0_100 = arith.constant 0 : index
    %117 = vector.load %arg11[%c96, %c0_100] : memref<224x192xf32, #tpu.memory_space<vmem>>, vector<16x192xf32>
    %118 = vector.broadcast %35 : vector<1x192xf32> to vector<16x192xf32>
    %119 = arith.addf %117, %118 : vector<16x192xf32>
    %cst_101 = arith.constant 0.000000e+00 : f32
    %120 = vector.broadcast %cst_101 : f32 to vector<16x192xf32>
    %121 = arith.cmpf ogt, %119, %120 : vector<16x192xf32>
    %cst_102 = arith.constant 0.00999999977 : f32
    %122 = vector.broadcast %cst_102 : f32 to vector<16x192xf32>
    %123 = arith.mulf %122, %119 : vector<16x192xf32>
    %124 = arith.select %121, %119, %123 : vector<16x192xi1>, vector<16x192xf32>
    %c0_103 = arith.constant 0 : index
    %c0_104 = arith.constant 0 : index
    %125 = vector.load %arg12[%c0_103, %c0_104] : memref<16x192xf32, #tpu.memory_space<vmem>>, vector<16x192xf32>
    %126 = arith.addf %125, %124 : vector<16x192xf32>
    %c0_105 = arith.constant 0 : index
    %c0_106 = arith.constant 0 : index
    %127 = vector.load %arg12[%c0_105, %c0_106] : memref<16x192xf32, #tpu.memory_space<vmem>>, vector<16x192xf32>
    tpu.vector_store %arg12[%c0_105, %c0_106], %126 {strides = array<i32>} : memref<16x192xf32, #tpu.memory_space<vmem>>, vector<16x192xf32>,
    %c0_107 = arith.constant 0 : index
    %c0_108 = arith.constant 0 : index
    %128 = vector.load %arg13[%c0_107, %c0_108] : memref<16x192xf32, #tpu.memory_space<vmem>>, vector<16x192xf32>
    %129 = arith.maximumf %128, %124 : vector<16x192xf32>
    %c0_109 = arith.constant 0 : index
    %c0_110 = arith.constant 0 : index
    %130 = vector.load %arg13[%c0_109, %c0_110] : memref<16x192xf32, #tpu.memory_space<vmem>>, vector<16x192xf32>
    tpu.vector_store %arg13[%c0_109, %c0_110], %129 {strides = array<i32>} : memref<16x192xf32, #tpu.memory_space<vmem>>, vector<16x192xf32>,
    %c112 = arith.constant 112 : index
    %c0_111 = arith.constant 0 : index
    %131 = vector.load %arg11[%c112, %c0_111] : memref<224x192xf32, #tpu.memory_space<vmem>>, vector<16x192xf32>
    %132 = vector.broadcast %35 : vector<1x192xf32> to vector<16x192xf32>
    %133 = arith.addf %131, %132 : vector<16x192xf32>
    %cst_112 = arith.constant 0.000000e+00 : f32
    %134 = vector.broadcast %cst_112 : f32 to vector<16x192xf32>
    %135 = arith.cmpf ogt, %133, %134 : vector<16x192xf32>
    %cst_113 = arith.constant 0.00999999977 : f32
    %136 = vector.broadcast %cst_113 : f32 to vector<16x192xf32>
    %137 = arith.mulf %136, %133 : vector<16x192xf32>
    %138 = arith.select %135, %133, %137 : vector<16x192xi1>, vector<16x192xf32>
    %c0_114 = arith.constant 0 : index
    %c0_115 = arith.constant 0 : index
    %139 = vector.load %arg12[%c0_114, %c0_115] : memref<16x192xf32, #tpu.memory_space<vmem>>, vector<16x192xf32>
    %140 = arith.addf %139, %138 : vector<16x192xf32>
    %c0_116 = arith.constant 0 : index
    %c0_117 = arith.constant 0 : index
    %141 = vector.load %arg12[%c0_116, %c0_117] : memref<16x192xf32, #tpu.memory_space<vmem>>, vector<16x192xf32>
    tpu.vector_store %arg12[%c0_116, %c0_117], %140 {strides = array<i32>} : memref<16x192xf32, #tpu.memory_space<vmem>>, vector<16x192xf32>,
    %c0_118 = arith.constant 0 : index
    %c0_119 = arith.constant 0 : index
    %142 = vector.load %arg13[%c0_118, %c0_119] : memref<16x192xf32, #tpu.memory_space<vmem>>, vector<16x192xf32>
    %143 = arith.maximumf %142, %138 : vector<16x192xf32>
    %c0_120 = arith.constant 0 : index
    %c0_121 = arith.constant 0 : index
    %144 = vector.load %arg13[%c0_120, %c0_121] : memref<16x192xf32, #tpu.memory_space<vmem>>, vector<16x192xf32>
    tpu.vector_store %arg13[%c0_120, %c0_121], %143 {strides = array<i32>} : memref<16x192xf32, #tpu.memory_space<vmem>>, vector<16x192xf32>,
    %c128 = arith.constant 128 : index
    %c0_122 = arith.constant 0 : index
    %145 = vector.load %arg11[%c128, %c0_122] : memref<224x192xf32, #tpu.memory_space<vmem>>, vector<16x192xf32>
    %146 = vector.broadcast %35 : vector<1x192xf32> to vector<16x192xf32>
    %147 = arith.addf %145, %146 : vector<16x192xf32>
    %cst_123 = arith.constant 0.000000e+00 : f32
    %148 = vector.broadcast %cst_123 : f32 to vector<16x192xf32>
    %149 = arith.cmpf ogt, %147, %148 : vector<16x192xf32>
    %cst_124 = arith.constant 0.00999999977 : f32
    %150 = vector.broadcast %cst_124 : f32 to vector<16x192xf32>
    %151 = arith.mulf %150, %147 : vector<16x192xf32>
    %152 = arith.select %149, %147, %151 : vector<16x192xi1>, vector<16x192xf32>
    %c0_125 = arith.constant 0 : index
    %c0_126 = arith.constant 0 : index
    %153 = vector.load %arg12[%c0_125, %c0_126] : memref<16x192xf32, #tpu.memory_space<vmem>>, vector<16x192xf32>
    %154 = arith.addf %153, %152 : vector<16x192xf32>
    %c0_127 = arith.constant 0 : index
    %c0_128 = arith.constant 0 : index
    %155 = vector.load %arg12[%c0_127, %c0_128] : memref<16x192xf32, #tpu.memory_space<vmem>>, vector<16x192xf32>
    tpu.vector_store %arg12[%c0_127, %c0_128], %154 {strides = array<i32>} : memref<16x192xf32, #tpu.memory_space<vmem>>, vector<16x192xf32>,
    %c0_129 = arith.constant 0 : index
    %c0_130 = arith.constant 0 : index
    %156 = vector.load %arg13[%c0_129, %c0_130] : memref<16x192xf32, #tpu.memory_space<vmem>>, vector<16x192xf32>
    %157 = arith.maximumf %156, %152 : vector<16x192xf32>
    %c0_131 = arith.constant 0 : index
    %c0_132 = arith.constant 0 : index
    %158 = vector.load %arg13[%c0_131, %c0_132] : memref<16x192xf32, #tpu.memory_space<vmem>>, vector<16x192xf32>
    tpu.vector_store %arg13[%c0_131, %c0_132], %157 {strides = array<i32>} : memref<16x192xf32, #tpu.memory_space<vmem>>, vector<16x192xf32>,
    %c144 = arith.constant 144 : index
    %c0_133 = arith.constant 0 : index
    %159 = vector.load %arg11[%c144, %c0_133] : memref<224x192xf32, #tpu.memory_space<vmem>>, vector<16x192xf32>
    %160 = vector.broadcast %35 : vector<1x192xf32> to vector<16x192xf32>
    %161 = arith.addf %159, %160 : vector<16x192xf32>
    %cst_134 = arith.constant 0.000000e+00 : f32
    %162 = vector.broadcast %cst_134 : f32 to vector<16x192xf32>
    %163 = arith.cmpf ogt, %161, %162 : vector<16x192xf32>
    %cst_135 = arith.constant 0.00999999977 : f32
    %164 = vector.broadcast %cst_135 : f32 to vector<16x192xf32>
    %165 = arith.mulf %164, %161 : vector<16x192xf32>
    %166 = arith.select %163, %161, %165 : vector<16x192xi1>, vector<16x192xf32>
    %c0_136 = arith.constant 0 : index
    %c0_137 = arith.constant 0 : index
    %167 = vector.load %arg12[%c0_136, %c0_137] : memref<16x192xf32, #tpu.memory_space<vmem>>, vector<16x192xf32>
    %168 = arith.addf %167, %166 : vector<16x192xf32>
    %c0_138 = arith.constant 0 : index
    %c0_139 = arith.constant 0 : index
    %169 = vector.load %arg12[%c0_138, %c0_139] : memref<16x192xf32, #tpu.memory_space<vmem>>, vector<16x192xf32>
    tpu.vector_store %arg12[%c0_138, %c0_139], %168 {strides = array<i32>} : memref<16x192xf32, #tpu.memory_space<vmem>>, vector<16x192xf32>,
    %c0_140 = arith.constant 0 : index
    %c0_141 = arith.constant 0 : index
    %170 = vector.load %arg13[%c0_140, %c0_141] : memref<16x192xf32, #tpu.memory_space<vmem>>, vector<16x192xf32>
    %171 = arith.maximumf %170, %166 : vector<16x192xf32>
    %c0_142 = arith.constant 0 : index
    %c0_143 = arith.constant 0 : index
    %172 = vector.load %arg13[%c0_142, %c0_143] : memref<16x192xf32, #tpu.memory_space<vmem>>, vector<16x192xf32>
    tpu.vector_store %arg13[%c0_142, %c0_143], %171 {strides = array<i32>} : memref<16x192xf32, #tpu.memory_space<vmem>>, vector<16x192xf32>,
    %c160 = arith.constant 160 : index
    %c0_144 = arith.constant 0 : index
    %173 = vector.load %arg11[%c160, %c0_144] : memref<224x192xf32, #tpu.memory_space<vmem>>, vector<16x192xf32>
    %174 = vector.broadcast %35 : vector<1x192xf32> to vector<16x192xf32>
    %175 = arith.addf %173, %174 : vector<16x192xf32>
    %cst_145 = arith.constant 0.000000e+00 : f32
    %176 = vector.broadcast %cst_145 : f32 to vector<16x192xf32>
    %177 = arith.cmpf ogt, %175, %176 : vector<16x192xf32>
    %cst_146 = arith.constant 0.00999999977 : f32
    %178 = vector.broadcast %cst_146 : f32 to vector<16x192xf32>
    %179 = arith.mulf %178, %175 : vector<16x192xf32>
    %180 = arith.select %177, %175, %179 : vector<16x192xi1>, vector<16x192xf32>
    %c0_147 = arith.constant 0 : index
    %c0_148 = arith.constant 0 : index
    %181 = vector.load %arg12[%c0_147, %c0_148] : memref<16x192xf32, #tpu.memory_space<vmem>>, vector<16x192xf32>
    %182 = arith.addf %181, %180 : vector<16x192xf32>
    %c0_149 = arith.constant 0 : index
    %c0_150 = arith.constant 0 : index
    %183 = vector.load %arg12[%c0_149, %c0_150] : memref<16x192xf32, #tpu.memory_space<vmem>>, vector<16x192xf32>
    tpu.vector_store %arg12[%c0_149, %c0_150], %182 {strides = array<i32>} : memref<16x192xf32, #tpu.memory_space<vmem>>, vector<16x192xf32>,
    %c0_151 = arith.constant 0 : index
    %c0_152 = arith.constant 0 : index
    %184 = vector.load %arg13[%c0_151, %c0_152] : memref<16x192xf32, #tpu.memory_space<vmem>>, vector<16x192xf32>
    %185 = arith.maximumf %184, %180 : vector<16x192xf32>
    %c0_153 = arith.constant 0 : index
    %c0_154 = arith.constant 0 : index
    %186 = vector.load %arg13[%c0_153, %c0_154] : memref<16x192xf32, #tpu.memory_space<vmem>>, vector<16x192xf32>
    tpu.vector_store %arg13[%c0_153, %c0_154], %185 {strides = array<i32>} : memref<16x192xf32, #tpu.memory_space<vmem>>, vector<16x192xf32>,
    %c176 = arith.constant 176 : index
    %c0_155 = arith.constant 0 : index
    %187 = vector.load %arg11[%c176, %c0_155] : memref<224x192xf32, #tpu.memory_space<vmem>>, vector<16x192xf32>
    %188 = vector.broadcast %35 : vector<1x192xf32> to vector<16x192xf32>
    %189 = arith.addf %187, %188 : vector<16x192xf32>
    %cst_156 = arith.constant 0.000000e+00 : f32
    %190 = vector.broadcast %cst_156 : f32 to vector<16x192xf32>
    %191 = arith.cmpf ogt, %189, %190 : vector<16x192xf32>
    %cst_157 = arith.constant 0.00999999977 : f32
    %192 = vector.broadcast %cst_157 : f32 to vector<16x192xf32>
    %193 = arith.mulf %192, %189 : vector<16x192xf32>
    %194 = arith.select %191, %189, %193 : vector<16x192xi1>, vector<16x192xf32>
    %c0_158 = arith.constant 0 : index
    %c0_159 = arith.constant 0 : index
    %195 = vector.load %arg12[%c0_158, %c0_159] : memref<16x192xf32, #tpu.memory_space<vmem>>, vector<16x192xf32>
    %196 = arith.addf %195, %194 : vector<16x192xf32>
    %c0_160 = arith.constant 0 : index
    %c0_161 = arith.constant 0 : index
    %197 = vector.load %arg12[%c0_160, %c0_161] : memref<16x192xf32, #tpu.memory_space<vmem>>, vector<16x192xf32>
    tpu.vector_store %arg12[%c0_160, %c0_161], %196 {strides = array<i32>} : memref<16x192xf32, #tpu.memory_space<vmem>>, vector<16x192xf32>,
    %c0_162 = arith.constant 0 : index
    %c0_163 = arith.constant 0 : index
    %198 = vector.load %arg13[%c0_162, %c0_163] : memref<16x192xf32, #tpu.memory_space<vmem>>, vector<16x192xf32>
    %199 = arith.maximumf %198, %194 : vector<16x192xf32>
    %c0_164 = arith.constant 0 : index
    %c0_165 = arith.constant 0 : index
    %200 = vector.load %arg13[%c0_164, %c0_165] : memref<16x192xf32, #tpu.memory_space<vmem>>, vector<16x192xf32>
    tpu.vector_store %arg13[%c0_164, %c0_165], %199 {strides = array<i32>} : memref<16x192xf32, #tpu.memory_space<vmem>>, vector<16x192xf32>,
    %c192 = arith.constant 192 : index
    %c0_166 = arith.constant 0 : index
    %201 = vector.load %arg11[%c192, %c0_166] : memref<224x192xf32, #tpu.memory_space<vmem>>, vector<16x192xf32>
    %202 = vector.broadcast %35 : vector<1x192xf32> to vector<16x192xf32>
    %203 = arith.addf %201, %202 : vector<16x192xf32>
    %cst_167 = arith.constant 0.000000e+00 : f32
    %204 = vector.broadcast %cst_167 : f32 to vector<16x192xf32>
    %205 = arith.cmpf ogt, %203, %204 : vector<16x192xf32>
    %cst_168 = arith.constant 0.00999999977 : f32
    %206 = vector.broadcast %cst_168 : f32 to vector<16x192xf32>
    %207 = arith.mulf %206, %203 : vector<16x192xf32>
    %208 = arith.select %205, %203, %207 : vector<16x192xi1>, vector<16x192xf32>
    %c128_i32 = arith.constant 128 : i32
    %209 = vector.broadcast %c128_i32 : i32 to vector<1x192xi32>
    %210 = arith.cmpi slt, %36, %209 : vector<1x192xi32>
    %c0_169 = arith.constant 0 : index
    %c0_170 = arith.constant 0 : index
    %211 = vector.load %arg12[%c0_169, %c0_170] : memref<16x192xf32, #tpu.memory_space<vmem>>, vector<16x192xf32>
    %cst_171 = arith.constant 0.000000e+00 : f32
    %212 = vector.shape_cast %210 : vector<1x192xi1> to vector<1x192xi1>
    %213 = vector.broadcast %212 : vector<1x192xi1> to vector<16x192xi1>
    %214 = vector.broadcast %cst_171 : f32 to vector<16x192xf32>
    %215 = arith.select %213, %208, %214 : vector<16x192xi1>, vector<16x192xf32>
    %216 = arith.addf %211, %215 : vector<16x192xf32>
    %c0_172 = arith.constant 0 : index
    %c0_173 = arith.constant 0 : index
    %217 = vector.load %arg12[%c0_172, %c0_173] : memref<16x192xf32, #tpu.memory_space<vmem>>, vector<16x192xf32>
    tpu.vector_store %arg12[%c0_172, %c0_173], %216 {strides = array<i32>} : memref<16x192xf32, #tpu.memory_space<vmem>>, vector<16x192xf32>,
    %c0_174 = arith.constant 0 : index
    %c0_175 = arith.constant 0 : index
    %218 = vector.load %arg13[%c0_174, %c0_175] : memref<16x192xf32, #tpu.memory_space<vmem>>, vector<16x192xf32>
    %cst_176 = arith.constant -1.000000e+30 : f32
    %219 = vector.shape_cast %210 : vector<1x192xi1> to vector<1x192xi1>
    %220 = vector.broadcast %219 : vector<1x192xi1> to vector<16x192xi1>
    %221 = vector.broadcast %cst_176 : f32 to vector<16x192xf32>
    %222 = arith.select %220, %208, %221 : vector<16x192xi1>, vector<16x192xf32>
    %223 = arith.maximumf %218, %222 : vector<16x192xf32>
    %c0_177 = arith.constant 0 : index
    %c0_178 = arith.constant 0 : index
    %224 = vector.load %arg13[%c0_177, %c0_178] : memref<16x192xf32, #tpu.memory_space<vmem>>, vector<16x192xf32>
    tpu.vector_store %arg13[%c0_177, %c0_178], %223 {strides = array<i32>} : memref<16x192xf32, #tpu.memory_space<vmem>>, vector<16x192xf32>,
    %c208 = arith.constant 208 : index
    %c0_179 = arith.constant 0 : index
    %225 = vector.load %arg11[%c208, %c0_179] : memref<224x192xf32, #tpu.memory_space<vmem>>, vector<16x192xf32>
    %226 = vector.broadcast %35 : vector<1x192xf32> to vector<16x192xf32>
    %227 = arith.addf %225, %226 : vector<16x192xf32>
    %cst_180 = arith.constant 0.000000e+00 : f32
    %228 = vector.broadcast %cst_180 : f32 to vector<16x192xf32>
    %229 = arith.cmpf ogt, %227, %228 : vector<16x192xf32>
    %cst_181 = arith.constant 0.00999999977 : f32
    %230 = vector.broadcast %cst_181 : f32 to vector<16x192xf32>
    %231 = arith.mulf %230, %227 : vector<16x192xf32>
    %232 = arith.select %229, %227, %231 : vector<16x192xi1>, vector<16x192xf32>
    %c64_i32 = arith.constant 64 : i32
    %233 = vector.broadcast %c64_i32 : i32 to vector<1x192xi32>
    %234 = arith.cmpi slt, %36, %233 : vector<1x192xi32>
    %c0_182 = arith.constant 0 : index
    %c0_183 = arith.constant 0 : index
    %235 = vector.load %arg12[%c0_182, %c0_183] : memref<16x192xf32, #tpu.memory_space<vmem>>, vector<16x192xf32>
    %cst_184 = arith.constant 0.000000e+00 : f32
    %236 = vector.shape_cast %234 : vector<1x192xi1> to vector<1x192xi1>
    %237 = vector.broadcast %236 : vector<1x192xi1> to vector<16x192xi1>
    %238 = vector.broadcast %cst_184 : f32 to vector<16x192xf32>
    %239 = arith.select %237, %232, %238 : vector<16x192xi1>, vector<16x192xf32>
    %240 = arith.addf %235, %239 : vector<16x192xf32>
    %c0_185 = arith.constant 0 : index
    %c0_186 = arith.constant 0 : index
    %241 = vector.load %arg12[%c0_185, %c0_186] : memref<16x192xf32, #tpu.memory_space<vmem>>, vector<16x192xf32>
    tpu.vector_store %arg12[%c0_185, %c0_186], %240 {strides = array<i32>} : memref<16x192xf32, #tpu.memory_space<vmem>>, vector<16x192xf32>,
    %c0_187 = arith.constant 0 : index
    %c0_188 = arith.constant 0 : index
    %242 = vector.load %arg13[%c0_187, %c0_188] : memref<16x192xf32, #tpu.memory_space<vmem>>, vector<16x192xf32>
    %cst_189 = arith.constant -1.000000e+30 : f32
    %243 = vector.shape_cast %234 : vector<1x192xi1> to vector<1x192xi1>
    %244 = vector.broadcast %243 : vector<1x192xi1> to vector<16x192xi1>
    %245 = vector.broadcast %cst_189 : f32 to vector<16x192xf32>
    %246 = arith.select %244, %232, %245 : vector<16x192xi1>, vector<16x192xf32>
    %247 = arith.maximumf %242, %246 : vector<16x192xf32>
    %c0_190 = arith.constant 0 : index
    %c0_191 = arith.constant 0 : index
    %248 = vector.load %arg13[%c0_190, %c0_191] : memref<16x192xf32, #tpu.memory_space<vmem>>, vector<16x192xf32>
    tpu.vector_store %arg13[%c0_190, %c0_191], %247 {strides = array<i32>} : memref<16x192xf32, #tpu.memory_space<vmem>>, vector<16x192xf32>,
    %c0_192 = arith.constant 0 : index
    %c0_193 = arith.constant 0 : index
    %249 = vector.load %arg12[%c0_192, %c0_193] : memref<16x192xf32, #tpu.memory_space<vmem>>, vector<16x192xf32>
    %250 = arith.truncf %249 : vector<16x192xf32> to vector<16x192xbf16>
    %c0_194 = arith.constant 0 : index
    %c0_195 = arith.constant 0 : index
    %251 = vector.load %arg4[%c0_194, %c0_195] : memref<192x12xbf16, #tpu.memory_space<vmem>>, vector<192x12xbf16>
    %cst_196 = arith.constant dense<0.000000e+00> : vector<16x12xf32>
    %252 = tpu.matmul %250, %251, %cst_196 {dimension_numbers = #tpu.dot_dimension_numbers<[1], [0], [0], [1], [0, 0, 1, 1], [], []>} : vector<16x192xbf16>, vector<192x12xbf16>, vector<16x12xf32> -> vector<16x12xf32>
    %cst_197 = arith.constant 0.000000e+00 : f32
    %253 = vector.broadcast %cst_197 : f32 to vector<16x12xf32>
    %254 = arith.maximumf %252, %253 : vector<16x12xf32>
    %255 = arith.truncf %254 : vector<16x12xf32> to vector<16x12xbf16>
    %c0_198 = arith.constant 0 : index
    %c0_199 = arith.constant 0 : index
    %256 = vector.load %arg5[%c0_198, %c0_199] : memref<12x192xbf16, #tpu.memory_space<vmem>>, vector<12x192xbf16>
    %cst_200 = arith.constant dense<0.000000e+00> : vector<16x192xf32>
    %257 = tpu.matmul %255, %256, %cst_200 {dimension_numbers = #tpu.dot_dimension_numbers<[1], [0], [0], [1], [0, 0, 1, 1], [], []>} : vector<16x12xbf16>, vector<12x192xbf16>, vector<16x192xf32> -> vector<16x192xf32>
    %cst_201 = arith.constant 0.000000e+00 : f32
    %258 = vector.broadcast %cst_201 : f32 to vector<16x192xf32>
    %259 = arith.subf %258, %257 : vector<16x192xf32>
    %260 = math.exp %259 : vector<16x192xf32>
    %cst_202 = arith.constant 1.000000e+00 : f32
    %261 = vector.broadcast %cst_202 : f32 to vector<16x192xf32>
    %262 = arith.addf %261, %260 : vector<16x192xf32>
    %263 = tpu.reciprocal %262 {approx = true} : vector<16x192xf32> -> vector<16x192xf32>
    %c0_203 = arith.constant 0 : index
    %c0_204 = arith.constant 0 : index
    %264 = vector.load %arg13[%c0_203, %c0_204] : memref<16x192xf32, #tpu.memory_space<vmem>>, vector<16x192xf32>
    %265 = arith.mulf %263, %264 : vector<16x192xf32>
    %266 = arith.truncf %265 : vector<16x192xf32> to vector<16x192xbf16>
    %c0_205 = arith.constant 0 : index
    %c0_206 = arith.constant 0 : index
    %267 = vector.load %arg6[%c0_205, %c0_206] : memref<192x64xbf16, #tpu.memory_space<vmem>>, vector<192x64xbf16>
    %cst_207 = arith.constant dense<0.000000e+00> : vector<16x64xf32>
    %268 = tpu.matmul %266, %267, %cst_207 {dimension_numbers = #tpu.dot_dimension_numbers<[1], [0], [0], [1], [0, 0, 1, 1], [], []>} : vector<16x192xbf16>, vector<192x64xbf16>, vector<16x64xf32> -> vector<16x64xf32>
    %c0_208 = arith.constant 0 : index
    %c0_209 = arith.constant 0 : index
    %269 = vector.load %arg7[%c0_208, %c0_209] : memref<1x64xf32, #tpu.memory_space<vmem>>, vector<1x64xf32>
    %270 = vector.broadcast %269 : vector<1x64xf32> to vector<16x64xf32>
    %271 = arith.addf %268, %270 : vector<16x64xf32>
    %cst_210 = arith.constant 0.000000e+00 : f32
    %272 = vector.broadcast %cst_210 : f32 to vector<16x64xf32>
    %273 = arith.cmpf ogt, %271, %272 : vector<16x64xf32>
    %cst_211 = arith.constant 0.00999999977 : f32
    %274 = vector.broadcast %cst_211 : f32 to vector<16x64xf32>
    %275 = arith.mulf %274, %271 : vector<16x64xf32>
    %276 = arith.select %273, %271, %275 : vector<16x64xi1>, vector<16x64xf32>
    %277 = arith.truncf %276 : vector<16x64xf32> to vector<16x64xbf16>
    %c0_212 = arith.constant 0 : index
    %c0_213 = arith.constant 0 : index
    %278 = vector.load %arg8[%c0_212, %c0_213] : memref<64x128xbf16, #tpu.memory_space<vmem>>, vector<64x128xbf16>
    %cst_214 = arith.constant dense<0.000000e+00> : vector<16x128xf32>
    %279 = tpu.matmul %277, %278, %cst_214 {dimension_numbers = #tpu.dot_dimension_numbers<[1], [0], [0], [1], [0, 0, 1, 1], [], []>} : vector<16x64xbf16>, vector<64x128xbf16>, vector<16x128xf32> -> vector<16x128xf32>
    %c0_215 = arith.constant 0 : index
    %c0_216 = arith.constant 0 : index
    %280 = vector.load %arg9[%c0_215, %c0_216] : memref<1x128xf32, #tpu.memory_space<vmem>>, vector<1x128xf32>
    %281 = vector.broadcast %280 : vector<1x128xf32> to vector<16x128xf32>
    %282 = arith.addf %279, %281 : vector<16x128xf32>
    %c0_217 = arith.constant 0 : index
    %c0_218 = arith.constant 0 : index
    %283 = vector.load %arg10[%c0_217, %c0_218] : memref<16x128xf32, #tpu.memory_space<vmem>>, vector<16x128xf32>
    tpu.vector_store %arg10[%c0_217, %c0_218], %282 {strides = array<i32>} : memref<16x128xf32, #tpu.memory_space<vmem>>, vector<16x128xf32>,
    return
  }
  func.func @transform_0(%arg0: i32) -> (i32, i32, i32) {
    %c0_i32 = arith.constant 0 : i32
    %c0_i32_0 = arith.constant 0 : i32
    %c0_i32_1 = arith.constant 0 : i32
    return %c0_i32, %arg0, %c0_i32_0 : i32, i32, i32
  }
  func.func @transform_1(%arg0: i32) -> (i32, i32, i32) {
    %c0_i32 = arith.constant 0 : i32
    %c0_i32_0 = arith.constant 0 : i32
    %c0_i32_1 = arith.constant 0 : i32
    %c0_i32_2 = arith.constant 0 : i32
    return %c0_i32, %c0_i32_0, %c0_i32_1 : i32, i32, i32
  }
  func.func @transform_2(%arg0: i32) -> (i32, i32) {
    %c0_i32 = arith.constant 0 : i32
    %c0_i32_0 = arith.constant 0 : i32
    %c0_i32_1 = arith.constant 0 : i32
    return %c0_i32, %c0_i32_0 : i32, i32
  }
  func.func @transform_3(%arg0: i32) -> (i32, i32) {
    %c0_i32 = arith.constant 0 : i32
    %c0_i32_0 = arith.constant 0 : i32
    %c0_i32_1 = arith.constant 0 : i32
    return %c0_i32, %c0_i32_0 : i32, i32
  }
  func.func @transform_4(%arg0: i32) -> (i32, i32) {
    %c0_i32 = arith.constant 0 : i32
    %c0_i32_0 = arith.constant 0 : i32
    %c0_i32_1 = arith.constant 0 : i32
    return %c0_i32, %c0_i32_0 : i32, i32
  }
  func.func @transform_5(%arg0: i32) -> (i32, i32) {
    %c0_i32 = arith.constant 0 : i32
    %c0_i32_0 = arith.constant 0 : i32
    %c0_i32_1 = arith.constant 0 : i32
    return %c0_i32, %c0_i32_0 : i32, i32
  }
  func.func @transform_6(%arg0: i32) -> (i32, i32) {
    %c0_i32 = arith.constant 0 : i32
    %c0_i32_0 = arith.constant 0 : i32
    %c0_i32_1 = arith.constant 0 : i32
    return %c0_i32, %c0_i32_0 : i32, i32
  }
  func.func @transform_7(%arg0: i32) -> (i32, i32) {
    %c0_i32 = arith.constant 0 : i32
    %c0_i32_0 = arith.constant 0 : i32
    %c0_i32_1 = arith.constant 0 : i32
    return %c0_i32, %c0_i32_0 : i32, i32
  }
  func.func @transform_8(%arg0: i32) -> (i32, i32) {
    %c0_i32 = arith.constant 0 : i32
    %c0_i32_0 = arith.constant 0 : i32
    %c0_i32_1 = arith.constant 0 : i32
    return %c0_i32, %c0_i32_0 : i32, i32
  }
  func.func @transform_9(%arg0: i32) -> (i32, i32) {
    %c0_i32 = arith.constant 0 : i32
    %c0_i32_0 = arith.constant 0 : i32
    return %arg0, %c0_i32 : i32, i32
  }
}

</mosaic_0001>

<bundles_post_ra>
// kernel: tpu_custom_call.1
= control target key start
LH: loop header
LB: loop body
LE: loop exit
PB: predicated region body
PF: predicated region fallthrough
CT: control target
= control target key end

     0   :  { %14 = vsyncpa [#allocation6], 0  ;;  %s4658_s0 = inlined_call_operand.vmem [shape: bf16[18,16,64], index: 0, kind: input, shape index: {}]   ;;  %s4659_s1 = inlined_call_operand.hbm [shape: bf16[5,64,192], index: 1, kind: input, shape index: {}]   ;;  %s4660_s2 = inlined_call_operand.vmem [shape: f32[1,192], index: 2, kind: input, shape index: {}]   ;;  %s4661_s3 = inlined_call_operand.vmem [shape: bf16[192,12], index: 3, kind: input, shape index: {}]   ;;  %s4662_s4 = inlined_call_operand.vmem [shape: bf16[12,192], index: 4, kind: input, shape index: {}]   ;;  %s4663_s5 = inlined_call_operand.vmem [shape: bf16[192,64], index: 5, kind: input, shape index: {}]   ;;  %s4664_s6 = inlined_call_operand.vmem [shape: f32[1,64], index: 6, kind: input, shape index: {}]   ;;  %s4665_s7 = inlined_call_operand.vmem [shape: bf16[64,128], index: 7, kind: input, shape index: {}]   ;;  %s4666_s8 = inlined_call_operand.vmem [shape: f32[1,128], index: 8, kind: input, shape index: {}]   ;;  %s4667_s9 = inlined_call_operand.hbm [shape: f32[16,128], index: 9, kind: output, shape index: {}]  }
   0x1   :  { %15 = vsyncpa [#allocation7], 0  ;;  %s3578_s30 = smov [#allocation5]   ;;  %s3530_s13 = scalar_lea.hbm %s4659_s1, 5120 }
   0x2   :  { %s23_s10 = sshll.u32 %s3578_s30, 4  ;;  %p3531_p0 = scmp.ne.s32.totalorder %s4659_s1, %s3530_s13  ;;  %s24_s10 = int_to_ptr.vmem [resolvable:$true] %s23_s10 }
   0x3   :  { %p3534_p1 = scmp.lt.u32.totalorder %s3530_s13, %s4659_s1 }
   0x5   :  { %p3536_p2 = pnand %p3534_p1, %p3531_p0 }
   0x7   :  { %3539 = shalt.err (!%p3536_p2)
}
   0x8   :  { %s3540_s18 = scalar_lea.vmem %s24_s10, 5120  ;;  %p3545_p4 = scmp.lt.s32.totalorder %s24_s10, %s24_s10 }
   0x9   :  { %p3541_p3 = scmp.ne.s32.totalorder %s24_s10, %s3540_s18  ;;  %p3546_p5 = scmp.lt.s32.totalorder %s3540_s18, %s3540_s18 }
   0xb   :  { %p3547_p6 = por %p3546_p5, %p3545_p4 }
   0xd   :  { %p3548_p7 = pnand %p3547_p6, %p3541_p3 }
   0xf   :  { %3551 = shalt.err (!%p3548_p7)
}
  0x10   :  { %s3579_s19 = smov 128   ;;  %s3580_s20 = smov 8  }
  0x11   :  { %29 = dma.hbm_to_vmem [thread:$0]  %s4659_s1, 5120, %s24_s10, [#allocation6], %s3579_s19, %s3579_s19, %s3580_s20  }
  0x12   :  { %3574 = dma.done.wait [#allocation6], 5120  }
  0x13   :  { %3575 = vsyncadd [#allocation6], 4294962176  ;;  %v3581_v0 = vmov 0   ;;  %v3405_v1 = vld [vmem:[#allocation5 + $0x4] ss:$8 sps:$4 sm:$0xff]   ;;  %vm202_vm0 = vcmask 523264  }
  0x14   :  { %277 = vmatprep.mubr.bf16.mxu0 %v3581_v0  ;;  %397 = vmatprep.mubr.bf16.mxu1 %v3581_v0  ;;  %v3407_v2 = vld [vmem:[#allocation5] ss:$8 sps:$4 sm:$0xff]   ;;  %v3408_v3 = vld [vmem:[#allocation5 + $0x14] ss:$8 sps:$4 sm:$0xff]   ;;  %v3410_v4 = vld [vmem:[#allocation5 + $0x10] ss:$8 sps:$4 sm:$0xff]  }
  0x15   :  { %245 = vmatprep.subr.bf16.mxu0 %v3405_v1  ;;  %3390 = vmatprep.subr.bf16.mxu1 %v3405_v1  ;;  %v3411_v5 = vld [vmem:[#allocation5 + $0x24] ss:$8 sps:$4 sm:$0xff]   ;;  %v3413_v6 = vld [vmem:[#allocation5 + $0x20] ss:$8 sps:$4 sm:$0xff]   ;;  %v3414_v7 = vld [vmem:[#allocation5 + $0x34] ss:$8 sps:$4 sm:$0xff]  }
  0x16   :  { %246 = vmatpush1.bf16.msra.mxu0 %v3407_v2  ;;  %3394 = vmatpush1.bf16.msra.mxu1 %v3407_v2  ;;  %v3416_v8 = vld [vmem:[#allocation5 + $0x30] ss:$8 sps:$4 sm:$0xff]   ;;  %v3421_v9 = vld [vmem:[#allocation5 + $0x44] ss:$8 sps:$4 sm:$0xff]   ;;  %v3419_v13 = vld [vmem:[#allocation5 + $0x40] ss:$8 sps:$4 sm:$0xff]  }
  0x17   :  { %247 = vmatprep.subr.bf16.mxu0 %v3408_v3  ;;  %3391 = vmatprep.subr.bf16.mxu1 %v3408_v3  ;;  %v3424_v10 = vld [vmem:[#allocation5 + $0x84] ss:$8 sps:$4 sm:$0xff]   ;;  %v3422_v14 = vld [vmem:[#allocation5 + $0x80] ss:$8 sps:$4 sm:$0xff]   ;;  %v3427_v15 = vld [vmem:[#allocation5 + $0x54] ss:$8 sps:$4 sm:$0xff]  }
  0x18   :  { %v3417_v11 = vld [vmem:[%s4658_s0] sm:$0xff]   ;;  %v3425_v16 = vld [vmem:[#allocation5 + $0x50] ss:$8 sps:$4 sm:$0xff]   ;;  %v3440_v18 = vld [vmem:[#allocation5 + $0x94] ss:$8 sps:$4 sm:$0xff]   ;;  %vm2872_vm11 = vcmask 1045504  }
  0x19   :  { %v3658_v12 = vld [vmem:[%s4658_s0 + $0x60] sm:$0xff]   ;;  %v3438_v17 = vld [vmem:[#allocation5 + $0x90] ss:$8 sps:$4 sm:$0xff]   ;;  %v3428_v20 = vld [vmem:[%s4658_s0 + $0x8] sm:$0xff]  }
  0x1a   :  { %248 = vmatpush1.bf16.msra.mxu0 %v3410_v4  ;;  %3395 = vmatpush1.bf16.msra.mxu1 %v3410_v4  ;;  %v3432_v19 = vld [vmem:[#allocation5 + $0x64] ss:$8 sps:$4 sm:$0xff]   ;;  %v3430_v22 = vld [vmem:[#allocation5 + $0x60] ss:$8 sps:$4 sm:$0xff]   ;;  %v3435_v24 = vld [vmem:[#allocation5 + $0x74] ss:$8 sps:$4 sm:$0xff]  }
  0x1b   :  { %249 = vmatprep.subr.bf16.mxu0 %v3411_v5  ;;  %3392 = vmatprep.subr.bf16.mxu1 %v3411_v5  ;;  %v3671_v21 = vld [vmem:[%s4658_s0 + $0x68] sm:$0xff]   ;;  %v3433_v26 = vld [vmem:[#allocation5 + $0x70] ss:$8 sps:$4 sm:$0xff]   ;;  %v3452_v27 = vld [vmem:[#allocation5 + $0xb4] ss:$8 sps:$4 sm:$0xff]  }
  0x1c   :  { %v3446_v23 = vld [vmem:[#allocation5 + $0xa4] ss:$8 sps:$4 sm:$0xff]   ;;  %v3444_v25 = vld [vmem:[#allocation5 + $0xa0] ss:$8 sps:$4 sm:$0xff]   ;;  %v3681_v28 = vld [vmem:[%s4658_s0 + $0x10] sm:$0xff]  }
  0x1d   :  { %v3450_v29 = vld [vmem:[#allocation5 + $0xb0] ss:$8 sps:$4 sm:$0xff]   ;;  %v3456_v30 = vld [vmem:[#allocation5 + $0xc4] ss:$8 sps:$4 sm:$0xff]   ;;  %v3454_v31 = vld [vmem:[#allocation5 + $0xc0] ss:$8 sps:$4 sm:$0xff]  }
  0x1e   :  { %250 = vmatpush1.bf16.msra.mxu0 %v3413_v6  ;;  %3396 = vmatpush1.bf16.msra.mxu1 %v3413_v6  ;;  %v3460_v32 = vld [vmem:[#allocation5 + $0x104] ss:$8 sps:$4 sm:$0xff]   ;;  %v3463_v33 = vld [vmem:[#allocation5 + $0xd4] ss:$8 sps:$4 sm:$0xff]   ;;  %v3461_v34 = vld [vmem:[#allocation5 + $0xd0] ss:$8 sps:$4 sm:$0xff]  }
  0x1f   :  { %251 = vmatprep.subr.bf16.mxu0 %v3414_v7  ;;  %3393 = vmatprep.subr.bf16.mxu1 %v3414_v7  ;;  %v3467_v35 = vld [vmem:[#allocation5 + $0xe4] ss:$8 sps:$4 sm:$0xff]   ;;  %v3691_v36 = vld [vmem:[%s4658_s0 + $0x18] sm:$0xff]   ;;  %v3465_v37 = vld [vmem:[#allocation5 + $0xe0] ss:$8 sps:$4 sm:$0xff]  }
  0x20   :  { %v3470_v38 = vld [vmem:[#allocation5 + $0xf4] ss:$8 sps:$4 sm:$0xff]   ;;  %v3468_v39 = vld [vmem:[#allocation5 + $0xf0] ss:$8 sps:$4 sm:$0xff]   ;;  %v3702_v40 = vld [vmem:[%s4658_s0 + $0x20] sm:$0xff]  }
  0x21   :  { %v3714_v41 = vld [vmem:[%s4658_s0 + $0x28] sm:$0xff]   ;;  %v3725_v42 = vld [vmem:[%s4658_s0 + $0x30] sm:$0xff]   ;;  %v3736_v43 = vld [vmem:[%s4658_s0 + $0x38] sm:$0xff]  }
  0x22   :  { %252 = vmatpush1.bf16.msra.mxu0 %v3416_v8  ;;  %3397 = vmatpush1.bf16.msra.mxu1 %v3416_v8  ;;  %v3747_v44 = vld [vmem:[%s4658_s0 + $0x40] sm:$0xff]   ;;  %v3758_v45 = vld [vmem:[%s4658_s0 + $0x48] sm:$0xff]   ;;  %v3769_v46 = vld [vmem:[%s4658_s0 + $0x50] sm:$0xff]  }
  0x23   :  { %587 = vmatprep.subr.bf16.mxu1 %v3421_v9  ;;  %985 = vmatprep.subr.bf16.mxu0 %v3424_v10  ;;  %v3780_v47 = vld [vmem:[%s4658_s0 + $0x58] sm:$0xff]   ;;  %v3458_v48 = vld [vmem:[#allocation5 + $0x100] ss:$8 sps:$4 sm:$0xff]   ;;  %v3476_v51 = vld [vmem:[#allocation5 + $0x124] ss:$8 sps:$4 sm:$0xff]  }
  0x24   :  { %v3473_v49 = vld [vmem:[#allocation5 + $0x114] ss:$8 sps:$4 sm:$0xff]   ;;  %v3471_v50 = vld [vmem:[#allocation5 + $0x110] ss:$8 sps:$4 sm:$0xff]   ;;  %v3474_v52 = vld [vmem:[#allocation5 + $0x120] ss:$8 sps:$4 sm:$0xff]  }
  0x25   :  { %3230 = vmatmul.mubr.msk.bf16.vlgmr.msra.gmra.mrb[0].mxu0 %vm202_vm0, %v3417_v11  ;;  %3242 = vmatmul.mubr.msk.bf16.vlgmr.msra.gmra.mrb[0].mxu1 %vm202_vm0, %v3658_v12  ;;  %v3479_v53 = vld [vmem:[#allocation5 + $0x134] ss:$8 sps:$4 sm:$0xff]   ;;  %v3477_v54 = vld [vmem:[#allocation5 + $0x130] ss:$8 sps:$4 sm:$0xff]  }
  0x26   :  { %588 = vmatpush1.bf16.msra.mxu1 %v3419_v13  ;;  %986 = vmatpush1.bf16.msra.mxu0 %v3422_v14  ;;  %v3809_v55 = vld [vmem:[%s4658_s0 + $0x70] sm:$0xff]   ;;  %v3874_v56 = vld [vmem:[%s4658_s0 + $0x78] sm:$0xff]  }
  0x27   :  { %589 = vmatprep.subr.bf16.mxu1 %v3427_v15  ;;  %287 = vmatprep.mubr.bf16.mxu0 %v3581_v0 }
  0x28   :  { %407 = vmatprep.mubr.bf16.mxu1 %v3581_v0  ;;  %987 = vmatprep.subr.bf16.mxu0 %v3440_v18 }
  0x2a   :  { %590 = vmatpush1.bf16.msra.mxu1 %v3425_v16  ;;  %988 = vmatpush1.bf16.msra.mxu0 %v3438_v17  ;;  %v3921_v17 = vld [vmem:[%s4658_s0 + $0x80] sm:$0xff]  }
  0x2b   :  { %591 = vmatprep.subr.bf16.mxu1 %v3432_v19  ;;  %989 = vmatprep.subr.bf16.mxu0 %v3446_v23 }
  0x2d   :  { %3231 = vmatmul.mubr.msk.bf16.gmra.mrb[4].mxu0 %vm202_vm0, %v3428_v20  ;;  %3243 = vmatmul.mubr.msk.bf16.gmra.mrb[4].mxu1 %vm202_vm0, %v3671_v21 }
  0x2e   :  { %592 = vmatpush1.bf16.msra.mxu1 %v3430_v22  ;;  %297 = vmatprep.mubr.bf16.mxu0 %v3581_v0 }
  0x2f   :  { %593 = vmatprep.subr.bf16.mxu1 %v3435_v24  ;;  %619 = vmatprep.mubr.bf16.mxu1 %v3581_v0 }
  0x30   :  { %990 = vmatpush1.bf16.msra.mxu0 %v3444_v25 }
  0x31   :  { %991 = vmatprep.subr.bf16.mxu0 %v3452_v27 }
  0x32   :  { %594 = vmatpush1.bf16.msra.mxu1 %v3433_v26 }
  0x33   :  { %1383 = vmatprep.subr.bf16.mxu1 %v3456_v30 }
  0x34   :  { %992 = vmatpush1.bf16.msra.mxu0 %v3450_v29 }
  0x35   :  { %3232 = vmatmul.mubr.msk.bf16.gmra.mrb[8].mxu0 %vm202_vm0, %v3681_v28  ;;  %3253 = vmatmul.mubr.msk.bf16.vlgmr.msra.gmra.mrb[8].mxu1 %vm202_vm0, %v3428_v20 }
  0x36   :  { %307 = vmatprep.mubr.bf16.mxu0 %v3581_v0  ;;  %629 = vmatprep.mubr.bf16.mxu1 %v3581_v0 }
  0x37   :  { %1384 = vmatpush1.bf16.msra.mxu1 %v3454_v31  ;;  %1781 = vmatprep.subr.bf16.mxu0 %v3460_v32 }
  0x38   :  { %1385 = vmatprep.subr.bf16.mxu1 %v3463_v33 }
  0x3b   :  { %1386 = vmatpush1.bf16.msra.mxu1 %v3461_v34 }
  0x3c   :  { %1387 = vmatprep.subr.bf16.mxu1 %v3467_v35 }
  0x3d   :  { %3233 = vmatmul.mubr.msk.bf16.gmra.mrb[12].mxu0 %vm202_vm0, %v3691_v36  ;;  %3254 = vmatmul.mubr.msk.bf16.gmra.mrb[12].mxu1 %vm202_vm0, %v3681_v28 }
  0x3e   :  { %317 = vmatprep.mubr.bf16.mxu0 %v3581_v0  ;;  %639 = vmatprep.mubr.bf16.mxu1 %v3581_v0 }
  0x3f   :  { %1388 = vmatpush1.bf16.msra.mxu1 %v3465_v37 }
  0x40   :  { %1389 = vmatprep.subr.bf16.mxu1 %v3470_v38 }
  0x43   :  { %1390 = vmatpush1.bf16.msra.mxu1 %v3468_v39 }
  0x44   :  { %2814 = vmatprep.subr.bf16.mxu1 %v3581_v0 }
  0x45   :  { %3234 = vmatmul.mubr.msk.bf16.gmra.mrb[16].mxu0 %vm202_vm0, %v3702_v40  ;;  %3255 = vmatmul.mubr.msk.bf16.gmra.mrb[16].mxu1 %vm202_vm0, %v3691_v36 }
  0x46   :  { %327 = vmatprep.mubr.bf16.mxu0 %v3581_v0  ;;  %649 = vmatprep.mubr.bf16.mxu1 %v3581_v0 }
  0x4d   :  { %3235 = vmatmul.mubr.msk.bf16.gmra.mrb[20].mxu0 %vm202_vm0, %v3714_v41  ;;  %3256 = vmatmul.mubr.msk.bf16.gmra.mrb[20].mxu1 %vm202_vm0, %v3702_v40 }
  0x4e   :  { %337 = vmatprep.mubr.bf16.mxu0 %v3581_v0  ;;  %659 = vmatprep.mubr.bf16.mxu1 %v3581_v0 }
  0x55   :  { %3236 = vmatmul.mubr.msk.bf16.gmra.mrb[24].mxu0 %vm202_vm0, %v3725_v42  ;;  %3257 = vmatmul.mubr.msk.bf16.gmra.mrb[24].mxu1 %vm202_vm0, %v3714_v41 }
  0x56   :  { %347 = vmatprep.mubr.bf16.mxu0 %v3581_v0  ;;  %669 = vmatprep.mubr.bf16.mxu1 %v3581_v0 }
  0x5d   :  { %3237 = vmatmul.mubr.msk.bf16.gmra.mrb[28].mxu0 %vm202_vm0, %v3736_v43  ;;  %3258 = vmatmul.mubr.msk.bf16.gmra.mrb[28].mxu1 %vm202_vm0, %v3725_v42 }
  0x5e   :  { %357 = vmatprep.mubr.bf16.mxu0 %v3581_v0  ;;  %679 = vmatprep.mubr.bf16.mxu1 %v3581_v0 }
  0x65   :  { %3238 = vmatmul.mubr.msk.bf16.gmra.mrb[32].mxu0 %vm202_vm0, %v3747_v44  ;;  %3259 = vmatmul.mubr.msk.bf16.gmra.mrb[32].mxu1 %vm202_vm0, %v3736_v43 }
  0x66   :  { %367 = vmatprep.mubr.bf16.mxu0 %v3581_v0  ;;  %689 = vmatprep.mubr.bf16.mxu1 %v3581_v0 }
  0x6d   :  { %3239 = vmatmul.mubr.msk.bf16.gmra.mrb[36].mxu0 %vm202_vm0, %v3758_v45  ;;  %3260 = vmatmul.mubr.msk.bf16.gmra.mrb[36].mxu1 %vm202_vm0, %v3747_v44 }
  0x6e   :  { %377 = vmatprep.mubr.bf16.mxu0 %v3581_v0  ;;  %699 = vmatprep.mubr.bf16.mxu1 %v3581_v0 }
  0x75   :  { %3240 = vmatmul.mubr.msk.bf16.gmra.mrb[40].mxu0 %vm202_vm0, %v3769_v46  ;;  %3261 = vmatmul.mubr.msk.bf16.gmra.mrb[40].mxu1 %vm202_vm0, %v3758_v45 }
  0x76   :  { %387 = vmatprep.mubr.bf16.mxu0 %v3581_v0  ;;  %709 = vmatprep.mubr.bf16.mxu1 %v3581_v0 }
  0x7d   :  { %3241 = vmatmul.mubr.msk.bf16.gmra.mrb[44].mxu0 %vm202_vm0, %v3780_v47  ;;  %3262 = vmatmul.mubr.msk.bf16.gmra.mrb[44].mxu1 %vm202_vm0, %v3769_v46 }
  0x7e   :  { %719 = vmatprep.mubr.bf16.mxu1 %v3581_v0  ;;  %1017 = vmatprep.mubr.bf16.mxu0 %v3581_v0 }
  0x85   :  { %3263 = vmatmul.mubr.msk.bf16.gmra.mrb[48].mxu1 %vm202_vm0, %v3780_v47  ;;  %3276 = vmatmul.mubr.msk.bf16.vlgmr.msra.gmra.mrb[48].mxu0 %vm202_vm0, %v3681_v28 }
  0x86   :  { %1782 = vmatpush1.bf16.msra.mxu0 %v3458_v48  ;;  %729 = vmatprep.mubr.bf16.mxu1 %v3581_v0 }
  0x87   :  { %1027 = vmatprep.mubr.bf16.mxu0 %v3581_v0  ;;  %1783 = vmatprep.subr.bf16.mxu0 %v3473_v49 }
  0x8a   :  { %1784 = vmatpush1.bf16.msra.mxu0 %v3471_v50 }
  0x8b   :  { %1785 = vmatprep.subr.bf16.mxu0 %v3476_v51 }
  0x8d   :  { %3264 = vmatmul.mubr.msk.bf16.gmra.mrb[52].mxu1 %vm202_vm0, %v3658_v12  ;;  %3277 = vmatmul.mubr.msk.bf16.gmra.mrb[52].mxu0 %vm202_vm0, %v3691_v36 }
  0x8e   :  { %739 = vmatprep.mubr.bf16.mxu1 %v3581_v0  ;;  %1037 = vmatprep.mubr.bf16.mxu0 %v3581_v0 }
  0x8f   :  { %1786 = vmatpush1.bf16.msra.mxu0 %v3474_v52 }
  0x90   :  { %1787 = vmatprep.subr.bf16.mxu0 %v3479_v53 }
  0x93   :  { %1788 = vmatpush1.bf16.msra.mxu0 %v3477_v54 }
  0x95   :  { %3265 = vmatmul.mubr.msk.bf16.gmra.mrb[56].mxu1 %vm202_vm0, %v3671_v21  ;;  %3278 = vmatmul.mubr.msk.bf16.gmra.mrb[56].mxu0 %vm202_vm0, %v3702_v40 }
  0x96   :  { %749 = vmatprep.mubr.bf16.mxu1 %v3581_v0  ;;  %1047 = vmatprep.mubr.bf16.mxu0 %v3581_v0 }
  0x9d   :  { %3266 = vmatmul.mubr.msk.bf16.gmra.mrb[60].mxu1 %vm202_vm0, %v3809_v55  ;;  %3279 = vmatmul.mubr.msk.bf16.gmra.mrb[60].mxu0 %vm202_vm0, %v3714_v41 }
  0x9e   :  { %1057 = vmatprep.mubr.bf16.mxu0 %v3581_v0  ;;  %1415 = vmatprep.mubr.bf16.mxu1 %v3581_v0 }
  0xa5   :  { %3280 = vmatmul.mubr.msk.bf16.gmra.mrb[64].mxu0 %vm202_vm0, %v3725_v42  ;;  %3299 = vmatmul.mubr.msk.bf16.vlgmr.msra.gmra.mrb[64].mxu1 %vm202_vm0, %v3691_v36 }
  0xa6   :  { %1067 = vmatprep.mubr.bf16.mxu0 %v3581_v0  ;;  %1425 = vmatprep.mubr.bf16.mxu1 %v3581_v0 }
  0xad   :  { %3281 = vmatmul.mubr.msk.bf16.gmra.mrb[68].mxu0 %vm202_vm0, %v3736_v43  ;;  %3300 = vmatmul.mubr.msk.bf16.gmra.mrb[68].mxu1 %vm202_vm0, %v3702_v40 }
  0xae   :  { %1077 = vmatprep.mubr.bf16.mxu0 %v3581_v0  ;;  %1435 = vmatprep.mubr.bf16.mxu1 %v3581_v0 }
  0xb5   :  { %3282 = vmatmul.mubr.msk.bf16.gmra.mrb[72].mxu0 %vm202_vm0, %v3747_v44  ;;  %3301 = vmatmul.mubr.msk.bf16.gmra.mrb[72].mxu1 %vm202_vm0, %v3714_v41 }
  0xb6   :  { %1087 = vmatprep.mubr.bf16.mxu0 %v3581_v0  ;;  %1445 = vmatprep.mubr.bf16.mxu1 %v3581_v0 }
  0xbd   :  { %3283 = vmatmul.mubr.msk.bf16.gmra.mrb[76].mxu0 %vm202_vm0, %v3758_v45  ;;  %3302 = vmatmul.mubr.msk.bf16.gmra.mrb[76].mxu1 %vm202_vm0, %v3725_v42 }
  0xbe   :  { %1097 = vmatprep.mubr.bf16.mxu0 %v3581_v0  ;;  %1455 = vmatprep.mubr.bf16.mxu1 %v3581_v0 }
  0xc5   :  { %3284 = vmatmul.mubr.msk.bf16.gmra.mrb[80].mxu0 %vm202_vm0, %v3769_v46  ;;  %3303 = vmatmul.mubr.msk.bf16.gmra.mrb[80].mxu1 %vm202_vm0, %v3736_v43 }
  0xc6   :  { %1107 = vmatprep.mubr.bf16.mxu0 %v3581_v0  ;;  %1465 = vmatprep.mubr.bf16.mxu1 %v3581_v0 }
  0xcd   :  { %3285 = vmatmul.mubr.msk.bf16.gmra.mrb[84].mxu0 %vm202_vm0, %v3780_v47  ;;  %3304 = vmatmul.mubr.msk.bf16.gmra.mrb[84].mxu1 %vm202_vm0, %v3747_v44 }
  0xce   :  { %1117 = vmatprep.mubr.bf16.mxu0 %v3581_v0  ;;  %1475 = vmatprep.mubr.bf16.mxu1 %v3581_v0 }
  0xd5   :  { %3286 = vmatmul.mubr.msk.bf16.gmra.mrb[88].mxu0 %vm202_vm0, %v3658_v12  ;;  %3305 = vmatmul.mubr.msk.bf16.gmra.mrb[88].mxu1 %vm202_vm0, %v3758_v45 }
  0xd6   :  { %1127 = vmatprep.mubr.bf16.mxu0 %v3581_v0  ;;  %1485 = vmatprep.mubr.bf16.mxu1 %v3581_v0 }
  0xdd   :  { %3287 = vmatmul.mubr.msk.bf16.gmra.mrb[92].mxu0 %vm202_vm0, %v3671_v21  ;;  %3306 = vmatmul.mubr.msk.bf16.gmra.mrb[92].mxu1 %vm202_vm0, %v3769_v46 }
  0xde   :  { %1137 = vmatprep.mubr.bf16.mxu0 %v3581_v0  ;;  %1495 = vmatprep.mubr.bf16.mxu1 %v3581_v0 }
  0xe5   :  { %3288 = vmatmul.mubr.msk.bf16.gmra.mrb[96].mxu0 %vm202_vm0, %v3809_v55  ;;  %3307 = vmatmul.mubr.msk.bf16.gmra.mrb[96].mxu1 %vm202_vm0, %v3780_v47 }
  0xe6   :  { %1147 = vmatprep.mubr.bf16.mxu0 %v3581_v0  ;;  %1505 = vmatprep.mubr.bf16.mxu1 %v3581_v0 }
  0xed   :  { %3289 = vmatmul.mubr.msk.bf16.gmra.mrb[100].mxu0 %vm202_vm0, %v3874_v56  ;;  %3308 = vmatmul.mubr.msk.bf16.gmra.mrb[100].mxu1 %vm202_vm0, %v3658_v12 }
  0xee   :  { %1515 = vmatprep.mubr.bf16.mxu1 %v3581_v0  ;;  %1813 = vmatprep.mubr.bf16.mxu0 %v3581_v0 }
  0xf5   :  { %3309 = vmatmul.mubr.msk.bf16.gmra.mrb[104].mxu1 %vm202_vm0, %v3671_v21  ;;  %3322 = vmatmul.mubr.msk.bf16.vlgmr.msra.gmra.mrb[104].mxu0 %vm202_vm0, %v3702_v40 }
  0xf6   :  { %1525 = vmatprep.mubr.bf16.mxu1 %v3581_v0  ;;  %1823 = vmatprep.mubr.bf16.mxu0 %v3581_v0 }
  0xf8   :  { %v279_v57 = vpop.f32.mrb[0].mxu0  ;;  %v3888_v58 = vpop.f32.mrb[0].mxu1 }
  0xf9   :  { %v281_v59 = vpop.f32.mrb[1].mxu0  ;;  %v401_v60 = vpop.f32.mrb[1].mxu1 }
  0xfa   :  { %419 = vst.msk [vmem:[#allocation2 + $0x8] sm:$0xff] %vm202_vm0, %v281_v59  ;;  %v283_v61 = vpop.f32.mrb[2].mxu0  ;;  %467 = vst.msk [vmem:[#allocation2 + $0x188] sm:$0xff] %vm202_vm0, %v401_v60  ;;  %v3892_v62 = vpop.f32.mrb[2].mxu1 }
  0xfb   :  { %v285_v63 = vpop.f32.mrb[3].mxu0  ;;  %v405_v1 = vpop.f32.mrb[3].mxu1 }
  0xfc   :  { %421 = vst.msk [vmem:[#allocation2 + $0x18] sm:$0xff] %vm202_vm0, %v285_v63  ;;  %469 = vst.msk [vmem:[#allocation2 + $0x198] sm:$0xff] %vm202_vm0, %v405_v1 }
  0xfd   :  { %3310 = vmatmul.mubr.msk.bf16.gmra.mrb[108].mxu1 %vm202_vm0, %v3809_v55  ;;  %3323 = vmatmul.mubr.msk.bf16.gmra.mrb[108].mxu0 %vm202_vm0, %v3714_v41 }
  0xfe   :  { %1535 = vmatprep.mubr.bf16.mxu1 %v3581_v0  ;;  %1833 = vmatprep.mubr.bf16.mxu0 %v3581_v0 }
 0x100   :  { %v289_v2 = vpop.f32.mrb[4].mxu0  ;;  %v3902_v3 = vpop.f32.mrb[4].mxu1 }
 0x101   :  { %v291_v4 = vpop.f32.mrb[5].mxu0  ;;  %v411_v5 = vpop.f32.mrb[5].mxu1  ;;  %v475_v15 = vld [vmem:[#allocation2 + $0x8] sm:$0xff] }
 0x102   :  { %423 = vst.msk [vmem:[#allocation2 + $0x28] sm:$0xff] %vm202_vm0, %v291_v4  ;;  %v293_v6 = vpop.f32.mrb[6].mxu0  ;;  %471 = vst.msk [vmem:[#allocation2 + $0x1a8] sm:$0xff] %vm202_vm0, %v411_v5  ;;  %v3906_v7 = vpop.f32.mrb[6].mxu1 }
 0x103   :  { %v295_v8 = vpop.f32.mrb[7].mxu0  ;;  %v415_v9 = vpop.f32.mrb[7].mxu1  ;;  %v477_v24 = vld [vmem:[#allocation2 + $0x18] sm:$0xff] }
 0x104   :  { %425 = vst.msk [vmem:[#allocation2 + $0x38] sm:$0xff] %vm202_vm0, %v295_v8  ;;  %473 = vst.msk [vmem:[#allocation2 + $0x1b8] sm:$0xff] %vm202_vm0, %v415_v9 }
 0x105   :  { %3311 = vmatmul.mubr.msk.bf16.gmra.mrb[112].mxu1 %vm202_vm0, %v3874_v56  ;;  %3324 = vmatmul.mubr.msk.bf16.gmra.mrb[112].mxu0 %vm202_vm0, %v3725_v42 }
 0x106   :  { %1545 = vmatprep.mubr.bf16.mxu1 %v3581_v0  ;;  %1843 = vmatprep.mubr.bf16.mxu0 %v3581_v0 }
 0x108   :  { %v299_v10 = vpop.f32.mrb[8].mxu0  ;;  %v621_v11 = vpop.f32.mrb[8].mxu1 }
 0x109   :  { %v3916_v13 = vadd.f32 %v621_v11, %v279_v57  ;;  %v301_v14 = vpop.f32.mrb[9].mxu0  ;;  %v623_v16 = vpop.f32.mrb[9].mxu1  ;;  %v479_v31 = vld [vmem:[#allocation2 + $0x28] sm:$0xff] }
 0x10a   :  { %427 = vst.msk [vmem:[#allocation2 + $0x48] sm:$0xff] %vm202_vm0, %v301_v14  ;;  %v761_v18 = vadd.f32 %v623_v16, %v475_v15  ;;  %v303_v19 = vpop.f32.mrb[10].mxu0  ;;  %v625_v20 = vpop.f32.mrb[10].mxu1 }
 0x10b   :  { %v3924_v22 = vadd.f32 %v625_v20, %v283_v61  ;;  %v305_v23 = vpop.f32.mrb[11].mxu0  ;;  %v627_v25 = vpop.f32.mrb[11].mxu1  ;;  %v481_v38 = vld [vmem:[#allocation2 + $0x38] sm:$0xff] }
 0x10c   :  { %817 = vst.msk [vmem:[#allocation2 + $0x8] sm:$0xff] %vm202_vm0, %v761_v18  ;;  %429 = vst.msk [vmem:[#allocation2 + $0x58] sm:$0xff] %vm202_vm0, %v305_v23  ;;  %v763_v26 = vadd.f32 %v627_v25, %v477_v24 }
 0x10d   :  { %3312 = vmatmul.mubr.msk.bf16.gmra.mrb[116].mxu1 %vm202_vm0, %v3921_v17  ;;  %3325 = vmatmul.mubr.msk.bf16.gmra.mrb[116].mxu0 %vm202_vm0, %v3736_v43 }
 0x10e   :  { %819 = vst.msk [vmem:[#allocation2 + $0x18] sm:$0xff] %vm202_vm0, %v763_v26  ;;  %1853 = vmatprep.mubr.bf16.mxu0 %v3581_v0 }
 0x110   :  { %v309_v27 = vpop.f32.mrb[12].mxu0  ;;  %v631_v28 = vpop.f32.mrb[12].mxu1 }
 0x111   :  { %v3934_v29 = vadd.f32 %v631_v28, %v289_v2  ;;  %v311_v30 = vpop.f32.mrb[13].mxu0  ;;  %v633_v32 = vpop.f32.mrb[13].mxu1  ;;  %v483_v49 = vld [vmem:[#allocation2 + $0x48] sm:$0xff] }
 0x112   :  { %431 = vst.msk [vmem:[#allocation2 + $0x68] sm:$0xff] %vm202_vm0, %v311_v30  ;;  %v765_v33 = vadd.f32 %v633_v32, %v479_v31  ;;  %v313_v34 = vpop.f32.mrb[14].mxu0  ;;  %v635_v35 = vpop.f32.mrb[14].mxu1 }
 0x113   :  { %v3937_v36 = vadd.f32 %v635_v35, %v293_v6  ;;  %v315_v37 = vpop.f32.mrb[15].mxu0  ;;  %v637_v39 = vpop.f32.mrb[15].mxu1 }
 0x114   :  { %821 = vst.msk [vmem:[#allocation2 + $0x28] sm:$0xff] %vm202_vm0, %v765_v33  ;;  %433 = vst.msk [vmem:[#allocation2 + $0x78] sm:$0xff] %vm202_vm0, %v315_v37  ;;  %v767_v40 = vadd.f32 %v637_v39, %v481_v38 }
 0x115   :  { %3326 = vmatmul.mubr.msk.bf16.gmra.mrb[120].mxu0 %vm202_vm0, %v3747_v44  ;;  %v485_v44 = vld [vmem:[#allocation2 + $0x58] sm:$0xff] }
 0x116   :  { %823 = vst.msk [vmem:[#allocation2 + $0x38] sm:$0xff] %vm202_vm0, %v767_v40  ;;  %1863 = vmatprep.mubr.bf16.mxu0 %v3581_v0 }
 0x118   :  { %v319_v41 = vpop.f32.mrb[16].mxu0  ;;  %v641_v42 = vpop.f32.mrb[16].mxu1 }
 0x119   :  { %v3945_v43 = vadd.f32 %v641_v42, %v299_v10  ;;  %v321_v48 = vpop.f32.mrb[17].mxu0  ;;  %v643_v50 = vpop.f32.mrb[17].mxu1  ;;  %v487_v4 = vld [vmem:[#allocation2 + $0x68] sm:$0xff] }
 0x11a   :  { %435 = vst.msk [vmem:[#allocation2 + $0x88] sm:$0xff] %vm202_vm0, %v321_v48  ;;  %v769_v51 = vadd.f32 %v643_v50, %v483_v49  ;;  %v323_v52 = vpop.f32.mrb[18].mxu0  ;;  %v645_v53 = vpop.f32.mrb[18].mxu1 }
 0x11b   :  { %v3948_v54 = vadd.f32 %v645_v53, %v303_v19  ;;  %v325_v57 = vpop.f32.mrb[19].mxu0  ;;  %v647_v59 = vpop.f32.mrb[19].mxu1 }
 0x11c   :  { %825 = vst.msk [vmem:[#allocation2 + $0x48] sm:$0xff] %vm202_vm0, %v769_v51  ;;  %437 = vst.msk [vmem:[#allocation2 + $0x98] sm:$0xff] %vm202_vm0, %v325_v57  ;;  %v771_v60 = vadd.f32 %v647_v59, %v485_v44 }
 0x11d   :  { %3327 = vmatmul.mubr.msk.bf16.gmra.mrb[124].mxu0 %vm202_vm0, %v3758_v45  ;;  %v489_v45 = vld [vmem:[#allocation2 + $0x78] sm:$0xff] }
 0x11e   :  { %827 = vst.msk [vmem:[#allocation2 + $0x58] sm:$0xff] %vm202_vm0, %v771_v60  ;;  %1873 = vmatprep.mubr.bf16.mxu0 %v3581_v0 }
 0x120   :  { %v329_v61 = vpop.f32.mrb[20].mxu0  ;;  %v651_v63 = vpop.f32.mrb[20].mxu1 }
 0x121   :  { %v3956_v1 = vadd.f32 %v651_v63, %v309_v27  ;;  %v331_v2 = vpop.f32.mrb[21].mxu0  ;;  %v653_v5 = vpop.f32.mrb[21].mxu1  ;;  %v491_v23 = vld [vmem:[#allocation2 + $0x88] sm:$0xff] }
 0x122   :  { %439 = vst.msk [vmem:[#allocation2 + $0xa8] sm:$0xff] %vm202_vm0, %v331_v2  ;;  %v773_v6 = vadd.f32 %v653_v5, %v487_v4  ;;  %v333_v8 = vpop.f32.mrb[22].mxu0  ;;  %v655_v9 = vpop.f32.mrb[22].mxu1 }
 0x123   :  { %v3959_v10 = vadd.f32 %v655_v9, %v313_v34  ;;  %v335_v11 = vpop.f32.mrb[23].mxu0  ;;  %v657_v14 = vpop.f32.mrb[23].mxu1 }
 0x124   :  { %829 = vst.msk [vmem:[#allocation2 + $0x68] sm:$0xff] %vm202_vm0, %v773_v6  ;;  %441 = vst.msk [vmem:[#allocation2 + $0xb8] sm:$0xff] %vm202_vm0, %v335_v11  ;;  %v775_v15 = vadd.f32 %v657_v14, %v489_v45 }
 0x125   :  { %3328 = vmatmul.mubr.msk.bf16.gmra.mrb[128].mxu0 %vm202_vm0, %v3769_v46  ;;  %v493_v46 = vld [vmem:[#allocation2 + $0x98] sm:$0xff] }
 0x126   :  { %831 = vst.msk [vmem:[#allocation2 + $0x78] sm:$0xff] %vm202_vm0, %v775_v15  ;;  %1883 = vmatprep.mubr.bf16.mxu0 %v3581_v0 }
 0x128   :  { %v339_v16 = vpop.f32.mrb[24].mxu0  ;;  %v661_v18 = vpop.f32.mrb[24].mxu1 }
 0x129   :  { %v3967_v19 = vadd.f32 %v661_v18, %v319_v41  ;;  %v341_v20 = vpop.f32.mrb[25].mxu0  ;;  %v663_v24 = vpop.f32.mrb[25].mxu1  ;;  %v495_v38 = vld [vmem:[#allocation2 + $0xa8] sm:$0xff] }
 0x12a   :  { %443 = vst.msk [vmem:[#allocation2 + $0xc8] sm:$0xff] %vm202_vm0, %v341_v20  ;;  %v777_v25 = vadd.f32 %v663_v24, %v491_v23  ;;  %v343_v26 = vpop.f32.mrb[26].mxu0  ;;  %v665_v27 = vpop.f32.mrb[26].mxu1 }
 0x12b   :  { %v3970_v28 = vadd.f32 %v665_v27, %v323_v52  ;;  %v345_v30 = vpop.f32.mrb[27].mxu0  ;;  %v667_v31 = vpop.f32.mrb[27].mxu1  ;;  %v2067_v27 = vlaneseq }
 0x12c   :  { %833 = vst.msk [vmem:[#allocation2 + $0x88] sm:$0xff] %vm202_vm0, %v777_v25  ;;  %445 = vst.msk [vmem:[#allocation2 + $0xd8] sm:$0xff] %vm202_vm0, %v345_v30  ;;  %v779_v32 = vadd.f32 %v667_v31, %v493_v46 }
 0x12d   :  { %3329 = vmatmul.mubr.msk.bf16.gmra.mrb[132].mxu0 %vm202_vm0, %v3780_v47  ;;  %v497_v47 = vld [vmem:[#allocation2 + $0xb8] sm:$0xff]  ;;  %v4010_v46 = vshrl.u32 %v2067_v27, 7 }
 0x12e   :  { %835 = vst.msk [vmem:[#allocation2 + $0x98] sm:$0xff] %vm202_vm0, %v779_v32  ;;  %1893 = vmatprep.mubr.bf16.mxu0 %v3581_v0 }
 0x12f   :  { %v2077_v31 = vsub.s32 0, %v4010_v46 }
 0x130   :  { %v349_v33 = vpop.f32.mrb[28].mxu0  ;;  %v671_v34 = vpop.f32.mrb[28].mxu1 }
 0x131   :  { %v3978_v35 = vadd.f32 %v671_v34, %v329_v61  ;;  %v351_v37 = vpop.f32.mrb[29].mxu0  ;;  %v673_v39 = vpop.f32.mrb[29].mxu1  ;;  %v499_v59 = vld [vmem:[#allocation2 + $0xc8] sm:$0xff]  ;;  %v4018_v34 = vld [vmem:[%s4660_s2] sm:$0x3] }
 0x132   :  { %447 = vst.msk [vmem:[#allocation2 + $0xe8] sm:$0xff] %vm202_vm0, %v351_v37  ;;  %v781_v40 = vadd.f32 %v673_v39, %v495_v38  ;;  %v353_v41 = vpop.f32.mrb[30].mxu0  ;;  %v675_v42 = vpop.f32.mrb[30].mxu1 }
 0x133   :  { %v3981_v48 = vadd.f32 %v675_v42, %v333_v8  ;;  %v355_v49 = vpop.f32.mrb[31].mxu0  ;;  %v677_v50 = vpop.f32.mrb[31].mxu1 }
 0x134   :  { %837 = vst.msk [vmem:[#allocation2 + $0xa8] sm:$0xff] %vm202_vm0, %v781_v40  ;;  %449 = vst.msk [vmem:[#allocation2 + $0xf8] sm:$0xff] %vm202_vm0, %v355_v49  ;;  %v783_v51 = vadd.f32 %v677_v50, %v497_v47  ;;  %v4023_v40 = vrot.slane %v4018_v34, %v2077_v31 }
 0x135   :  { %3330 = vmatmul.mubr.msk.bf16.gmra.mrb[136].mxu0 %vm202_vm0, %v3658_v12  ;;  %v501_v12 = vld [vmem:[#allocation2 + $0xd8] sm:$0xff] }
 0x136   :  { %839 = vst.msk [vmem:[#allocation2 + $0xb8] sm:$0xff] %vm202_vm0, %v783_v51  ;;  %1903 = vmatprep.mubr.bf16.mxu0 %v3581_v0 }
 0x138   :  { %v359_v52 = vpop.f32.mrb[32].mxu0  ;;  %v681_v53 = vpop.f32.mrb[32].mxu1 }
 0x139   :  { %v3989_v57 = vadd.f32 %v681_v53, %v339_v16  ;;  %v361_v44 = vpop.f32.mrb[33].mxu0  ;;  %v683_v60 = vpop.f32.mrb[33].mxu1  ;;  %v503_v15 = vld [vmem:[#allocation2 + $0xe8] sm:$0xff] }
 0x13a   :  { %451 = vst.msk [vmem:[#allocation2 + $0x108] sm:$0xff] %vm202_vm0, %v361_v44  ;;  %v785_v61 = vadd.f32 %v683_v60, %v499_v59  ;;  %v363_v63 = vpop.f32.mrb[34].mxu0  ;;  %v685_v2 = vpop.f32.mrb[34].mxu1 }
 0x13b   :  { %v3992_v4 = vadd.f32 %v685_v2, %v343_v26  ;;  %v365_v5 = vpop.f32.mrb[35].mxu0  ;;  %v687_v6 = vpop.f32.mrb[35].mxu1 }
 0x13c   :  { %841 = vst.msk [vmem:[#allocation2 + $0xc8] sm:$0xff] %vm202_vm0, %v785_v61  ;;  %453 = vst.msk [vmem:[#allocation2 + $0x118] sm:$0xff] %vm202_vm0, %v365_v5  ;;  %v787_v8 = vadd.f32 %v687_v6, %v501_v12 }
 0x13d   :  { %3331 = vmatmul.mubr.msk.bf16.gmra.mrb[140].mxu0 %vm202_vm0, %v3671_v21  ;;  %v505_v21 = vld [vmem:[#allocation2 + $0xf8] sm:$0xff] }
 0x13e   :  { %843 = vst.msk [vmem:[#allocation2 + $0xd8] sm:$0xff] %vm202_vm0, %v787_v8  ;;  %1913 = vmatprep.mubr.bf16.mxu0 %v3581_v0 }
 0x140   :  { %v369_v9 = vpop.f32.mrb[36].mxu0  ;;  %v691_v11 = vpop.f32.mrb[36].mxu1 }
 0x141   :  { %v4000_v45 = vadd.f32 %v691_v11, %v349_v33  ;;  %v371_v14 = vpop.f32.mrb[37].mxu0  ;;  %v693_v16 = vpop.f32.mrb[37].mxu1 }
 0x142   :  { %455 = vst.msk [vmem:[#allocation2 + $0x128] sm:$0xff] %vm202_vm0, %v371_v14  ;;  %v789_v18 = vadd.f32 %v693_v16, %v503_v15  ;;  %v373_v20 = vpop.f32.mrb[38].mxu0  ;;  %v695_v23 = vpop.f32.mrb[38].mxu1 }
 0x143   :  { %v4003_v24 = vadd.f32 %v695_v23, %v353_v41  ;;  %v375_v25 = vpop.f32.mrb[39].mxu0  ;;  %v697_v26 = vpop.f32.mrb[39].mxu1  ;;  %v509_v51 = vld [vmem:[#allocation2 + $0x118] sm:$0xff] }
 0x144   :  { %845 = vst.msk [vmem:[#allocation2 + $0xe8] sm:$0xff] %vm202_vm0, %v789_v18  ;;  %457 = vst.msk [vmem:[#allocation2 + $0x138] sm:$0xff] %vm202_vm0, %v375_v25  ;;  %v791_v30 = vadd.f32 %v697_v26, %v505_v21  ;;  %v873_v21 = vld [vmem:[#allocation2 + $0x8] sm:$0xff] }
 0x145   :  { %3332 = vmatmul.mubr.msk.bf16.gmra.mrb[144].mxu0 %vm202_vm0, %v3809_v55  ;;  %v507_v55 = vld [vmem:[#allocation2 + $0x108] sm:$0xff] }
 0x146   :  { %847 = vst.msk [vmem:[#allocation2 + $0xf8] sm:$0xff] %vm202_vm0, %v791_v30  ;;  %1923 = vmatprep.mubr.bf16.mxu0 %v3581_v0  ;;  %v3482_v30 = vld [vmem:[%s4658_s0 + $0x88] sm:$0xff]  }
 0x148   :  { %v379_v32 = vpop.f32.mrb[40].mxu0  ;;  %v701_v33 = vpop.f32.mrb[40].mxu1 }
 0x149   :  { %v4020_v37 = vadd.f32 %v701_v33, %v359_v52  ;;  %v381_v38 = vpop.f32.mrb[41].mxu0  ;;  %v703_v39 = vpop.f32.mrb[41].mxu1 }
 0x14a   :  { %459 = vst.msk [vmem:[#allocation2 + $0x148] sm:$0xff] %vm202_vm0, %v381_v38  ;;  %v793_v41 = vadd.f32 %v703_v39, %v507_v55  ;;  %v383_v42 = vpop.f32.mrb[42].mxu0  ;;  %v705_v49 = vpop.f32.mrb[42].mxu1 }
 0x14b   :  { %v4026_v47 = vadd.f32 %v705_v49, %v363_v63  ;;  %v385_v50 = vpop.f32.mrb[43].mxu0  ;;  %v707_v53 = vpop.f32.mrb[43].mxu1  ;;  %v511_v63 = vld [vmem:[#allocation2 + $0x128] sm:$0xff] }
 0x14c   :  { %849 = vst.msk [vmem:[#allocation2 + $0x108] sm:$0xff] %vm202_vm0, %v793_v41  ;;  %461 = vst.msk [vmem:[#allocation2 + $0x158] sm:$0xff] %vm202_vm0, %v385_v50  ;;  %v795_v52 = vadd.f32 %v707_v53, %v509_v51  ;;  %v875_v41 = vld [vmem:[#allocation2 + $0x18] sm:$0xff] }
 0x14d   :  { %3333 = vmatmul.mubr.msk.bf16.gmra.mrb[148].mxu0 %vm202_vm0, %v3874_v56  ;;  %v513_v56 = vld [vmem:[#allocation2 + $0x138] sm:$0xff] }
 0x14e   :  { %851 = vst.msk [vmem:[#allocation2 + $0x118] sm:$0xff] %vm202_vm0, %v795_v52  ;;  %1933 = vmatprep.mubr.bf16.mxu0 %v3581_v0 }
 0x150   :  { %v389_v44 = vpop.f32.mrb[44].mxu0  ;;  %v711_v59 = vpop.f32.mrb[44].mxu1 }
 0x151   :  { %v4034_v60 = vadd.f32 %v711_v59, %v369_v9  ;;  %v391_v61 = vpop.f32.mrb[45].mxu0  ;;  %v713_v2 = vpop.f32.mrb[45].mxu1  ;;  %v515_v23 = vld [vmem:[#allocation2 + $0x148] sm:$0xff] }
 0x152   :  { %463 = vst.msk [vmem:[#allocation2 + $0x168] sm:$0xff] %vm202_vm0, %v391_v61  ;;  %v797_v5 = vadd.f32 %v713_v2, %v511_v63  ;;  %v393_v12 = vpop.f32.mrb[46].mxu0  ;;  %v715_v6 = vpop.f32.mrb[46].mxu1  ;;  %v877_v63 = vld [vmem:[#allocation2 + $0x28] sm:$0xff] }
 0x153   :  { %v4037_v8 = vadd.f32 %v715_v6, %v373_v20  ;;  %v395_v11 = vpop.f32.mrb[47].mxu0  ;;  %v717_v14 = vpop.f32.mrb[47].mxu1  ;;  %v517_v39 = vld [vmem:[#allocation2 + $0x158] sm:$0xff] }
 0x154   :  { %853 = vst.msk [vmem:[#allocation2 + $0x128] sm:$0xff] %vm202_vm0, %v797_v5  ;;  %465 = vst.msk [vmem:[#allocation2 + $0x178] sm:$0xff] %vm202_vm0, %v395_v11  ;;  %v799_v15 = vadd.f32 %v717_v14, %v513_v56 }
 0x155   :  { %3334 = vmatmul.mubr.msk.bf16.gmra.mrb[152].mxu0 %vm202_vm0, %v3921_v17 }
 0x156   :  { %855 = vst.msk [vmem:[#allocation2 + $0x138] sm:$0xff] %vm202_vm0, %v799_v15  ;;  %1943 = vmatprep.mubr.bf16.mxu0 %v3581_v0 }
 0x158   :  { %v721_v9 = vpop.f32.mrb[48].mxu1  ;;  %v1019_v16 = vpop.f32.mrb[48].mxu0 }
 0x159   :  { %v4045_v18 = vadd.f32 %v721_v9, %v379_v32  ;;  %v4048_v20 = vadd.f32 %v1019_v16, %v3916_v13  ;;  %v723_v25 = vpop.f32.mrb[49].mxu1  ;;  %v1021_v26 = vpop.f32.mrb[49].mxu0  ;;  %v519_v59 = vld [vmem:[#allocation2 + $0x168] sm:$0xff] }
 0x15a   :  { %v801_v17 = vadd.f32 %v723_v25, %v515_v23  ;;  %v1159_v31 = vadd.f32 %v1021_v26, %v873_v21  ;;  %v725_v33 = vpop.f32.mrb[50].mxu1  ;;  %v1023_v38 = vpop.f32.mrb[50].mxu0 }
 0x15b   :  { %v4053_v55 = vadd.f32 %v725_v33, %v383_v42  ;;  %v4056_v32 = vadd.f32 %v1023_v38, %v3924_v22  ;;  %v727_v13 = vpop.f32.mrb[51].mxu1  ;;  %v1025_v49 = vpop.f32.mrb[51].mxu0  ;;  %v521_v9 = vld [vmem:[#allocation2 + $0x178] sm:$0xff] }
 0x15c   :  { %857 = vst.msk [vmem:[#allocation2 + $0x148] sm:$0xff] %vm202_vm0, %v801_v17  ;;  %1215 = vst.msk [vmem:[#allocation2 + $0x8] sm:$0xff] %vm202_vm0, %v1159_v31  ;;  %v803_v50 = vadd.f32 %v727_v13, %v517_v39  ;;  %v1161_v51 = vadd.f32 %v1025_v49, %v875_v41  ;;  %v881_v31 = vld [vmem:[#allocation2 + $0x48] sm:$0xff] }
 0x15d   :  { %3335 = vmatmul.mubr.msk.bf16.gmra.mrb[156].mxu0 %vm202_vm0, %v3482_v30  ;;  %v523_v30 = vld [vmem:[#allocation2 + $0x188] sm:$0xff] }
 0x15e   :  { %859 = vst.msk [vmem:[#allocation2 + $0x158] sm:$0xff] %vm202_vm0, %v803_v50  ;;  %1217 = vst.msk [vmem:[#allocation2 + $0x18] sm:$0xff] %vm202_vm0, %v1161_v51  ;;  %v525_v51 = vld [vmem:[#allocation2 + $0x198] sm:$0xff] }
 0x160   :  { %v731_v42 = vpop.f32.mrb[52].mxu1  ;;  %v1029_v53 = vpop.f32.mrb[52].mxu0 }
 0x161   :  { %v4063_v22 = vadd.f32 %v731_v42, %v389_v44  ;;  %v4066_v52 = vadd.f32 %v1029_v53, %v3934_v29  ;;  %v733_v61 = vpop.f32.mrb[53].mxu1  ;;  %v1031_v2 = vpop.f32.mrb[53].mxu0  ;;  %v879_v44 = vld [vmem:[#allocation2 + $0x38] sm:$0xff] }
 0x162   :  { %v805_v5 = vadd.f32 %v733_v61, %v519_v59  ;;  %v1163_v6 = vadd.f32 %v1031_v2, %v877_v63  ;;  %v735_v11 = vpop.f32.mrb[54].mxu1  ;;  %v1033_v56 = vpop.f32.mrb[54].mxu0  ;;  %v883_v42 = vld [vmem:[#allocation2 + $0x58] sm:$0xff]  ;;  %v527_v2 = vld [vmem:[#allocation2 + $0x1a8] sm:$0xff] }
 0x163   :  { %v4068_v14 = vadd.f32 %v735_v11, %v393_v12  ;;  %v4071_v15 = vadd.f32 %v1033_v56, %v3937_v36  ;;  %v737_v16 = vpop.f32.mrb[55].mxu1  ;;  %v1035_v23 = vpop.f32.mrb[55].mxu0 }
 0x164   :  { %861 = vst.msk [vmem:[#allocation2 + $0x168] sm:$0xff] %vm202_vm0, %v805_v5  ;;  %1219 = vst.msk [vmem:[#allocation2 + $0x28] sm:$0xff] %vm202_vm0, %v1163_v6  ;;  %v807_v29 = vadd.f32 %v737_v16, %v521_v9  ;;  %v1165_v25 = vadd.f32 %v1035_v23, %v879_v44  ;;  %v885_v6 = vld [vmem:[#allocation2 + $0x68] sm:$0xff] }
 0x166   :  { %863 = vst.msk [vmem:[#allocation2 + $0x178] sm:$0xff] %vm202_vm0, %v807_v29  ;;  %1221 = vst.msk [vmem:[#allocation2 + $0x38] sm:$0xff] %vm202_vm0, %v1165_v25  ;;  %v529_v25 = vld [vmem:[#allocation2 + $0x1b8] sm:$0xff] }
 0x168   :  { %v741_v21 = vpop.f32.mrb[56].mxu1  ;;  %v1039_v12 = vpop.f32.mrb[56].mxu0 }
 0x169   :  { %v4078_v26 = vadd.f32 %v741_v21, %v3888_v58  ;;  %v4081_v36 = vadd.f32 %v1039_v12, %v3945_v43  ;;  %v743_v17 = vpop.f32.mrb[57].mxu1  ;;  %v1041_v33 = vpop.f32.mrb[57].mxu0  ;;  %v887_v21 = vld [vmem:[#allocation2 + $0x78] sm:$0xff] }
 0x16a   :  { %v809_v38 = vadd.f32 %v743_v17, %v523_v30  ;;  %v1167_v39 = vadd.f32 %v1041_v33, %v881_v31  ;;  %v745_v13 = vpop.f32.mrb[58].mxu1  ;;  %v1043_v41 = vpop.f32.mrb[58].mxu0  ;;  %v889_v33 = vld [vmem:[#allocation2 + $0x88] sm:$0xff] }
 0x16b   :  { %v4084_v49 = vadd.f32 %v745_v13, %v3892_v62  ;;  %v4087_v50 = vadd.f32 %v1043_v41, %v3948_v54  ;;  %v747_v58 = vpop.f32.mrb[59].mxu1  ;;  %v1045_v53 = vpop.f32.mrb[59].mxu0 }
 0x16c   :  { %865 = vst.msk [vmem:[#allocation2 + $0x188] sm:$0xff] %vm202_vm0, %v809_v38  ;;  %1223 = vst.msk [vmem:[#allocation2 + $0x48] sm:$0xff] %vm202_vm0, %v1167_v39  ;;  %v811_v43 = vadd.f32 %v747_v58, %v525_v51  ;;  %v1169_v59 = vadd.f32 %v1045_v53, %v883_v42  ;;  %v1271_v39 = vld [vmem:[#allocation2 + $0x8] sm:$0xff] }
 0x16e   :  { %867 = vst.msk [vmem:[#allocation2 + $0x198] sm:$0xff] %vm202_vm0, %v811_v43  ;;  %1225 = vst.msk [vmem:[#allocation2 + $0x58] sm:$0xff] %vm202_vm0, %v1169_v59  ;;  %v891_v59 = vld [vmem:[#allocation2 + $0x98] sm:$0xff] }
 0x170   :  { %v751_v61 = vpop.f32.mrb[60].mxu1  ;;  %v1049_v62 = vpop.f32.mrb[60].mxu0 }
 0x171   :  { %v4094_v63 = vadd.f32 %v751_v61, %v3902_v3  ;;  %v4097_v54 = vadd.f32 %v1049_v62, %v3956_v1  ;;  %v753_v5 = vpop.f32.mrb[61].mxu1  ;;  %v1051_v11 = vpop.f32.mrb[61].mxu0  ;;  %v1273_v61 = vld [vmem:[#allocation2 + $0x18] sm:$0xff] }
 0x172   :  { %v813_v56 = vadd.f32 %v753_v5, %v527_v2  ;;  %v1171_v9 = vadd.f32 %v1051_v11, %v885_v6  ;;  %v755_v16 = vpop.f32.mrb[62].mxu1  ;;  %v1053_v44 = vpop.f32.mrb[62].mxu0  ;;  %v893_v11 = vld [vmem:[#allocation2 + $0xa8] sm:$0xff] }
 0x173   :  { %v4100_v23 = vadd.f32 %v755_v16, %v3906_v7  ;;  %v4103_v29 = vadd.f32 %v1053_v44, %v3959_v10  ;;  %v757_v3 = vpop.f32.mrb[63].mxu1  ;;  %v1055_v12 = vpop.f32.mrb[63].mxu0 }
 0x174   :  { %869 = vst.msk [vmem:[#allocation2 + $0x1a8] sm:$0xff] %vm202_vm0, %v813_v56  ;;  %1227 = vst.msk [vmem:[#allocation2 + $0x68] sm:$0xff] %vm202_vm0, %v1171_v9  ;;  %v815_v1 = vadd.f32 %v757_v3, %v529_v25  ;;  %v1173_v30 = vadd.f32 %v1055_v12, %v887_v21  ;;  %v1275_v9 = vld [vmem:[#allocation2 + $0x28] sm:$0xff] }
 0x176   :  { %871 = vst.msk [vmem:[#allocation2 + $0x1b8] sm:$0xff] %vm202_vm0, %v815_v1  ;;  %1229 = vst.msk [vmem:[#allocation2 + $0x78] sm:$0xff] %vm202_vm0, %v1173_v30  ;;  %v895_v30 = vld [vmem:[#allocation2 + $0xb8] sm:$0xff] }
 0x178   :  { %v1059_v17 = vpop.f32.mrb[64].mxu0  ;;  %v1417_v7 = vpop.f32.mrb[64].mxu1 }
 0x179   :  { %v4110_v31 = vadd.f32 %v1059_v17, %v3967_v19  ;;  %v4113_v10 = vadd.f32 %v1417_v7, %v4048_v20  ;;  %v1061_v38 = vpop.f32.mrb[65].mxu0  ;;  %v1419_v13 = vpop.f32.mrb[65].mxu1  ;;  %v1277_v17 = vld [vmem:[#allocation2 + $0x38] sm:$0xff] }
 0x17a   :  { %v1175_v41 = vadd.f32 %v1061_v38, %v889_v33  ;;  %v1557_v51 = vadd.f32 %v1419_v13, %v1271_v39  ;;  %v1063_v58 = vpop.f32.mrb[66].mxu0  ;;  %v1421_v42 = vpop.f32.mrb[66].mxu1  ;;  %v897_v13 = vld [vmem:[#allocation2 + $0xc8] sm:$0xff] }
 0x17b   :  { %v4116_v53 = vadd.f32 %v1063_v58, %v3970_v28  ;;  %v4119_v43 = vadd.f32 %v1421_v42, %v4056_v32  ;;  %v1065_v19 = vpop.f32.mrb[67].mxu0  ;;  %v1423_v62 = vpop.f32.mrb[67].mxu1 }
 0x17c   :  { %1231 = vst.msk [vmem:[#allocation2 + $0x88] sm:$0xff] %vm202_vm0, %v1175_v41  ;;  %1613 = vst.msk [vmem:[#allocation2 + $0x8] sm:$0xff] %vm202_vm0, %v1557_v51  ;;  %v1177_v20 = vadd.f32 %v1065_v19, %v891_v59  ;;  %v1559_v2 = vadd.f32 %v1423_v62, %v1273_v61  ;;  %v1279_v51 = vld [vmem:[#allocation2 + $0x48] sm:$0xff] }
 0x17e   :  { %1233 = vst.msk [vmem:[#allocation2 + $0x98] sm:$0xff] %vm202_vm0, %v1177_v20  ;;  %1615 = vst.msk [vmem:[#allocation2 + $0x18] sm:$0xff] %vm202_vm0, %v1559_v2  ;;  %v899_v2 = vld [vmem:[#allocation2 + $0xd8] sm:$0xff] }
 0x180   :  { %v1069_v5 = vpop.f32.mrb[68].mxu0  ;;  %v1427_v28 = vpop.f32.mrb[68].mxu1 }
 0x181   :  { %v4126_v6 = vadd.f32 %v1069_v5, %v3978_v35  ;;  %v4129_v32 = vadd.f32 %v1427_v28, %v4066_v52  ;;  %v1071_v56 = vpop.f32.mrb[69].mxu0  ;;  %v1429_v16 = vpop.f32.mrb[69].mxu1  ;;  %v1281_v5 = vld [vmem:[#allocation2 + $0x58] sm:$0xff] }
 0x182   :  { %v1179_v44 = vadd.f32 %v1071_v56, %v893_v11  ;;  %v1561_v25 = vadd.f32 %v1429_v16, %v1275_v9  ;;  %v1073_v3 = vpop.f32.mrb[70].mxu0  ;;  %v1431_v21 = vpop.f32.mrb[70].mxu1  ;;  %v3483_v56 = vld [vmem:[%s4661_s3] sm:$0xff]  }
 0x183   :  { %v4132_v12 = vadd.f32 %v1073_v3, %v3981_v48  ;;  %v4135_v1 = vadd.f32 %v1431_v21, %v4071_v15  ;;  %v1075_v35 = vpop.f32.mrb[71].mxu0  ;;  %v1433_v7 = vpop.f32.mrb[71].mxu1  ;;  %2815 = vmatpush1.bf16.msra.mxu1 %v3483_v56  ;;  %v1283_v3 = vld [vmem:[#allocation2 + $0x68] sm:$0xff]  ;;  %v907_v56 = vld [vmem:[#allocation2 + $0x118] sm:$0xff] }
 0x184   :  { %1235 = vst.msk [vmem:[#allocation2 + $0xa8] sm:$0xff] %vm202_vm0, %v1179_v44  ;;  %1617 = vst.msk [vmem:[#allocation2 + $0x28] sm:$0xff] %vm202_vm0, %v1561_v25  ;;  %v1181_v52 = vadd.f32 %v1075_v35, %v895_v30  ;;  %v1563_v33 = vadd.f32 %v1433_v7, %v1277_v17  ;;  %2816 = vmatprep.subr.bf16.mxu1 %v3581_v0  ;;  %v901_v44 = vld [vmem:[#allocation2 + $0xe8] sm:$0xff] }
 0x186   :  { %1237 = vst.msk [vmem:[#allocation2 + $0xb8] sm:$0xff] %vm202_vm0, %v1181_v52  ;;  %1619 = vst.msk [vmem:[#allocation2 + $0x38] sm:$0xff] %vm202_vm0, %v1563_v33 }
 0x188   :  { %v1079_v38 = vpop.f32.mrb[72].mxu0  ;;  %v1437_v48 = vpop.f32.mrb[72].mxu1 }
 0x189   :  { %v4142_v39 = vadd.f32 %v1079_v38, %v3989_v57  ;;  %v4145_v15 = vadd.f32 %v1437_v48, %v4081_v36  ;;  %v1081_v41 = vpop.f32.mrb[73].mxu0  ;;  %v1439_v58 = vpop.f32.mrb[73].mxu1  ;;  %v903_v38 = vld [vmem:[#allocation2 + $0xf8] sm:$0xff] }
 0x18a   :  { %v1183_v42 = vadd.f32 %v1081_v41, %v897_v13  ;;  %v1565_v59 = vadd.f32 %v1439_v58, %v1279_v51  ;;  %v1083_v19 = vpop.f32.mrb[74].mxu0  ;;  %v1441_v61 = vpop.f32.mrb[74].mxu1  ;;  %v1285_v48 = vld [vmem:[#allocation2 + $0x78] sm:$0xff] }
 0x18b   :  { %v4148_v62 = vadd.f32 %v1083_v19, %v3992_v4  ;;  %v4151_v20 = vadd.f32 %v1441_v61, %v4087_v50  ;;  %v1085_v57 = vpop.f32.mrb[75].mxu0  ;;  %v1443_v28 = vpop.f32.mrb[75].mxu1  ;;  %v1287_v19 = vld [vmem:[#allocation2 + $0x88] sm:$0xff] }
 0x18c   :  { %1239 = vst.msk [vmem:[#allocation2 + $0xc8] sm:$0xff] %vm202_vm0, %v1183_v42  ;;  %1621 = vst.msk [vmem:[#allocation2 + $0x48] sm:$0xff] %vm202_vm0, %v1565_v59  ;;  %v1185_v36 = vadd.f32 %v1085_v57, %v899_v2  ;;  %v1567_v11 = vadd.f32 %v1443_v28, %v1281_v5  ;;  %v905_v42 = vld [vmem:[#allocation2 + $0x108] sm:$0xff] }
 0x18e   :  { %1241 = vst.msk [vmem:[#allocation2 + $0xd8] sm:$0xff] %vm202_vm0, %v1185_v36  ;;  %1623 = vst.msk [vmem:[#allocation2 + $0x58] sm:$0xff] %vm202_vm0, %v1567_v11 }
 0x190   :  { %v1089_v4 = vpop.f32.mrb[76].mxu0  ;;  %v1447_v50 = vpop.f32.mrb[76].mxu1 }
 0x191   :  { %v4162_v9 = vadd.f32 %v1089_v4, %v4000_v45  ;;  %v4165_v16 = vadd.f32 %v1447_v50, %v4097_v54  ;;  %v1091_v25 = vpop.f32.mrb[77].mxu0  ;;  %v1449_v21 = vpop.f32.mrb[77].mxu1  ;;  %v1289_v4 = vld [vmem:[#allocation2 + $0x98] sm:$0xff] }
 0x192   :  { %v1187_v30 = vadd.f32 %v1091_v25, %v901_v44  ;;  %v1569_v35 = vadd.f32 %v1449_v21, %v1283_v3  ;;  %v1093_v17 = vpop.f32.mrb[78].mxu0  ;;  %v1451_v7 = vpop.f32.mrb[78].mxu1 }
 0x193   :  { %v4168_v52 = vadd.f32 %v1093_v17, %v4003_v24  ;;  %v4171_v33 = vadd.f32 %v1451_v7, %v4103_v29  ;;  %v1095_v45 = vpop.f32.mrb[79].mxu0  ;;  %v1453_v13 = vpop.f32.mrb[79].mxu1  ;;  %v1291_v17 = vld [vmem:[#allocation2 + $0xa8] sm:$0xff] }
 0x194   :  { %1243 = vst.msk [vmem:[#allocation2 + $0xe8] sm:$0xff] %vm202_vm0, %v1187_v30  ;;  %1625 = vst.msk [vmem:[#allocation2 + $0x68] sm:$0xff] %vm202_vm0, %v1569_v35  ;;  %v1189_v54 = vadd.f32 %v1095_v45, %v903_v38  ;;  %v1571_v41 = vadd.f32 %v1453_v13, %v1285_v48  ;;  %v909_v30 = vld [vmem:[#allocation2 + $0x128] sm:$0xff] }
 0x196   :  { %1245 = vst.msk [vmem:[#allocation2 + $0xf8] sm:$0xff] %vm202_vm0, %v1189_v54  ;;  %1627 = vst.msk [vmem:[#allocation2 + $0x78] sm:$0xff] %vm202_vm0, %v1571_v41  ;;  %v911_v41 = vld [vmem:[#allocation2 + $0x138] sm:$0xff] }
 0x198   :  { %v1099_v51 = vpop.f32.mrb[80].mxu0  ;;  %v1457_v24 = vpop.f32.mrb[80].mxu1 }
 0x199   :  { %v4178_v58 = vadd.f32 %v1099_v51, %v4020_v37  ;;  %v4181_v29 = vadd.f32 %v1457_v24, %v4110_v31  ;;  %v1101_v59 = vpop.f32.mrb[81].mxu0  ;;  %v1459_v61 = vpop.f32.mrb[81].mxu1 }
 0x19a   :  { %v1191_v2 = vadd.f32 %v1101_v59, %v905_v42  ;;  %v1573_v57 = vadd.f32 %v1459_v61, %v1287_v19  ;;  %v1103_v5 = vpop.f32.mrb[82].mxu0  ;;  %v1461_v28 = vpop.f32.mrb[82].mxu1 }
 0x19b   :  { %v4184_v36 = vadd.f32 %v1103_v5, %v4026_v47  ;;  %v4187_v11 = vadd.f32 %v1461_v28, %v4116_v53  ;;  %v1105_v37 = vpop.f32.mrb[83].mxu0  ;;  %v1463_v50 = vpop.f32.mrb[83].mxu1  ;;  %v3484_v47 = vld [vmem:[%s4661_s3 + $0x8] sm:$0xff]  }
 0x19c   :  { %1247 = vst.msk [vmem:[#allocation2 + $0x108] sm:$0xff] %vm202_vm0, %v1191_v2  ;;  %1629 = vst.msk [vmem:[#allocation2 + $0x88] sm:$0xff] %vm202_vm0, %v1573_v57  ;;  %v1193_v31 = vadd.f32 %v1105_v37, %v907_v56  ;;  %v1575_v44 = vadd.f32 %v1463_v50, %v1289_v4  ;;  %2817 = vmatpush1.bf16.msra.mxu1 %v3484_v47  ;;  %v913_v2 = vld [vmem:[#allocation2 + $0x148] sm:$0xff]  ;;  %v3485_v56 = vld [vmem:[%s4661_s3 + $0x10] sm:$0xff]  }
 0x19d   :  { %2818 = vmatprep.subr.bf16.mxu1 %v3581_v0  ;;  %v1295_v5 = vld [vmem:[#allocation2 + $0xc8] sm:$0xff]  ;;  %v915_v47 = vld [vmem:[#allocation2 + $0x158] sm:$0xff] }
 0x19e   :  { %1249 = vst.msk [vmem:[#allocation2 + $0x118] sm:$0xff] %vm202_vm0, %v1193_v31  ;;  %1631 = vst.msk [vmem:[#allocation2 + $0x98] sm:$0xff] %vm202_vm0, %v1575_v44 }
 0x1a0   :  { %v1109_v53 = vpop.f32.mrb[84].mxu0  ;;  %v1467_v25 = vpop.f32.mrb[84].mxu1  ;;  %2819 = vmatpush1.bf16.msra.mxu1 %v3485_v56 }
 0x1a1   :  { %v4197_v3 = vadd.f32 %v1109_v53, %v4034_v60  ;;  %v4200_v21 = vadd.f32 %v1467_v25, %v4126_v6  ;;  %v1111_v35 = vpop.f32.mrb[85].mxu0  ;;  %v1469_v7 = vpop.f32.mrb[85].mxu1  ;;  %v1293_v6 = vld [vmem:[#allocation2 + $0xb8] sm:$0xff]  ;;  %2820 = vmatprep.subr.bf16.mxu1 %v3581_v0 }
 0x1a2   :  { %v1195_v38 = vadd.f32 %v1111_v35, %v909_v30  ;;  %v1577_v45 = vadd.f32 %v1469_v7, %v1291_v17  ;;  %v1113_v48 = vpop.f32.mrb[86].mxu0  ;;  %v1471_v13 = vpop.f32.mrb[86].mxu1  ;;  %v1297_v53 = vld [vmem:[#allocation2 + $0xd8] sm:$0xff] }
 0x1a3   :  { %v4204_v54 = vadd.f32 %v1113_v48, %v4037_v8  ;;  %v1578_v60 = vadd.f32 %v1471_v13, %v4132_v12  ;;  %v1115_v51 = vpop.f32.mrb[87].mxu0  ;;  %v1473_v24 = vpop.f32.mrb[87].mxu1  ;;  %v1299_v48 = vld [vmem:[#allocation2 + $0xe8] sm:$0xff] }
 0x1a4   :  { %1251 = vst.msk [vmem:[#allocation2 + $0x128] sm:$0xff] %vm202_vm0, %v1195_v38  ;;  %1633 = vst.msk [vmem:[#allocation2 + $0xa8] sm:$0xff] %vm202_vm0, %v1577_v45  ;;  %v1197_v42 = vadd.f32 %v1115_v51, %v911_v41  ;;  %v1579_v59 = vadd.f32 %v1473_v24, %v1293_v6  ;;  %v917_v38 = vld [vmem:[#allocation2 + $0x168] sm:$0xff] }
 0x1a5   :  { %1634 = vst [vmem:[#allocation2 + $0xb0] sm:$0xff] %v1578_v60 }
 0x1a6   :  { %1253 = vst.msk [vmem:[#allocation2 + $0x138] sm:$0xff] %vm202_vm0, %v1197_v42  ;;  %1635 = vst.msk [vmem:[#allocation2 + $0xb8] sm:$0xff] %vm202_vm0, %v1579_v59  ;;  %v919_v59 = vld [vmem:[#allocation2 + $0x178] sm:$0xff] }
 0x1a8   :  { %v1119_v19 = vpop.f32.mrb[88].mxu0  ;;  %v1477_v8 = vpop.f32.mrb[88].mxu1 }
 0x1a9   :  { %v4212_v61 = vadd.f32 %v1119_v19, %v4045_v18  ;;  %v1580_v12 = vadd.f32 %v1477_v8, %v4142_v39  ;;  %v1121_v57 = vpop.f32.mrb[89].mxu0  ;;  %v1479_v28 = vpop.f32.mrb[89].mxu1 }
 0x1aa   :  { %v1199_v37 = vadd.f32 %v1121_v57, %v913_v2  ;;  %v1581_v4 = vadd.f32 %v1479_v28, %v1295_v5  ;;  %v1123_v50 = vpop.f32.mrb[90].mxu0  ;;  %v1481_v31 = vpop.f32.mrb[90].mxu1  ;;  %v3486_v2 = vld [vmem:[%s4661_s3 + $0x18] sm:$0xff]   ;;  %v921_v28 = vld [vmem:[#allocation2 + $0x188] sm:$0xff] }
 0x1ab   :  { %1636 = vst [vmem:[#allocation2 + $0xc0] sm:$0xff] %v1580_v12  ;;  %v4219_v44 = vadd.f32 %v1123_v50, %v4053_v55  ;;  %v1582_v18 = vadd.f32 %v1481_v31, %v4148_v62  ;;  %v1125_v39 = vpop.f32.mrb[91].mxu0  ;;  %v1483_v25 = vpop.f32.mrb[91].mxu1  ;;  %2821 = vmatpush1.bf16.msra.mxu1 %v3486_v2 }
 0x1ac   :  { %1255 = vst.msk [vmem:[#allocation2 + $0x148] sm:$0xff] %vm202_vm0, %v1199_v37  ;;  %1637 = vst.msk [vmem:[#allocation2 + $0xc8] sm:$0xff] %vm202_vm0, %v1581_v4  ;;  %v1201_v30 = vadd.f32 %v1125_v39, %v915_v47  ;;  %v1583_v35 = vadd.f32 %v1483_v25, %v1297_v53  ;;  %2822 = vmatprep.subr.bf16.mxu1 %v3581_v0  ;;  %v1303_v37 = vld [vmem:[#allocation2 + $0x108] sm:$0xff]  ;;  %v923_v25 = vld [vmem:[#allocation2 + $0x198] sm:$0xff] }
 0x1ad   :  { %1638 = vst [vmem:[#allocation2 + $0xd0] sm:$0xff] %v1582_v18 }
 0x1ae   :  { %1257 = vst.msk [vmem:[#allocation2 + $0x158] sm:$0xff] %vm202_vm0, %v1201_v30  ;;  %1639 = vst.msk [vmem:[#allocation2 + $0xd8] sm:$0xff] %vm202_vm0, %v1583_v35 }
 0x1b0   :  { %v1129_v55 = vpop.f32.mrb[92].mxu0  ;;  %v1487_v62 = vpop.f32.mrb[92].mxu1 }
 0x1b1   :  { %v4228_v17 = vadd.f32 %v1129_v55, %v4063_v22  ;;  %v1584_v7 = vadd.f32 %v1487_v62, %v4162_v9  ;;  %v1131_v45 = vpop.f32.mrb[93].mxu0  ;;  %v1489_v13 = vpop.f32.mrb[93].mxu1  ;;  %v1301_v22 = vld [vmem:[#allocation2 + $0xf8] sm:$0xff] }
 0x1b2   :  { %v1203_v60 = vadd.f32 %v1131_v45, %v917_v38  ;;  %v1585_v41 = vadd.f32 %v1489_v13, %v1299_v48  ;;  %v1133_v51 = vpop.f32.mrb[94].mxu0  ;;  %v1491_v6 = vpop.f32.mrb[94].mxu1  ;;  %v925_v45 = vld [vmem:[#allocation2 + $0x1a8] sm:$0xff] }
 0x1b3   :  { %1640 = vst [vmem:[#allocation2 + $0xe0] sm:$0xff] %v1584_v7  ;;  %v4232_v24 = vadd.f32 %v1133_v51, %v4068_v14  ;;  %v1586_v42 = vadd.f32 %v1491_v6, %v4168_v52  ;;  %v1135_v19 = vpop.f32.mrb[95].mxu0  ;;  %v1493_v8 = vpop.f32.mrb[95].mxu1  ;;  %v1307_v13 = vld [vmem:[#allocation2 + $0x128] sm:$0xff] }
 0x1b4   :  { %1259 = vst.msk [vmem:[#allocation2 + $0x168] sm:$0xff] %vm202_vm0, %v1203_v60  ;;  %1641 = vst.msk [vmem:[#allocation2 + $0xe8] sm:$0xff] %vm202_vm0, %v1585_v41  ;;  %v1205_v9 = vadd.f32 %v1135_v19, %v919_v59  ;;  %v1587_v12 = vadd.f32 %v1493_v8, %v1301_v22  ;;  %v927_v19 = vld [vmem:[#allocation2 + $0x1b8] sm:$0xff] }
 0x1b5   :  { %1642 = vst [vmem:[#allocation2 + $0xf0] sm:$0xff] %v1586_v42 }
 0x1b6   :  { %1261 = vst.msk [vmem:[#allocation2 + $0x178] sm:$0xff] %vm202_vm0, %v1205_v9  ;;  %1643 = vst.msk [vmem:[#allocation2 + $0xf8] sm:$0xff] %vm202_vm0, %v1587_v12 }
 0x1b8   :  { %v1139_v14 = vpop.f32.mrb[96].mxu0  ;;  %v1497_v52 = vpop.f32.mrb[96].mxu1 }
 0x1b9   :  { %v4244_v57 = vadd.f32 %v1139_v14, %v4078_v26  ;;  %v1588_v5 = vadd.f32 %v1497_v52, %v4178_v58  ;;  %v1141_v56 = vpop.f32.mrb[97].mxu0  ;;  %v1499_v4 = vpop.f32.mrb[97].mxu1  ;;  %v1305_v26 = vld [vmem:[#allocation2 + $0x118] sm:$0xff]  ;;  %v1311_v52 = vld [vmem:[#allocation2 + $0x148] sm:$0xff] }
 0x1ba   :  { %v1207_v50 = vadd.f32 %v1141_v56, %v921_v28  ;;  %v1589_v31 = vadd.f32 %v1499_v4, %v1303_v37  ;;  %v1143_v18 = vpop.f32.mrb[98].mxu0  ;;  %v1501_v47 = vpop.f32.mrb[98].mxu1  ;;  %v1669_v28 = vld [vmem:[#allocation2 + $0x8] sm:$0xff] }
 0x1bb   :  { %1644 = vst [vmem:[#allocation2 + $0x100] sm:$0xff] %v1588_v5  ;;  %v4248_v39 = vadd.f32 %v1143_v18, %v4084_v49  ;;  %v1590_v53 = vadd.f32 %v1501_v47, %v4184_v36  ;;  %v1145_v30 = vpop.f32.mrb[99].mxu0  ;;  %v1503_v35 = vpop.f32.mrb[99].mxu1  ;;  %v3487_v49 = vld [vmem:[%s4661_s3 + $0x20] sm:$0xff]   ;;  %v3488_v37 = vld [vmem:[%s4661_s3 + $0x28] sm:$0xff]  }
 0x1bc   :  { %1263 = vst.msk [vmem:[#allocation2 + $0x188] sm:$0xff] %vm202_vm0, %v1207_v50  ;;  %1645 = vst.msk [vmem:[#allocation2 + $0x108] sm:$0xff] %vm202_vm0, %v1589_v31  ;;  %v1209_v58 = vadd.f32 %v1145_v30, %v923_v25  ;;  %v1591_v55 = vadd.f32 %v1503_v35, %v1305_v26  ;;  %2823 = vmatpush1.bf16.msra.mxu1 %v3487_v49  ;;  %v1671_v30 = vld [vmem:[#allocation2 + $0x18] sm:$0xff]  ;;  %v3489_v35 = vld [vmem:[%s4661_s3 + $0x30] sm:$0xff]  }
 0x1bd   :  { %1646 = vst [vmem:[#allocation2 + $0x110] sm:$0xff] %v1590_v53  ;;  %2824 = vmatprep.subr.bf16.mxu1 %v3581_v0 }
 0x1be   :  { %1265 = vst.msk [vmem:[#allocation2 + $0x198] sm:$0xff] %vm202_vm0, %v1209_v58  ;;  %1647 = vst.msk [vmem:[#allocation2 + $0x118] sm:$0xff] %vm202_vm0, %v1591_v55  ;;  %v2081_v58 = vsub.s32 1, %v4010_v46 }
 0x1c0   :  { %v1149_v36 = vpop.f32.mrb[100].mxu0  ;;  %v1507_v62 = vpop.f32.mrb[100].mxu1  ;;  %2825 = vmatpush1.bf16.msra.mxu1 %v3488_v37 }
 0x1c1   :  { %v4259_v7 = vadd.f32 %v1149_v36, %v4094_v63  ;;  %v1592_v38 = vadd.f32 %v1507_v62, %v4197_v3  ;;  %v1151_v48 = vpop.f32.mrb[101].mxu0  ;;  %v1509_v60 = vpop.f32.mrb[101].mxu1  ;;  %v1309_v3 = vld [vmem:[#allocation2 + $0x138] sm:$0xff]  ;;  %2826 = vmatprep.subr.bf16.mxu1 %v3581_v0  ;;  %v4293_v36 = vrot.slane %v4018_v34, %v2081_v58 }
 0x1c2   :  { %v1211_v41 = vadd.f32 %v1151_v48, %v925_v45  ;;  %v1593_v51 = vadd.f32 %v1509_v60, %v1307_v13  ;;  %v1153_v6 = vpop.f32.mrb[102].mxu0  ;;  %v1511_v42 = vpop.f32.mrb[102].mxu1  ;;  %v1315_v48 = vld [vmem:[#allocation2 + $0x168] sm:$0xff] }
 0x1c3   :  { %1648 = vst [vmem:[#allocation2 + $0x120] sm:$0xff] %v1592_v38  ;;  %v4264_v59 = vadd.f32 %v1153_v6, %v4100_v23  ;;  %v1594_v63 = vadd.f32 %v1511_v42, %v4204_v54  ;;  %v1155_v22 = vpop.f32.mrb[103].mxu0  ;;  %v1513_v8 = vpop.f32.mrb[103].mxu1  ;;  %v1673_v60 = vld [vmem:[#allocation2 + $0x28] sm:$0xff] }
 0x1c4   :  { %1267 = vst.msk [vmem:[#allocation2 + $0x1a8] sm:$0xff] %vm202_vm0, %v1211_v41  ;;  %1649 = vst.msk [vmem:[#allocation2 + $0x128] sm:$0xff] %vm202_vm0, %v1593_v51  ;;  %v1213_v9 = vadd.f32 %v1155_v22, %v927_v19  ;;  %v1595_v12 = vadd.f32 %v1513_v8, %v1309_v3  ;;  %2827 = vmatpush1.bf16.msra.mxu1 %v3489_v35  ;;  %v1675_v51 = vld [vmem:[#allocation2 + $0x38] sm:$0xff] }
 0x1c5   :  { %1650 = vst [vmem:[#allocation2 + $0x130] sm:$0xff] %v1594_v63  ;;  %2828 = vmatprep.subr.bf16.mxu1 %v3581_v0  ;;  %v1317_v22 = vld [vmem:[#allocation2 + $0x178] sm:$0xff] }
 0x1c6   :  { %1269 = vst.msk [vmem:[#allocation2 + $0x1b8] sm:$0xff] %vm202_vm0, %v1213_v9  ;;  %1651 = vst.msk [vmem:[#allocation2 + $0x138] sm:$0xff] %vm202_vm0, %v1595_v12 }
 0x1c8   :  { %v1517_v2 = vpop.f32.mrb[104].mxu1  ;;  %v1815_v23 = vpop.f32.mrb[104].mxu0 }
 0x1c9   :  { %v1596_v14 = vadd.f32 %v1517_v2, %v4212_v61  ;;  %v1954_v54 = vadd.f32 %v1815_v23, %v4113_v10  ;;  %v1519_v5 = vpop.f32.mrb[105].mxu1  ;;  %v1817_v56 = vpop.f32.mrb[105].mxu0  ;;  %v1313_v10 = vld [vmem:[#allocation2 + $0x158] sm:$0xff]  ;;  %v3491_v23 = vld [vmem:[%s4661_s3 + $0x40] sm:$0xff]  }
 0x1ca   :  { %v1597_v4 = vadd.f32 %v1519_v5, %v1311_v52  ;;  %v1955_v50 = vadd.f32 %v1817_v56, %v1669_v28  ;;  %v1521_v31 = vpop.f32.mrb[106].mxu1  ;;  %v1819_v18 = vpop.f32.mrb[106].mxu0 }
 0x1cb   :  { %1652 = vst [vmem:[#allocation2 + $0x140] sm:$0xff] %v1596_v14  ;;  %v2085_v47 = vadd.f32 %v4023_v40, %v1954_v54  ;;  %v1598_v53 = vadd.f32 %v1521_v31, %v4219_v44  ;;  %v1956_v61 = vadd.f32 %v1819_v18, %v4119_v43  ;;  %v1523_v25 = vpop.f32.mrb[107].mxu1  ;;  %v1821_v26 = vpop.f32.mrb[107].mxu0  ;;  %v3490_v44 = vld [vmem:[%s4661_s3 + $0x38] sm:$0xff]   ;;  %v3492_v18 = vld [vmem:[%s4661_s3 + $0x48] sm:$0xff]  }
 0x1cc   :  { %1653 = vst.msk [vmem:[#allocation2 + $0x148] sm:$0xff] %vm202_vm0, %v1597_v4  ;;  %2011 = vst.msk [vmem:[#allocation2 + $0x8] sm:$0xff] %vm202_vm0, %v1955_v50  ;;  %v1599_v55 = vadd.f32 %v1523_v25, %v1313_v10  ;;  %v1957_v49 = vadd.f32 %v1821_v26, %v1671_v30  ;;  %2829 = vmatpush1.bf16.msra.mxu1 %v3490_v44 }
 0x1cd   :  { %1654 = vst [vmem:[#allocation2 + $0x150] sm:$0xff] %v1598_v53  ;;  %v2087_v43 = vadd.f32 %v4023_v40, %v1956_v61  ;;  %vm2089_vm1 = vcmp.gt.f32.partialorder %v2085_v47, 0.0  ;;  %v2093_v6 = vmul.f32 0.01, %v2085_v47  ;;  %2830 = vmatprep.subr.bf16.mxu1 %v3581_v0 }
 0x1ce   :  { %1655 = vst.msk [vmem:[#allocation2 + $0x158] sm:$0xff] %vm202_vm0, %v1599_v55  ;;  %2013 = vst.msk [vmem:[#allocation2 + $0x18] sm:$0xff] %vm202_vm0, %v1957_v49  ;;  %v1319_v55 = vld [vmem:[#allocation2 + $0x188] sm:$0xff] }
 0x1cf   :  { %v2095_v8 = vmul.f32 0.01, %v2087_v43  ;;  %vm2091_vm2 = vcmp.gt.f32.partialorder %v2087_v43, 0.0  ;;  %v4310_v28 = vsel %vm2089_vm1, %v2085_v47, %v2093_v6 }
 0x1d0   :  { %v1527_v46 = vpop.f32.mrb[108].mxu1  ;;  %v1825_v62 = vpop.f32.mrb[108].mxu0  ;;  %2831 = vmatpush1.bf16.msra.mxu1 %v3491_v23  ;;  %v3494_v23 = vld [vmem:[%s4661_s3 + $0x58] sm:$0xff]  }
 0x1d1   :  { %v1600_v38 = vadd.f32 %v1527_v46, %v4228_v17  ;;  %v1958_v45 = vadd.f32 %v1825_v62, %v4129_v32  ;;  %v1529_v13 = vpop.f32.mrb[109].mxu1  ;;  %v1827_v41 = vpop.f32.mrb[109].mxu0  ;;  %v4316_v4 = vsel %vm2091_vm2, %v2087_v43, %v2095_v8  ;;  %2832 = vmatprep.subr.bf16.mxu1 %v3581_v0 }
 0x1d2   :  { %v1601_v42 = vadd.f32 %v1529_v13, %v1315_v48  ;;  %v1959_v63 = vadd.f32 %v1827_v41, %v1673_v60  ;;  %v1531_v19 = vpop.f32.mrb[110].mxu1  ;;  %v1829_v34 = vpop.f32.mrb[110].mxu0  ;;  %v1679_v60 = vld [vmem:[#allocation2 + $0x58] sm:$0xff] }
 0x1d3   :  { %v2071_v3 = vld [vmem:[#allocation2 + $0x8] sm:$0xff]  ;;  %1656 = vst [vmem:[#allocation2 + $0x160] sm:$0xff] %v1600_v38  ;;  %v2113_v9 = vadd.f32 %v4023_v40, %v1958_v45  ;;  %v1602_v17 = vadd.f32 %v1531_v19, %v4232_v24  ;;  %v1960_v32 = vadd.f32 %v1829_v34, %v4135_v1  ;;  %v1533_v12 = vpop.f32.mrb[111].mxu1  ;;  %v1831_v2 = vpop.f32.mrb[111].mxu0  ;;  %v3493_v34 = vld [vmem:[%s4661_s3 + $0x50] sm:$0xff]  }
 0x1d4   :  { %v2086_v14 = vadd.f32 %v4293_v36, %v2071_v3  ;;  %1657 = vst.msk [vmem:[#allocation2 + $0x168] sm:$0xff] %vm202_vm0, %v1601_v42  ;;  %2015 = vst.msk [vmem:[#allocation2 + $0x28] sm:$0xff] %vm202_vm0, %v1959_v63  ;;  %v1603_v54 = vadd.f32 %v1533_v12, %v1317_v22  ;;  %v1961_v52 = vadd.f32 %v1831_v2, %v1675_v51  ;;  %v1677_v45 = vld [vmem:[#allocation2 + $0x48] sm:$0xff]  ;;  %v1321_v42 = vld [vmem:[#allocation2 + $0x198] sm:$0xff]  ;;  %2833 = vmatpush1.bf16.msra.mxu1 %v3492_v18 }
 0x1d5   :  { %v2073_v24 = vld [vmem:[#allocation2 + $0x18] sm:$0xff]  ;;  %vm2117_vm3 = vcmp.gt.f32.partialorder %v2113_v9, 0.0  ;;  %v2121_v1 = vmul.f32 0.01, %v2113_v9  ;;  %1658 = vst [vmem:[#allocation2 + $0x170] sm:$0xff] %v1602_v17  ;;  %v2115_v5 = vadd.f32 %v4023_v40, %v1960_v32  ;;  %2834 = vmatprep.subr.bf16.mxu1 %v3581_v0 }
 0x1d6   :  { %vm2090_vm4 = vcmp.gt.f32.partialorder %v2086_v14, 0.0  ;;  %v2094_v56 = vmul.f32 0.01, %v2086_v14  ;;  %v2088_v37 = vadd.f32 %v4293_v36, %v2073_v24  ;;  %1659 = vst.msk [vmem:[#allocation2 + $0x178] sm:$0xff] %vm202_vm0, %v1603_v54  ;;  %2017 = vst.msk [vmem:[#allocation2 + $0x38] sm:$0xff] %vm202_vm0, %v1961_v52 }
 0x1d7   :  { %v4318_v50 = vsel %vm2117_vm3, %v2113_v9, %v2121_v1  ;;  %vm2119_vm5 = vcmp.gt.f32.partialorder %v2115_v5, 0.0  ;;  %v2123_v31 = vmul.f32 0.01, %v2115_v5 }
 0x1d8   :  { %v2098_v47 = vsel %vm2090_vm4, %v2086_v14, %v2094_v56  ;;  %vm2092_vm6 = vcmp.gt.f32.partialorder %v2088_v37, 0.0  ;;  %v2096_v53 = vmul.f32 0.01, %v2088_v37  ;;  %v2133_v61 = vadd.f32 %v4318_v50, %v4310_v28  ;;  %v1537_v10 = vpop.f32.mrb[112].mxu1  ;;  %v1835_v25 = vpop.f32.mrb[112].mxu0  ;;  %2835 = vmatpush1.bf16.msra.mxu1 %v3493_v34 }
 0x1d9   :  { %2102 = vst.msk [vmem:[#allocation3 + $0x8] sm:$0xff] %vm202_vm0, %v2098_v47  ;;  %2106 = vst.msk [vmem:[#allocation4 + $0x8] sm:$0xff] %vm202_vm0, %v2098_v47  ;;  %v2145_v30 = vmax.f32 %v4310_v28, %v4318_v50  ;;  %v4330_v26 = vsel %vm2119_vm5, %v2115_v5, %v2123_v31  ;;  %v1604_v35 = vadd.f32 %v1537_v10, %v4244_v57  ;;  %v1539_v49 = vpop.f32.mrb[113].mxu1  ;;  %v1837_v43 = vpop.f32.mrb[113].mxu0  ;;  %2836 = vmatprep.subr.bf16.mxu1 %v3581_v0 }
 0x1da   :  { %v1962_v58 = vadd.f32 %v1835_v25, %v4145_v15  ;;  %v2100_v44 = vsel %vm2092_vm6, %v2088_v37, %v2096_v53  ;;  %v2135_v46 = vadd.f32 %v4330_v26, %v4316_v4  ;;  %v2147_v62 = vmax.f32 %v4316_v4, %v4330_v26  ;;  %v1541_v48 = vpop.f32.mrb[114].mxu1  ;;  %v1839_v13 = vpop.f32.mrb[114].mxu0 }
 0x1db   :  { %v1605_v38 = vadd.f32 %v1539_v49, %v1319_v55  ;;  %2104 = vst.msk [vmem:[#allocation3 + $0x18] sm:$0xff] %vm202_vm0, %v2100_v44  ;;  %2108 = vst.msk [vmem:[#allocation4 + $0x18] sm:$0xff] %vm202_vm0, %v2100_v44  ;;  %v2110_v15 = vld [vmem:[#allocation2 + $0x28] sm:$0xff]  ;;  %v1963_v41 = vadd.f32 %v1837_v43, %v1677_v45  ;;  %v1606_v51 = vadd.f32 %v1541_v48, %v4248_v39  ;;  %v1543_v63 = vpop.f32.mrb[115].mxu1  ;;  %v1841_v19 = vpop.f32.mrb[115].mxu0  ;;  %v1325_v45 = vld [vmem:[#allocation2 + $0x1b8] sm:$0xff] }
 0x1dc   :  { %1660 = vst [vmem:[#allocation2 + $0x180] sm:$0xff] %v1604_v35  ;;  %v2157_v57 = vadd.f32 %v4023_v40, %v1962_v58  ;;  %v1964_v6 = vadd.f32 %v1839_v13, %v4151_v20  ;;  %v2114_v22 = vadd.f32 %v2110_v15, %v4293_v36  ;;  %v1607_v3 = vadd.f32 %v1543_v63, %v1321_v42  ;;  %v1681_v44 = vld [vmem:[#allocation2 + $0x68] sm:$0xff]  ;;  %v1683_v15 = vld [vmem:[#allocation2 + $0x78] sm:$0xff] }
 0x1dd   :  { %1661 = vst.msk [vmem:[#allocation2 + $0x188] sm:$0xff] %vm202_vm0, %v1605_v38  ;;  %v1965_v8 = vadd.f32 %v1841_v19, %v1679_v60  ;;  %v2112_v9 = vld [vmem:[#allocation2 + $0x38] sm:$0xff]  ;;  %2019 = vst.msk [vmem:[#allocation2 + $0x48] sm:$0xff] %vm202_vm0, %v1963_v41  ;;  %2837 = vmatpush1.bf16.msra.mxu1 %v3494_v23 }
 0x1de   :  { %vm2161_vm7 = vcmp.gt.f32.partialorder %v2157_v57, 0.0  ;;  %v2165_v39 = vmul.f32 0.01, %v2157_v57  ;;  %1662 = vst [vmem:[#allocation2 + $0x190] sm:$0xff] %v1606_v51  ;;  %v2159_v20 = vadd.f32 %v4023_v40, %v1964_v6  ;;  %vm2118_vm8 = vcmp.gt.f32.partialorder %v2114_v22, 0.0  ;;  %1663 = vst.msk [vmem:[#allocation2 + $0x198] sm:$0xff] %vm202_vm0, %v1607_v3 }
 0x1df   :  { %v2122_v17 = vmul.f32 0.01, %v2114_v22  ;;  %v2116_v32 = vadd.f32 %v2112_v9, %v4293_v36  ;;  %2021 = vst.msk [vmem:[#allocation2 + $0x58] sm:$0xff] %vm202_vm0, %v1965_v8 }
 0x1e0   :  { %v2169_v12 = vsel %vm2161_vm7, %v2157_v57, %v2165_v39  ;;  %vm2163_vm9 = vcmp.gt.f32.partialorder %v2159_v20, 0.0  ;;  %v2167_v2 = vmul.f32 0.01, %v2159_v20  ;;  %v2130_v54 = vld [vmem:[#allocation3 + $0x8] sm:$0xff]  ;;  %v1547_v5 = vpop.f32.mrb[116].mxu1  ;;  %v1845_v50 = vpop.f32.mrb[116].mxu0 }
 0x1e1   :  { %v2126_v14 = vsel %vm2118_vm8, %v2114_v22, %v2122_v17  ;;  %v2142_v52 = vld [vmem:[#allocation4 + $0x8] sm:$0xff]  ;;  %vm2120_vm10 = vcmp.gt.f32.partialorder %v2116_v32, 0.0  ;;  %v2124_v24 = vmul.f32 0.01, %v2116_v32  ;;  %v4357_v1 = vadd.f32 %v2169_v12, %v2133_v61  ;;  %v1549_v31 = vpop.f32.mrb[117].mxu1  ;;  %v1847_v35 = vpop.f32.mrb[117].mxu0 }
 0x1e2   :  { %v2134_v28 = vadd.f32 %v2130_v54, %v2126_v14  ;;  %v2146_v56 = vmax.f32 %v2142_v52, %v2126_v14  ;;  %v4360_v37 = vmax.f32 %v2145_v30, %v2169_v12  ;;  %v2171_v4 = vsel %vm2163_vm9, %v2159_v20, %v2167_v2  ;;  %v2132_v47 = vld [vmem:[#allocation3 + $0x18] sm:$0xff]  ;;  %v1323_v61 = vld [vmem:[#allocation2 + $0x1a8] sm:$0xff]  ;;  %v1551_v58 = vpop.f32.mrb[118].mxu1  ;;  %v1849_v38 = vpop.f32.mrb[118].mxu0 }
 0x1e3   :  { %v2128_v18 = vsel %vm2120_vm10, %v2116_v32, %v2124_v24  ;;  %v2144_v53 = vld [vmem:[#allocation4 + $0x18] sm:$0xff]  ;;  %v2179_v10 = vadd.f32 %v2171_v4, %v2135_v46  ;;  %v4362_v25 = vmax.f32 %v2147_v62, %v2171_v4  ;;  %v1608_v26 = vadd.f32 %v1547_v5, %v4259_v7  ;;  %v1553_v46 = vpop.f32.mrb[119].mxu1  ;;  %v1851_v57 = vpop.f32.mrb[119].mxu0  ;;  %v1685_v24 = vld [vmem:[#allocation2 + $0x88] sm:$0xff] }
 0x1e4   :  { %2138 = vst.msk [vmem:[#allocation3 + $0x8] sm:$0xff] %vm202_vm0, %v2134_v28  ;;  %2150 = vst.msk [vmem:[#allocation4 + $0x8] sm:$0xff] %vm202_vm0, %v2146_v56  ;;  %v2136_v30 = vadd.f32 %v2132_v47, %v2128_v18  ;;  %v2148_v55 = vmax.f32 %v2144_v53, %v2128_v18  ;;  %v1966_v49 = vadd.f32 %v1845_v50, %v4165_v16  ;;  %v2154_v62 = vld [vmem:[#allocation2 + $0x48] sm:$0xff]  ;;  %v1687_v18 = vld [vmem:[#allocation2 + $0x98] sm:$0xff] }
 0x1e5   :  { %v1609_v43 = vadd.f32 %v1549_v31, %v1323_v61  ;;  %1664 = vst [vmem:[#allocation2 + $0x1a0] sm:$0xff] %v1608_v26  ;;  %v1967_v7 = vadd.f32 %v1847_v35, %v1681_v44  ;;  %v1610_v48 = vadd.f32 %v1551_v58, %v4264_v59  ;;  %v1968_v13 = vadd.f32 %v1849_v38, %v4171_v33  ;;  %v3495_v16 = vld [vmem:[%s4662_s4 + $0x4] ss:$8 sps:$4 sm:$0x3f]  }
 0x1e6   :  { %v1611_v60 = vadd.f32 %v1553_v46, %v1325_v45  ;;  %2140 = vst.msk [vmem:[#allocation3 + $0x18] sm:$0xff] %vm202_vm0, %v2136_v30  ;;  %2152 = vst.msk [vmem:[#allocation4 + $0x18] sm:$0xff] %vm202_vm0, %v2148_v55  ;;  %v2158_v41 = vadd.f32 %v2154_v62, %v4293_v36  ;;  %v2156_v51 = vld [vmem:[#allocation2 + $0x58] sm:$0xff]  ;;  %v2201_v6 = vadd.f32 %v4023_v40, %v1966_v49  ;;  %3351 = vmatprep.subr.msk.bf16.mxu1 %vm2872_vm11, %v3495_v16 }
 0x1e7   :  { %1665 = vst.msk [vmem:[#allocation2 + $0x1a8] sm:$0xff] %vm202_vm0, %v1609_v43  ;;  %v1969_v59 = vadd.f32 %v1851_v57, %v1683_v15  ;;  %v2160_v33 = vadd.f32 %v2156_v51, %v4293_v36  ;;  %2023 = vst.msk [vmem:[#allocation2 + $0x68] sm:$0xff] %vm202_vm0, %v1967_v7  ;;  %v2203_v42 = vadd.f32 %v4023_v40, %v1968_v13  ;;  %v1689_v7 = vld [vmem:[#allocation2 + $0xa8] sm:$0xff]  ;;  %v1690_v51 = vld [vmem:[#allocation2 + $0xb0] sm:$0xff] }
 0x1e8   :  { %1666 = vst [vmem:[#allocation2 + $0x1b0] sm:$0xff] %v1610_v48  ;;  %1667 = vst.msk [vmem:[#allocation2 + $0x1b8] sm:$0xff] %vm202_vm0, %v1611_v60  ;;  %vm2162_vm12 = vcmp.gt.f32.partialorder %v2158_v41, 0.0  ;;  %v2166_v63 = vmul.f32 0.01, %v2158_v41  ;;  %vm2205_vm13 = vcmp.gt.f32.partialorder %v2201_v6, 0.0 }
 0x1e9   :  { %v2209_v19 = vmul.f32 0.01, %v2201_v6  ;;  %2025 = vst.msk [vmem:[#allocation2 + $0x78] sm:$0xff] %vm202_vm0, %v1969_v59  ;;  %v2168_v34 = vmul.f32 0.01, %v2160_v33  ;;  %vm2207_vm14 = vcmp.gt.f32.partialorder %v2203_v42, 0.0 }
 0x1ea   :  { %v2211_v22 = vmul.f32 0.01, %v2203_v42  ;;  %vm2164_vm15 = vcmp.gt.f32.partialorder %v2160_v33, 0.0  ;;  %v1855_v8 = vpop.f32.mrb[120].mxu0  ;;  %v2170_v9 = vsel %vm2162_vm12, %v2158_v41, %v2166_v63 }
 0x1eb   :  { %v2213_v3 = vsel %vm2205_vm13, %v2201_v6, %v2209_v19  ;;  %v2174_v39 = vld [vmem:[#allocation3 + $0x8] sm:$0xff]  ;;  %v1857_v2 = vpop.f32.mrb[121].mxu0  ;;  %v2172_v28 = vsel %vm2164_vm15, %v2160_v33, %v2168_v34  ;;  %v1970_v50 = vadd.f32 %v1855_v8, %v4181_v29  ;;  %v1691_v19 = vld [vmem:[#allocation2 + $0xb8] sm:$0xff] }
 0x1ec   :  { %v2186_v20 = vld [vmem:[#allocation4 + $0x8] sm:$0xff]  ;;  %v2221_v17 = vadd.f32 %v2213_v3, %v4357_v1  ;;  %v2233_v32 = vmax.f32 %v4360_v37, %v2213_v3  ;;  %v2215_v12 = vsel %vm2207_vm14, %v2203_v42, %v2211_v22  ;;  %v2178_v23 = vadd.f32 %v2174_v39, %v2170_v9  ;;  %v1859_v5 = vpop.f32.mrb[122].mxu0 }
 0x1ed   :  { %v2190_v14 = vmax.f32 %v2186_v20, %v2170_v9  ;;  %v2223_v54 = vadd.f32 %v2215_v12, %v2179_v10  ;;  %v2235_v52 = vmax.f32 %v4362_v25, %v2215_v12  ;;  %v2176_v56 = vld [vmem:[#allocation3 + $0x18] sm:$0xff]  ;;  %v1971_v31 = vadd.f32 %v1857_v2, %v1685_v24  ;;  %v1861_v37 = vpop.f32.mrb[123].mxu0 }
 0x1ee   :  { %v2188_v4 = vld [vmem:[#allocation4 + $0x18] sm:$0xff]  ;;  %v1972_v1 = vadd.f32 %v1859_v5, %v4187_v11  ;;  %2182 = vst.msk [vmem:[#allocation3 + $0x8] sm:$0xff] %vm202_vm0, %v2178_v23  ;;  %v2180_v47 = vadd.f32 %v2176_v56, %v2172_v28  ;;  %v2198_v10 = vld [vmem:[#allocation2 + $0x68] sm:$0xff]  ;;  %v1973_v25 = vadd.f32 %v1861_v37, %v1687_v18  ;;  %v2245_v35 = vadd.f32 %v4023_v40, %v1970_v50  ;;  %v1692_v50 = vld [vmem:[#allocation2 + $0xc0] sm:$0xff] }
 0x1ef   :  { %2194 = vst.msk [vmem:[#allocation4 + $0x8] sm:$0xff] %vm202_vm0, %v2190_v14  ;;  %v2192_v53 = vmax.f32 %v2188_v4, %v2172_v28  ;;  %v2202_v26 = vadd.f32 %v2198_v10, %v4293_v36  ;;  %2027 = vst.msk [vmem:[#allocation2 + $0x88] sm:$0xff] %vm202_vm0, %v1971_v31  ;;  %v1693_v31 = vld [vmem:[#allocation2 + $0xc8] sm:$0xff]  ;;  %v1694_v10 = vld [vmem:[#allocation2 + $0xd0] sm:$0xff] }
 0x1f0   :  { %v2200_v61 = vld [vmem:[#allocation2 + $0x78] sm:$0xff]  ;;  %v2247_v29 = vadd.f32 %v4023_v40, %v1972_v1  ;;  %2184 = vst.msk [vmem:[#allocation3 + $0x18] sm:$0xff] %vm202_vm0, %v2180_v47  ;;  %2029 = vst.msk [vmem:[#allocation2 + $0x98] sm:$0xff] %vm202_vm0, %v1973_v25  ;;  %vm2249_vm2 = vcmp.gt.f32.partialorder %v2245_v35, 0.0  ;;  %v2253_v30 = vmul.f32 0.01, %v2245_v35 }
 0x1f1   :  { %2196 = vst.msk [vmem:[#allocation4 + $0x18] sm:$0xff] %vm202_vm0, %v2192_v53  ;;  %v2204_v11 = vadd.f32 %v2200_v61, %v4293_v36  ;;  %vm2206_vm1 = vcmp.gt.f32.partialorder %v2202_v26, 0.0  ;;  %v2210_v58 = vmul.f32 0.01, %v2202_v26  ;;  %v1865_v44 = vpop.f32.mrb[124].mxu0 }
 0x1f2   :  { %vm2251_vm3 = vcmp.gt.f32.partialorder %v2247_v29, 0.0  ;;  %v2255_v55 = vmul.f32 0.01, %v2247_v29  ;;  %v2257_v43 = vsel %vm2249_vm2, %v2245_v35, %v2253_v30  ;;  %v1867_v48 = vpop.f32.mrb[125].mxu0  ;;  %v1974_v16 = vadd.f32 %v1865_v44, %v4200_v21  ;;  %v1695_v35 = vld [vmem:[#allocation2 + $0xd8] sm:$0xff] }
 0x1f3   :  { %vm2208_vm4 = vcmp.gt.f32.partialorder %v2204_v11, 0.0  ;;  %v2212_v49 = vmul.f32 0.01, %v2204_v11  ;;  %v2214_v38 = vsel %vm2206_vm1, %v2202_v26, %v2210_v58  ;;  %v2265_v45 = vadd.f32 %v2257_v43, %v2221_v17  ;;  %v1869_v6 = vpop.f32.mrb[126].mxu0 }
 0x1f4   :  { %v4400_v46 = vmax.f32 %v2233_v32, %v2257_v43  ;;  %v2259_v62 = vsel %vm2251_vm3, %v2247_v29, %v2255_v55  ;;  %v1975_v41 = vadd.f32 %v1867_v48, %v1689_v7  ;;  %v1976_v63 = vadd.f32 %v1869_v6, %v1690_v51  ;;  %v1871_v34 = vpop.f32.mrb[127].mxu0  ;;  %v1696_v51 = vld [vmem:[#allocation2 + $0xe0] sm:$0xff]  ;;  %v1697_v6 = vld [vmem:[#allocation2 + $0xe8] sm:$0xff] }
 0x1f5   :  { %v2218_v13 = vld [vmem:[#allocation3 + $0x8] sm:$0xff]  ;;  %v2267_v15 = vadd.f32 %v2259_v62, %v2223_v54  ;;  %v4402_v57 = vmax.f32 %v2235_v52, %v2259_v62  ;;  %v2216_v22 = vsel %vm2208_vm4, %v2204_v11, %v2212_v49  ;;  %v2289_v20 = vadd.f32 %v4023_v40, %v1974_v16 }
 0x1f6   :  { %v2230_v60 = vld [vmem:[#allocation4 + $0x8] sm:$0xff]  ;;  %v2222_v59 = vadd.f32 %v2218_v13, %v2214_v38  ;;  %2031 = vst.msk [vmem:[#allocation2 + $0xa8] sm:$0xff] %vm202_vm0, %v1975_v41  ;;  %v1977_v21 = vadd.f32 %v1871_v34, %v1691_v19  ;;  %2032 = vst [vmem:[#allocation2 + $0xb0] sm:$0xff] %v1976_v63  ;;  %v2291_v2 = vadd.f32 %v4023_v40, %v1976_v63 }
 0x1f7   :  { %v2234_v33 = vmax.f32 %v2230_v60, %v2214_v38  ;;  %v2242_v42 = vld [vmem:[#allocation2 + $0x88] sm:$0xff]  ;;  %v2220_v3 = vld [vmem:[#allocation3 + $0x18] sm:$0xff]  ;;  %vm2293_vm5 = vcmp.gt.f32.partialorder %v2289_v20, 0.0  ;;  %v2297_v23 = vmul.f32 0.01, %v2289_v20 }
 0x1f8   :  { %v2232_v8 = vld [vmem:[#allocation4 + $0x18] sm:$0xff]  ;;  %v2246_v9 = vadd.f32 %v2242_v42, %v4293_v36  ;;  %2226 = vst.msk [vmem:[#allocation3 + $0x8] sm:$0xff] %vm202_vm0, %v2222_v59  ;;  %v2224_v17 = vadd.f32 %v2220_v3, %v2216_v22  ;;  %2033 = vst.msk [vmem:[#allocation2 + $0xb8] sm:$0xff] %vm202_vm0, %v1977_v21  ;;  %vm2295_vm6 = vcmp.gt.f32.partialorder %v2291_v2, 0.0  ;;  %v2299_v14 = vmul.f32 0.01, %v2291_v2 }
 0x1f9   :  { %v2244_v39 = vld [vmem:[#allocation2 + $0x98] sm:$0xff]  ;;  %2238 = vst.msk [vmem:[#allocation4 + $0x8] sm:$0xff] %vm202_vm0, %v2234_v33  ;;  %v2236_v32 = vmax.f32 %v2232_v8, %v2216_v22  ;;  %v2301_v52 = vsel %vm2293_vm5, %v2289_v20, %v2297_v23  ;;  %v1875_v24 = vpop.f32.mrb[128].mxu0 }
 0x1fa   :  { %v2248_v12 = vadd.f32 %v2244_v39, %v4293_v36  ;;  %2228 = vst.msk [vmem:[#allocation3 + $0x18] sm:$0xff] %vm202_vm0, %v2224_v17  ;;  %vm2250_vm7 = vcmp.gt.f32.partialorder %v2246_v9, 0.0  ;;  %v2254_v54 = vmul.f32 0.01, %v2246_v9  ;;  %v2309_v28 = vadd.f32 %v2301_v52, %v2265_v45  ;;  %v1877_v1 = vpop.f32.mrb[129].mxu0 }
 0x1fb   :  { %2240 = vst.msk [vmem:[#allocation4 + $0x18] sm:$0xff] %vm202_vm0, %v2236_v32  ;;  %v2321_v56 = vmax.f32 %v4400_v46, %v2301_v52  ;;  %v2303_v4 = vsel %vm2295_vm6, %v2291_v2, %v2299_v14  ;;  %v1978_v47 = vadd.f32 %v1875_v24, %v1692_v50  ;;  %v1979_v53 = vadd.f32 %v1877_v1, %v1693_v31  ;;  %v1879_v25 = vpop.f32.mrb[130].mxu0 }
 0x1fc   :  { %v2256_v5 = vmul.f32 0.01, %v2248_v12  ;;  %v2311_v18 = vadd.f32 %v2303_v4, %v2267_v15  ;;  %v2323_v37 = vmax.f32 %v4402_v57, %v2303_v4  ;;  %vm2252_vm8 = vcmp.gt.f32.partialorder %v2248_v12, 0.0  ;;  %v1881_v29 = vpop.f32.mrb[131].mxu0 }
 0x1fd   :  { %v2286_v26 = vld [vmem:[#allocation2 + $0xa8] sm:$0xff]  ;;  %v1980_v61 = vadd.f32 %v1879_v25, %v1694_v10  ;;  %v2258_v11 = vsel %vm2250_vm7, %v2246_v9, %v2254_v54  ;;  %2034 = vst [vmem:[#allocation2 + $0xc0] sm:$0xff] %v1978_v47  ;;  %v2333_v55 = vadd.f32 %v4023_v40, %v1978_v47  ;;  %2035 = vst.msk [vmem:[#allocation2 + $0xc8] sm:$0xff] %vm202_vm0, %v1979_v53  ;;  %v1698_v9 = vld [vmem:[#allocation2 + $0xf0] sm:$0xff] }
 0x1fe   :  { %v1981_v49 = vadd.f32 %v1881_v29, %v1695_v35  ;;  %v2290_v38 = vadd.f32 %v2286_v26, %v4293_v36  ;;  %v2260_v62 = vsel %vm2252_vm8, %v2248_v12, %v2256_v5  ;;  %v1699_v12 = vld [vmem:[#allocation2 + $0xf8] sm:$0xff] }
 0x1ff   :  { %v2262_v58 = vld [vmem:[#allocation3 + $0x8] sm:$0xff]  ;;  %v2288_v45 = vld [vmem:[#allocation2 + $0xb8] sm:$0xff]  ;;  %2036 = vst [vmem:[#allocation2 + $0xd0] sm:$0xff] %v1980_v61  ;;  %v2335_v46 = vadd.f32 %v4023_v40, %v1980_v61  ;;  %vm2337_vm9 = vcmp.gt.f32.partialorder %v2333_v55, 0.0  ;;  %v2341_v15 = vmul.f32 0.01, %v2333_v55 }
 0x200   :  { %v2274_v30 = vld [vmem:[#allocation4 + $0x8] sm:$0xff]  ;;  %v2266_v43 = vadd.f32 %v2262_v58, %v2258_v11  ;;  %2037 = vst.msk [vmem:[#allocation2 + $0xd8] sm:$0xff] %vm202_vm0, %v1981_v49  ;;  %v1885_v57 = vpop.f32.mrb[132].mxu0  ;;  %v2292_v16 = vadd.f32 %v2288_v45, %v4293_v36  ;;  %vm2294_vm12 = vcmp.gt.f32.partialorder %v2290_v38, 0.0  ;;  %v2298_v34 = vmul.f32 0.01, %v2290_v38 }
 0x201   :  { %v2278_v44 = vmax.f32 %v2274_v30, %v2258_v11  ;;  %v2264_v7 = vld [vmem:[#allocation3 + $0x18] sm:$0xff]  ;;  %vm2339_vm10 = vcmp.gt.f32.partialorder %v2335_v46, 0.0  ;;  %v2343_v41 = vmul.f32 0.01, %v2335_v46  ;;  %v1887_v59 = vpop.f32.mrb[133].mxu0  ;;  %v2345_v33 = vsel %vm2337_vm9, %v2333_v55, %v2341_v15  ;;  %v1700_v58 = vld [vmem:[#allocation2 + $0x100] sm:$0xff] }
 0x202   :  { %v2276_v48 = vld [vmem:[#allocation4 + $0x18] sm:$0xff]  ;;  %2270 = vst.msk [vmem:[#allocation3 + $0x8] sm:$0xff] %vm202_vm0, %v2266_v43  ;;  %v2268_v13 = vadd.f32 %v2264_v7, %v2260_v62  ;;  %v1982_v42 = vadd.f32 %v1885_v57, %v1696_v51  ;;  %v1983_v63 = vadd.f32 %v1887_v59, %v1697_v6  ;;  %v1889_v19 = vpop.f32.mrb[134].mxu0  ;;  %v2353_v22 = vadd.f32 %v2345_v33, %v2309_v28  ;;  %v1701_v30 = vld [vmem:[#allocation2 + $0x108] sm:$0xff]  ;;  %v1702_v55 = vld [vmem:[#allocation2 + $0x110] sm:$0xff] }
 0x203   :  { %2282 = vst.msk [vmem:[#allocation4 + $0x8] sm:$0xff] %vm202_vm0, %v2278_v44  ;;  %v2280_v60 = vmax.f32 %v2276_v48, %v2260_v62  ;;  %v4431_v3 = vmax.f32 %v2321_v56, %v2345_v33  ;;  %v2347_v8 = vsel %vm2339_vm10, %v2335_v46, %v2343_v41  ;;  %v1891_v39 = vpop.f32.mrb[135].mxu0  ;;  %v1984_v32 = vadd.f32 %v1889_v19, %v1698_v9  ;;  %v1703_v46 = vld [vmem:[#allocation2 + $0x118] sm:$0xff]  ;;  %v1704_v41 = vld [vmem:[#allocation2 + $0x120] sm:$0xff] }
 0x204   :  { %2272 = vst.msk [vmem:[#allocation3 + $0x18] sm:$0xff] %vm202_vm0, %v2268_v13  ;;  %v2355_v20 = vadd.f32 %v2347_v8, %v2311_v18  ;;  %v4434_v21 = vmax.f32 %v2323_v37, %v2347_v8  ;;  %2038 = vst [vmem:[#allocation2 + $0xe0] sm:$0xff] %v1982_v42  ;;  %v2377_v17 = vadd.f32 %v4023_v40, %v1982_v42  ;;  %v2300_v2 = vmul.f32 0.01, %v2292_v16  ;;  %v2330_v23 = vld [vmem:[#allocation2 + $0xc8] sm:$0xff] }
 0x205   :  { %2284 = vst.msk [vmem:[#allocation4 + $0x18] sm:$0xff] %vm202_vm0, %v2280_v60  ;;  %2039 = vst.msk [vmem:[#allocation2 + $0xe8] sm:$0xff] %vm202_vm0, %v1983_v63  ;;  %v1985_v14 = vadd.f32 %v1891_v39, %v1699_v12  ;;  %vm2296_vm13 = vcmp.gt.f32.partialorder %v2292_v16, 0.0  ;;  %v2379_v52 = vadd.f32 %v4023_v40, %v1984_v32  ;;  %v2302_v24 = vsel %vm2294_vm12, %v2290_v38, %v2298_v34  ;;  %v1705_v63 = vld [vmem:[#allocation2 + $0x128] sm:$0xff] }
 0x206   :  { %vm2381_vm14 = vcmp.gt.f32.partialorder %v2377_v17, 0.0  ;;  %v2385_v54 = vmul.f32 0.01, %v2377_v17  ;;  %2040 = vst [vmem:[#allocation2 + $0xf0] sm:$0xff] %v1984_v32  ;;  %v2334_v31 = vadd.f32 %v2330_v23, %v4293_v36  ;;  %v2304_v47 = vsel %vm2296_vm13, %v2292_v16, %v2300_v2  ;;  %v1706_v23 = vld [vmem:[#allocation2 + $0x130] sm:$0xff] }
 0x207   :  { %2041 = vst.msk [vmem:[#allocation2 + $0xf8] sm:$0xff] %vm202_vm0, %v1985_v14  ;;  %v2332_v1 = vld [vmem:[#allocation2 + $0xd8] sm:$0xff]  ;;  %vm2383_vm15 = vcmp.gt.f32.partialorder %v2379_v52, 0.0  ;;  %v2387_v11 = vmul.f32 0.01, %v2379_v52 }
 0x208   :  { %v1895_v56 = vpop.f32.mrb[136].mxu0  ;;  %v2389_v18 = vsel %vm2381_vm14, %v2377_v17, %v2385_v54  ;;  %v2336_v43 = vadd.f32 %v2332_v1, %v4293_v36  ;;  %v2342_v62 = vmul.f32 0.01, %v2334_v31  ;;  %vm2338_vm1 = vcmp.gt.f32.partialorder %v2334_v31, 0.0 }
 0x209   :  { %v2306_v5 = vld [vmem:[#allocation3 + $0x8] sm:$0xff]  ;;  %v1897_v37 = vpop.f32.mrb[137].mxu0  ;;  %v2397_v25 = vadd.f32 %v2389_v18, %v2353_v22  ;;  %v2409_v29 = vmax.f32 %v4431_v3, %v2389_v18  ;;  %v1986_v44 = vadd.f32 %v1895_v56, %v1700_v58  ;;  %v2391_v7 = vsel %vm2383_vm15, %v2379_v52, %v2387_v11  ;;  %v1708_v58 = vld [vmem:[#allocation2 + $0x140] sm:$0xff] }
 0x20a   :  { %v2318_v28 = vld [vmem:[#allocation4 + $0x8] sm:$0xff]  ;;  %v2310_v4 = vadd.f32 %v2306_v5, %v2302_v24  ;;  %v1899_v26 = vpop.f32.mrb[138].mxu0  ;;  %v1987_v38 = vadd.f32 %v1897_v37, %v1701_v30  ;;  %v2399_v13 = vadd.f32 %v2391_v7, %v2355_v20  ;;  %v2411_v60 = vmax.f32 %v4434_v21, %v2391_v7 }
 0x20b   :  { %v2322_v50 = vmax.f32 %v2318_v28, %v2302_v24  ;;  %v2308_v53 = vld [vmem:[#allocation3 + $0x18] sm:$0xff]  ;;  %v1901_v49 = vpop.f32.mrb[139].mxu0  ;;  %v1988_v45 = vadd.f32 %v1899_v26, %v1702_v55  ;;  %2042 = vst [vmem:[#allocation2 + $0x100] sm:$0xff] %v1986_v44  ;;  %v2421_v15 = vadd.f32 %v4023_v40, %v1986_v44  ;;  %v2344_v51 = vmul.f32 0.01, %v2336_v43  ;;  %v1709_v30 = vld [vmem:[#allocation2 + $0x148] sm:$0xff] }
 0x20c   :  { %v2320_v10 = vld [vmem:[#allocation4 + $0x18] sm:$0xff]  ;;  %2314 = vst.msk [vmem:[#allocation3 + $0x8] sm:$0xff] %vm202_vm0, %v2310_v4  ;;  %v2312_v61 = vadd.f32 %v2308_v53, %v2304_v47  ;;  %v1989_v48 = vadd.f32 %v1901_v49, %v1703_v46  ;;  %2043 = vst.msk [vmem:[#allocation2 + $0x108] sm:$0xff] %vm202_vm0, %v1987_v38  ;;  %v2374_v16 = vld [vmem:[#allocation2 + $0xe8] sm:$0xff]  ;;  %vm2340_vm3 = vcmp.gt.f32.partialorder %v2336_v43, 0.0  ;;  %v2346_v34 = vsel %vm2338_vm1, %v2334_v31, %v2342_v62 }
 0x20d   :  { %2326 = vst.msk [vmem:[#allocation4 + $0x8] sm:$0xff] %vm202_vm0, %v2322_v50  ;;  %v2324_v35 = vmax.f32 %v2320_v10, %v2304_v47  ;;  %2044 = vst [vmem:[#allocation2 + $0x110] sm:$0xff] %v1988_v45  ;;  %v2423_v57 = vadd.f32 %v4023_v40, %v1988_v45  ;;  %vm2425_vm2 = vcmp.gt.f32.partialorder %v2421_v15, 0.0  ;;  %v2429_v6 = vmul.f32 0.01, %v2421_v15  ;;  %v1707_v53 = vld [vmem:[#allocation2 + $0x138] sm:$0xff] }
 0x20e   :  { %2316 = vst.msk [vmem:[#allocation3 + $0x18] sm:$0xff] %vm202_vm0, %v2312_v61  ;;  %2045 = vst.msk [vmem:[#allocation2 + $0x118] sm:$0xff] %vm202_vm0, %v1989_v48  ;;  %v2378_v8 = vadd.f32 %v2374_v16, %v4293_v36  ;;  %v2376_v32 = vld [vmem:[#allocation2 + $0xf8] sm:$0xff]  ;;  %v2348_v54 = vsel %vm2340_vm3, %v2336_v43, %v2344_v51  ;;  %v1710_v45 = vld [vmem:[#allocation2 + $0x150] sm:$0xff] }
 0x20f   :  { %2328 = vst.msk [vmem:[#allocation4 + $0x18] sm:$0xff] %vm202_vm0, %v2324_v35  ;;  %vm2427_vm4 = vcmp.gt.f32.partialorder %v2423_v57, 0.0  ;;  %v2431_v33 = vmul.f32 0.01, %v2423_v57  ;;  %v2433_v9 = vsel %vm2425_vm2, %v2421_v15, %v2429_v6  ;;  %v2380_v18 = vadd.f32 %v2376_v32, %v4293_v36  ;;  %v1711_v48 = vld [vmem:[#allocation2 + $0x158] sm:$0xff] }
 0x210   :  { %v1905_v59 = vpop.f32.mrb[140].mxu0  ;;  %v2441_v12 = vadd.f32 %v2433_v9, %v2397_v25  ;;  %v4456_v2 = vmax.f32 %v2409_v29, %v2433_v9  ;;  %v2386_v10 = vmul.f32 0.01, %v2378_v8  ;;  %vm2382_vm6 = vcmp.gt.f32.partialorder %v2378_v8, 0.0 }
 0x211   :  { %v1990_v42 = vadd.f32 %v1905_v59, %v1704_v41  ;;  %v1907_v19 = vpop.f32.mrb[141].mxu0  ;;  %v2435_v5 = vsel %vm2427_vm4, %v2423_v57, %v2431_v33  ;;  %v2388_v49 = vmul.f32 0.01, %v2380_v18  ;;  %vm2384_vm8 = vcmp.gt.f32.partialorder %v2380_v18, 0.0 }
 0x212   :  { %v1991_v39 = vadd.f32 %v1907_v19, %v1705_v63  ;;  %v1909_v20 = vpop.f32.mrb[142].mxu0  ;;  %v2443_v31 = vadd.f32 %v2435_v5, %v2399_v13  ;;  %v4464_v1 = vmax.f32 %v2411_v60, %v2435_v5  ;;  %v2390_v62 = vsel %vm2382_vm6, %v2378_v8, %v2386_v10 }
 0x213   :  { %v2350_v22 = vld [vmem:[#allocation3 + $0x8] sm:$0xff]  ;;  %2046 = vst [vmem:[#allocation2 + $0x120] sm:$0xff] %v1990_v42  ;;  %v1911_v14 = vpop.f32.mrb[143].mxu0  ;;  %v2465_v28 = vadd.f32 %v4023_v40, %v1990_v42  ;;  %v1992_v56 = vadd.f32 %v1909_v20, %v1706_v23  ;;  %v2392_v19 = vsel %vm2384_vm8, %v2380_v18, %v2388_v49 }
 0x214   :  { %v2362_v3 = vld [vmem:[#allocation4 + $0x8] sm:$0xff]  ;;  %v2354_v21 = vadd.f32 %v2350_v22, %v2346_v34  ;;  %2047 = vst.msk [vmem:[#allocation2 + $0x128] sm:$0xff] %vm202_vm0, %v1991_v39  ;;  %v1993_v25 = vadd.f32 %v1911_v14, %v1707_v53 }
 0x215   :  { %v2366_v17 = vmax.f32 %v2362_v3, %v2346_v34  ;;  %v2352_v52 = vld [vmem:[#allocation3 + $0x18] sm:$0xff]  ;;  %vm2469_vm5 = vcmp.gt.f32.partialorder %v2465_v28, 0.0  ;;  %v2473_v37 = vmul.f32 0.01, %v2465_v28  ;;  %2048 = vst [vmem:[#allocation2 + $0x130] sm:$0xff] %v1992_v56  ;;  %v2467_v47 = vadd.f32 %v4023_v40, %v1992_v56  ;;  %v2418_v35 = vld [vmem:[#allocation2 + $0x108] sm:$0xff] }
 0x216   :  { %v2364_v24 = vld [vmem:[#allocation4 + $0x18] sm:$0xff]  ;;  %2358 = vst.msk [vmem:[#allocation3 + $0x8] sm:$0xff] %vm202_vm0, %v2354_v21  ;;  %v2356_v4 = vadd.f32 %v2352_v52, %v2348_v54  ;;  %2049 = vst.msk [vmem:[#allocation2 + $0x138] sm:$0xff] %vm202_vm0, %v1993_v25  ;;  %v2422_v57 = vadd.f32 %v2418_v35, %v4293_v36  ;;  %v1713_v14 = vld [vmem:[#allocation2 + $0x168] sm:$0xff] }
 0x217   :  { %2370 = vst.msk [vmem:[#allocation4 + $0x8] sm:$0xff] %vm202_vm0, %v2366_v17  ;;  %v2368_v50 = vmax.f32 %v2364_v24, %v2348_v54  ;;  %v2477_v26 = vsel %vm2469_vm5, %v2465_v28, %v2473_v37  ;;  %vm2471_vm7 = vcmp.gt.f32.partialorder %v2467_v47, 0.0  ;;  %v2475_v43 = vmul.f32 0.01, %v2467_v47  ;;  %v2420_v33 = vld [vmem:[#allocation2 + $0x118] sm:$0xff]  ;;  %v1712_v17 = vld [vmem:[#allocation2 + $0x160] sm:$0xff] }
 0x218   :  { %2360 = vst.msk [vmem:[#allocation3 + $0x18] sm:$0xff] %vm202_vm0, %v2356_v4  ;;  %v1915_v61 = vpop.f32.mrb[144].mxu0  ;;  %v2485_v29 = vadd.f32 %v2477_v26, %v2441_v12  ;;  %v2497_v11 = vmax.f32 %v4456_v2, %v2477_v26  ;;  %v2424_v20 = vadd.f32 %v2420_v33, %v4293_v36  ;;  %v2430_v12 = vmul.f32 0.01, %v2422_v57 }
 0x219   :  { %2372 = vst.msk [vmem:[#allocation4 + $0x18] sm:$0xff] %vm202_vm0, %v2368_v50  ;;  %v1917_v55 = vpop.f32.mrb[145].mxu0  ;;  %v1994_v44 = vadd.f32 %v1915_v61, %v1708_v58  ;;  %v2479_v16 = vsel %vm2471_vm7, %v2467_v47, %v2475_v43  ;;  %vm2426_vm12 = vcmp.gt.f32.partialorder %v2422_v57, 0.0 }
 0x21a   :  { %v1995_v38 = vadd.f32 %v1917_v55, %v1709_v30  ;;  %v1919_v46 = vpop.f32.mrb[146].mxu0  ;;  %v2487_v42 = vadd.f32 %v2479_v16, %v2443_v31  ;;  %v2499_v63 = vmax.f32 %v4464_v1, %v2479_v16  ;;  %v1714_v31 = vld [vmem:[#allocation2 + $0x170] sm:$0xff]  ;;  %v1715_v1 = vld [vmem:[#allocation2 + $0x178] sm:$0xff]  ;;  %v2432_v37 = vmul.f32 0.01, %v2424_v20  ;;  %v1716_v16 = vld [vmem:[#allocation2 + $0x180] sm:$0xff] }
 0x21b   :  { %v1996_v7 = vadd.f32 %v1919_v46, %v1710_v45  ;;  %v1921_v13 = vpop.f32.mrb[147].mxu0  ;;  %2050 = vst [vmem:[#allocation2 + $0x140] sm:$0xff] %v1994_v44  ;;  %v2509_v41 = vadd.f32 %v4023_v40, %v1994_v44  ;;  %vm2428_vm13 = vcmp.gt.f32.partialorder %v2424_v20, 0.0  ;;  %v2462_v25 = vld [vmem:[#allocation2 + $0x128] sm:$0xff]  ;;  %v2434_v26 = vsel %vm2426_vm12, %v2422_v57, %v2430_v12 }
 0x21c   :  { %2051 = vst.msk [vmem:[#allocation2 + $0x148] sm:$0xff] %vm202_vm0, %v1995_v38  ;;  %v1997_v51 = vadd.f32 %v1921_v13, %v1711_v48  ;;  %v2436_v49 = vsel %vm2428_vm13, %v2424_v20, %v2432_v37  ;;  %v2466_v38 = vadd.f32 %v2462_v25, %v4293_v36  ;;  %v1720_v25 = vld [vmem:[#allocation2 + $0x1a0] sm:$0xff]  ;;  %vm2868_vm13 = vcmask 97280  }
 0x21d   :  { %v2394_v60 = vld [vmem:[#allocation3 + $0x8] sm:$0xff]  ;;  %2052 = vst [vmem:[#allocation2 + $0x150] sm:$0xff] %v1996_v7  ;;  %vm2513_vm9 = vcmp.gt.f32.partialorder %v2509_v41, 0.0  ;;  %v2511_v3 = vadd.f32 %v4023_v40, %v1996_v7  ;;  %v2517_v39 = vmul.f32 0.01, %v2509_v41  ;;  %v2464_v58 = vld [vmem:[#allocation2 + $0x138] sm:$0xff] }
 0x21e   :  { %v2406_v15 = vld [vmem:[#allocation4 + $0x8] sm:$0xff]  ;;  %v2398_v6 = vadd.f32 %v2394_v60, %v2390_v62  ;;  %2053 = vst.msk [vmem:[#allocation2 + $0x158] sm:$0xff] %vm202_vm0, %v1997_v51  ;;  %v2468_v13 = vadd.f32 %v2464_v58, %v4293_v36  ;;  %v1718_v51 = vld [vmem:[#allocation2 + $0x190] sm:$0xff]  ;;  %vm2470_vm1 = vcmp.gt.f32.partialorder %v2466_v38, 0.0 }
 0x21f   :  { %v2410_v59 = vmax.f32 %v2406_v15, %v2390_v62  ;;  %v2396_v34 = vld [vmem:[#allocation3 + $0x18] sm:$0xff]  ;;  %vm2515_vm10 = vcmp.gt.f32.partialorder %v2511_v3, 0.0  ;;  %v2519_v21 = vmul.f32 0.01, %v2511_v3  ;;  %v2521_v2 = vsel %vm2513_vm9, %v2509_v41, %v2517_v39  ;;  %v1717_v41 = vld [vmem:[#allocation2 + $0x188] sm:$0xff]  ;;  %v1722_v58 = vld [vmem:[#allocation2 + $0x1b0] sm:$0xff] }
 0x220   :  { %v2408_v22 = vld [vmem:[#allocation4 + $0x18] sm:$0xff]  ;;  %2402 = vst.msk [vmem:[#allocation3 + $0x8] sm:$0xff] %vm202_vm0, %v2398_v6  ;;  %v2400_v8 = vadd.f32 %v2396_v34, %v2392_v19  ;;  %v1925_v32 = vpop.f32.mrb[148].mxu0  ;;  %v2529_v52 = vadd.f32 %v2521_v2, %v2485_v29  ;;  %v4487_v24 = vmax.f32 %v2497_v11, %v2521_v2  ;;  %v2474_v34 = vmul.f32 0.01, %v2466_v38 }
 0x221   :  { %2414 = vst.msk [vmem:[#allocation4 + $0x8] sm:$0xff] %vm202_vm0, %v2410_v59  ;;  %v2412_v9 = vmax.f32 %v2408_v22, %v2392_v19  ;;  %v1998_v23 = vadd.f32 %v1925_v32, %v1712_v17  ;;  %v1927_v54 = vpop.f32.mrb[149].mxu0  ;;  %v2523_v5 = vsel %vm2515_vm10, %v2511_v3, %v2519_v21  ;;  %vm2472_vm2 = vcmp.gt.f32.partialorder %v2468_v13, 0.0 }
 0x222   :  { %2404 = vst.msk [vmem:[#allocation3 + $0x18] sm:$0xff] %vm202_vm0, %v2400_v8  ;;  %v1999_v28 = vadd.f32 %v1927_v54, %v1713_v14  ;;  %v1929_v56 = vpop.f32.mrb[150].mxu0  ;;  %v2531_v4 = vadd.f32 %v2523_v5, %v2487_v42  ;;  %v4489_v50 = vmax.f32 %v2499_v63, %v2523_v5  ;;  %v1719_v63 = vld [vmem:[#allocation2 + $0x198] sm:$0xff]  ;;  %v2476_v17 = vmul.f32 0.01, %v2468_v13 }
 0x223   :  { %2416 = vst.msk [vmem:[#allocation4 + $0x18] sm:$0xff] %vm202_vm0, %v2412_v9  ;;  %2054 = vst [vmem:[#allocation2 + $0x160] sm:$0xff] %v1998_v23  ;;  %v1931_v18 = vpop.f32.mrb[151].mxu0  ;;  %v2553_v47 = vadd.f32 %v4023_v40, %v1998_v23  ;;  %v2000_v53 = vadd.f32 %v1929_v56, %v1714_v31  ;;  %v2506_v8 = vld [vmem:[#allocation2 + $0x148] sm:$0xff]  ;;  %v2478_v2 = vsel %vm2470_vm1, %v2466_v38, %v2474_v34 }
 0x224   :  { %2055 = vst.msk [vmem:[#allocation2 + $0x168] sm:$0xff] %vm202_vm0, %v1999_v28  ;;  %v2001_v10 = vadd.f32 %v1931_v18, %v1715_v1  ;;  %v2510_v54 = vadd.f32 %v2506_v8, %v4293_v36  ;;  %v2480_v1 = vsel %vm2472_vm2, %v2468_v13, %v2476_v17 }
 0x225   :  { %vm2557_vm14 = vcmp.gt.f32.partialorder %v2553_v47, 0.0  ;;  %2056 = vst [vmem:[#allocation2 + $0x170] sm:$0xff] %v2000_v53  ;;  %v2561_v30 = vmul.f32 0.01, %v2553_v47  ;;  %v2555_v55 = vadd.f32 %v4023_v40, %v2000_v53  ;;  %v2508_v56 = vld [vmem:[#allocation2 + $0x158] sm:$0xff] }
 0x226   :  { %2057 = vst.msk [vmem:[#allocation2 + $0x178] sm:$0xff] %vm202_vm0, %v2001_v10  ;;  %vm2514_vm5 = vcmp.gt.f32.partialorder %v2510_v54, 0.0 }
 0x227   :  { %v2438_v61 = vld [vmem:[#allocation3 + $0x8] sm:$0xff]  ;;  %v2565_v7 = vsel %vm2557_vm14, %v2553_v47, %v2561_v30  ;;  %vm2559_vm15 = vcmp.gt.f32.partialorder %v2555_v55, 0.0  ;;  %v2563_v57 = vmul.f32 0.01, %v2555_v55  ;;  %v1723_v30 = vld [vmem:[#allocation2 + $0x1b8] sm:$0xff] }
 0x228   :  { %v2450_v35 = vld [vmem:[#allocation4 + $0x8] sm:$0xff]  ;;  %v2442_v29 = vadd.f32 %v2438_v61, %v2434_v26  ;;  %v1935_v45 = vpop.f32.mrb[152].mxu0  ;;  %v2573_v60 = vadd.f32 %v2565_v7, %v2529_v52  ;;  %v2585_v15 = vmax.f32 %v4487_v24, %v2565_v7  ;;  %v4512_v24 = vand.u32 127, %v2067_v27 }
 0x229   :  { %v2454_v11 = vmax.f32 %v2450_v35, %v2434_v26  ;;  %v2440_v43 = vld [vmem:[#allocation3 + $0x18] sm:$0xff]  ;;  %v1937_v48 = vpop.f32.mrb[153].mxu0  ;;  %v2002_v59 = vadd.f32 %v1935_v45, %v1716_v16  ;;  %v2567_v22 = vsel %vm2559_vm15, %v2555_v55, %v2563_v57 }
 0x22a   :  { %v2452_v44 = vld [vmem:[#allocation4 + $0x18] sm:$0xff]  ;;  %2446 = vst.msk [vmem:[#allocation3 + $0x8] sm:$0xff] %vm202_vm0, %v2442_v29  ;;  %v2444_v46 = vadd.f32 %v2440_v43, %v2436_v49  ;;  %v1939_v6 = vpop.f32.mrb[154].mxu0  ;;  %v2003_v33 = vadd.f32 %v1937_v48, %v1717_v41  ;;  %v2575_v9 = vadd.f32 %v2567_v22, %v2531_v4  ;;  %v2587_v39 = vmax.f32 %v4489_v50, %v2567_v22 }
 0x22b   :  { %2458 = vst.msk [vmem:[#allocation4 + $0x8] sm:$0xff] %vm202_vm0, %v2454_v11  ;;  %v2456_v62 = vmax.f32 %v2452_v44, %v2436_v49  ;;  %v2004_v42 = vadd.f32 %v1939_v6, %v1718_v51  ;;  %v1941_v19 = vpop.f32.mrb[155].mxu0  ;;  %2058 = vst [vmem:[#allocation2 + $0x180] sm:$0xff] %v2002_v59  ;;  %v2597_v20 = vadd.f32 %v4023_v40, %v2002_v59  ;;  %v1721_v11 = vld [vmem:[#allocation2 + $0x1a8] sm:$0xff]  ;;  %vm2671_vm7 = vcmp.lt.s32.totalorder %v4512_v24, 64 }
 0x22c   :  { %2448 = vst.msk [vmem:[#allocation3 + $0x18] sm:$0xff] %vm202_vm0, %v2444_v46  ;;  %v2005_v3 = vadd.f32 %v1941_v19, %v1719_v63  ;;  %2059 = vst.msk [vmem:[#allocation2 + $0x188] sm:$0xff] %vm202_vm0, %v2003_v33  ;;  %v2512_v49 = vadd.f32 %v2508_v56, %v4293_v36  ;;  %v2518_v46 = vmul.f32 0.01, %v2510_v54 }
 0x22d   :  { %2460 = vst.msk [vmem:[#allocation4 + $0x18] sm:$0xff] %vm202_vm0, %v2456_v62  ;;  %2060 = vst [vmem:[#allocation2 + $0x190] sm:$0xff] %v2004_v42  ;;  %v2599_v21 = vadd.f32 %v4023_v40, %v2004_v42  ;;  %vm2601_vm3 = vcmp.gt.f32.partialorder %v2597_v20, 0.0  ;;  %v2605_v32 = vmul.f32 0.01, %v2597_v20  ;;  %v2552_v42 = vld [vmem:[#allocation2 + $0x178] sm:$0xff] }
 0x22e   :  { %2061 = vst.msk [vmem:[#allocation2 + $0x198] sm:$0xff] %vm202_vm0, %v2005_v3  ;;  %v2520_v48 = vmul.f32 0.01, %v2512_v49  ;;  %vm2516_vm9 = vcmp.gt.f32.partialorder %v2512_v49, 0.0  ;;  %v2522_v57 = vsel %vm2514_vm5, %v2510_v54, %v2518_v46 }
 0x22f   :  { %vm2603_vm4 = vcmp.gt.f32.partialorder %v2599_v21, 0.0  ;;  %v2607_v12 = vmul.f32 0.01, %v2599_v21  ;;  %v2609_v4 = vsel %vm2601_vm3, %v2597_v20, %v2605_v32 }
 0x230   :  { %v1945_v52 = vpop.f32.mrb[156].mxu0  ;;  %v2627_v47 = vadd.f32 %v2609_v4, %v2573_v60  ;;  %v4515_v53 = vmax.f32 %v2585_v15, %v2609_v4  ;;  %v2550_v60 = vld [vmem:[#allocation2 + $0x168] sm:$0xff]  ;;  %v2524_v34 = vsel %vm2516_vm9, %v2512_v49, %v2520_v48 }
 0x231   :  { %v2482_v23 = vld [vmem:[#allocation3 + $0x8] sm:$0xff]  ;;  %v2611_v50 = vsel %vm2603_vm4, %v2599_v21, %v2607_v12  ;;  %v1947_v31 = vpop.f32.mrb[157].mxu0  ;;  %v2006_v29 = vadd.f32 %v1945_v52, %v1720_v25  ;;  %v2554_v8 = vadd.f32 %v2550_v60, %v4293_v36  ;;  %v2556_v12 = vadd.f32 %v2552_v42, %v4293_v36 }
 0x232   :  { %v2494_v14 = vld [vmem:[#allocation4 + $0x8] sm:$0xff]  ;;  %v2486_v5 = vadd.f32 %v2482_v23, %v2478_v2  ;;  %v2629_v10 = vadd.f32 %v2611_v50, %v2575_v9  ;;  %v1949_v26 = vpop.f32.mrb[158].mxu0  ;;  %v4519_v35 = vmax.f32 %v2587_v39, %v2611_v50  ;;  %v2007_v43 = vadd.f32 %v1947_v31, %v1721_v11 }
 0x233   :  { %v2498_v28 = vmax.f32 %v2494_v14, %v2478_v2  ;;  %v2484_v18 = vld [vmem:[#allocation3 + $0x18] sm:$0xff]  ;;  %v1951_v55 = vpop.f32.mrb[159].mxu0  ;;  %v2008_v44 = vadd.f32 %v1949_v26, %v1722_v58  ;;  %2062 = vst [vmem:[#allocation2 + $0x1a0] sm:$0xff] %v2006_v29  ;;  %v2655_v45 = vadd.f32 %v4023_v40, %v2006_v29  ;;  %v2562_v23 = vmul.f32 0.01, %v2554_v8  ;;  %v3507_v42 = vld [vmem:[%s4663_s5 + $0x48] sm:$0xff]  }
 0x234   :  { %v2496_v37 = vld [vmem:[#allocation4 + $0x18] sm:$0xff]  ;;  %2490 = vst.msk [vmem:[#allocation3 + $0x8] sm:$0xff] %vm202_vm0, %v2486_v5  ;;  %v2488_v27 = vadd.f32 %v2484_v18, %v2480_v1  ;;  %v2009_v38 = vadd.f32 %v1951_v55, %v1723_v30  ;;  %2063 = vst.msk [vmem:[#allocation2 + $0x1a8] sm:$0xff] %vm202_vm0, %v2007_v43  ;;  %vm2558_vm10 = vcmp.gt.f32.partialorder %v2554_v8, 0.0  ;;  %v2564_v14 = vmul.f32 0.01, %v2556_v12 }
 0x235   :  { %2502 = vst.msk [vmem:[#allocation4 + $0x8] sm:$0xff] %vm202_vm0, %v2498_v28  ;;  %v2500_v61 = vmax.f32 %v2496_v37, %v2480_v1  ;;  %2064 = vst [vmem:[#allocation2 + $0x1b0] sm:$0xff] %v2008_v44  ;;  %v2657_v62 = vadd.f32 %v4023_v40, %v2008_v44  ;;  %vm2659_vm6 = vcmp.gt.f32.partialorder %v2655_v45, 0.0  ;;  %v2663_v7 = vmul.f32 0.01, %v2655_v45 }
 0x236   :  { %2492 = vst.msk [vmem:[#allocation3 + $0x18] sm:$0xff] %vm202_vm0, %v2488_v27  ;;  %2065 = vst.msk [vmem:[#allocation2 + $0x1b8] sm:$0xff] %vm202_vm0, %v2009_v38  ;;  %vm2560_vm12 = vcmp.gt.f32.partialorder %v2556_v12, 0.0  ;;  %v2566_v54 = vsel %vm2558_vm10, %v2554_v8, %v2562_v23  ;;  %v3497_v43 = vld [vmem:[%s4662_s4] ss:$8 sps:$4 sm:$0x3f]  }
 0x237   :  { %2504 = vst.msk [vmem:[#allocation4 + $0x18] sm:$0xff] %vm202_vm0, %v2500_v61  ;;  %vm2661_vm8 = vcmp.gt.f32.partialorder %v2657_v62, 0.0  ;;  %v2665_v13 = vmul.f32 0.01, %v2657_v62  ;;  %v2667_v15 = vsel %vm2659_vm6, %v2655_v45, %v2663_v7  ;;  %v2568_v56 = vsel %vm2560_vm12, %v2556_v12, %v2564_v14 }
 0x238   :  { %v2681_v51 = vsel %vm2671_vm7, %v2667_v15, 0.0  ;;  %v4533_v40 = vsel %vm2671_vm7, %v2667_v15, -1e+30  ;;  %v2874_v44 = vsel %vm2872_vm11, %v3497_v43, 0  ;;  %v3499_v15 = vld [vmem:[%s4663_s5 + $0x8] sm:$0xff]   ;;  %vm3583_vm11 = vmmov 0  }
 0x239   :  { %v2669_v6 = vsel %vm2661_vm8, %v2657_v62, %v2665_v13  ;;  %v2685_v63 = vadd.f32 %v2681_v51, %v2627_v47  ;;  %v2701_v19 = vmax.f32 %v4515_v53, %v4533_v40  ;;  %v3498_v13 = vld [vmem:[%s4663_s5] sm:$0xff]   ;;  %v3503_v51 = vld [vmem:[%s4663_s5 + $0x28] sm:$0xff]   ;;  %v3513_v40 = vld [vmem:[%s4665_s7 + $0x18] sm:$0xff]  }
 0x23a   :  { %v2683_v9 = vsel %vm2671_vm7, %v2669_v6, 0.0  ;;  %v4542_v39 = vsel %vm2671_vm7, %v2669_v6, -1e+30  ;;  %v3504_v6 = vld [vmem:[%s4663_s5 + $0x30] sm:$0xff]   ;;  %v3511_v53 = vld [vmem:[%s4665_s7 + $0x8] sm:$0xff]  }
 0x23b   :  { %v2526_v16 = vld [vmem:[#allocation3 + $0x8] sm:$0xff]  ;;  %v2687_v17 = vadd.f32 %v2683_v9, %v2629_v10  ;;  %v2703_v32 = vmax.f32 %v4519_v35, %v4542_v39  ;;  %v3512_v35 = vld [vmem:[%s4665_s7 + $0x10] sm:$0xff]  }
 0x23c   :  { %v2538_v41 = vld [vmem:[#allocation4 + $0x8] sm:$0xff]  ;;  %v2530_v59 = vadd.f32 %v2526_v16, %v2522_v57  ;;  %v3501_v16 = vld [vmem:[%s4663_s5 + $0x18] sm:$0xff]  }
 0x23d   :  { %v2542_v33 = vmax.f32 %v2538_v41, %v2522_v57  ;;  %v2528_v22 = vld [vmem:[#allocation3 + $0x18] sm:$0xff]  ;;  %v2713_v2 = vpack.c.bf16 %v2687_v17, %v2685_v63  ;;  %v3500_v57 = vld [vmem:[%s4663_s5 + $0x10] sm:$0xff]   ;;  %v3502_v41 = vld [vmem:[%s4663_s5 + $0x20] sm:$0xff]  }
 0x23e   :  { %v2540_v3 = vld [vmem:[#allocation4 + $0x18] sm:$0xff]  ;;  %2534 = vst.msk [vmem:[#allocation3 + $0x8] sm:$0xff] %vm202_vm0, %v2530_v59  ;;  %v2532_v20 = vadd.f32 %v2528_v22, %v2524_v34  ;;  %v3508_v63 = vld [vmem:[%s4663_s5 + $0x50] sm:$0xff]   ;;  %v3582_v22 = vmov 0.0  }
 0x23f   :  { %2546 = vst.msk [vmem:[#allocation4 + $0x8] sm:$0xff] %vm202_vm0, %v2542_v33  ;;  %v2544_v21 = vmax.f32 %v2540_v3, %v2524_v34  ;;  %v3505_v59 = vld [vmem:[%s4663_s5 + $0x38] sm:$0xff]   ;;  %v3506_v33 = vld [vmem:[%s4663_s5 + $0x40] sm:$0xff]  }
 0x240   :  { %2536 = vst.msk [vmem:[#allocation3 + $0x18] sm:$0xff] %vm202_vm0, %v2532_v20  ;;  %v3509_v34 = vld [vmem:[%s4663_s5 + $0x58] sm:$0xff]  }
 0x241   :  { %2548 = vst.msk [vmem:[#allocation4 + $0x18] sm:$0xff] %vm202_vm0, %v2544_v21 }
 0x245   :  { %v2570_v52 = vld [vmem:[#allocation3 + $0x8] sm:$0xff] }
 0x246   :  { %v2582_v24 = vld [vmem:[#allocation4 + $0x8] sm:$0xff]  ;;  %v2574_v5 = vadd.f32 %v2570_v52, %v2566_v54 }
 0x247   :  { %v2586_v28 = vmax.f32 %v2582_v24, %v2566_v54  ;;  %v2572_v4 = vld [vmem:[#allocation3 + $0x18] sm:$0xff] }
 0x248   :  { %v2584_v50 = vld [vmem:[#allocation4 + $0x18] sm:$0xff]  ;;  %2578 = vst.msk [vmem:[#allocation3 + $0x8] sm:$0xff] %vm202_vm0, %v2574_v5  ;;  %v2576_v36 = vadd.f32 %v2572_v4, %v2568_v56 }
 0x249   :  { %2590 = vst.msk [vmem:[#allocation4 + $0x8] sm:$0xff] %vm202_vm0, %v2586_v28  ;;  %v2588_v31 = vmax.f32 %v2584_v50, %v2568_v56 }
 0x24a   :  { %2580 = vst.msk [vmem:[#allocation3 + $0x18] sm:$0xff] %vm202_vm0, %v2576_v36 }
 0x24b   :  { %2592 = vst.msk [vmem:[#allocation4 + $0x18] sm:$0xff] %vm202_vm0, %v2588_v31 }
 0x24f   :  { %v2616_v1 = vld [vmem:[#allocation3 + $0x8] sm:$0xff] }
 0x250   :  { %v2636_v18 = vld [vmem:[#allocation4 + $0x8] sm:$0xff]  ;;  %2632 = vst.msk [vmem:[#allocation3 + $0x8] sm:$0xff] %vm202_vm0, %v2616_v1 }
 0x251   :  { %v2644_v37 = vmax.f32 %v2636_v18, -1e+30  ;;  %v2618_v47 = vld [vmem:[#allocation3 + $0x18] sm:$0xff] }
 0x252   :  { %v2638_v10 = vld [vmem:[#allocation4 + $0x18] sm:$0xff]  ;;  %2634 = vst.msk [vmem:[#allocation3 + $0x18] sm:$0xff] %vm202_vm0, %v2618_v47 }
 0x253   :  { %v2646_v25 = vmax.f32 %v2638_v10, -1e+30  ;;  %2648 = vst.msk [vmem:[#allocation4 + $0x8] sm:$0xff] %vm202_vm0, %v2644_v37 }
 0x255   :  { %2650 = vst.msk [vmem:[#allocation4 + $0x18] sm:$0xff] %vm202_vm0, %v2646_v25 }
 0x257   :  { %v2674_v26 = vld [vmem:[#allocation3 + $0x8] sm:$0xff] }
 0x258   :  { %2690 = vst.msk [vmem:[#allocation3 + $0x8] sm:$0xff] %vm202_vm0, %v2674_v26 }
 0x259   :  { %v2676_v27 = vld [vmem:[#allocation3 + $0x18] sm:$0xff] }
 0x25a   :  { %v2694_v61 = vld [vmem:[#allocation4 + $0x8] sm:$0xff]  ;;  %2692 = vst.msk [vmem:[#allocation3 + $0x18] sm:$0xff] %vm202_vm0, %v2676_v27 }
 0x25b   :  { %v2702_v29 = vmax.f32 %v2694_v61, -1e+30 }
 0x25c   :  { %v2696_v11 = vld [vmem:[#allocation4 + $0x18] sm:$0xff] }
 0x25d   :  { %v2704_v58 = vmax.f32 %v2696_v11, -1e+30  ;;  %2706 = vst.msk [vmem:[#allocation4 + $0x8] sm:$0xff] %vm202_vm0, %v2702_v29 }
 0x25f   :  { %2708 = vst.msk [vmem:[#allocation4 + $0x18] sm:$0xff] %vm202_vm0, %v2704_v58  ;;  %v2710_v30 = vld [vmem:[#allocation3 + $0x8] sm:$0xff]  ;;  %v3510_v58 = vld [vmem:[%s4665_s7] sm:$0xff]  }
 0x261   :  { %v2712_v55 = vld [vmem:[#allocation3 + $0x18] sm:$0xff] }
 0x262   :  { %v2714_v49 = vpack.c.bf16 %v2712_v55, %v2710_v30 }
 0x264   :  { %3348 = vmatprep.mubr.msk.bf16.mxu1 %vm202_vm0, %v2714_v49  ;;  %v2943_v47 = vld [vmem:[#allocation4 + $0x8] sm:$0xff] }
 0x265   :  { %2847 = vmatmul.mubr.bf16.vlgmr.msra.gmra.mrb[120].mxu1 %v2713_v2 }
 0x266   :  { %2911 = vmatprep.mubr.bf16.mxu1 %v3581_v0  ;;  %2880 = vmatpush1.bf16.msra.mxu1 %v2874_v44  ;;  %v2945_v10 = vld [vmem:[#allocation4 + $0x18] sm:$0xff] }
 0x267   :  { %3058 = vmatprep.subr.bf16.mxu1 %v3581_v0 }
 0x338   :  { %v2848_v38 = vpop.f32.mrb[120].mxu1 }
 0x339   :  { %v2850_v45 = vpop.f32.mrb[121].mxu1  ;;  %v2855_v62 = vmax.f32 %v2848_v38, 0.0 }
 0x33a   :  { %v2851_v46 = vpop.f32.mrb[122].mxu1 }
 0x33b   :  { %v2856_v7 = vmax.f32 %v2851_v46, 0.0  ;;  %v2853_v48 = vpop.f32.mrb[123].mxu1 }
 0x33d   :  { %v2857_v60 = vpack.c.bf16 %v2856_v7, %v2855_v62  ;;  %v3367_v7 = vld [vmem:[%s4666_s8] ss:$0 sm:$0xff] }
 0x33f   :  { %3352 = vmatmul.mubr.msk.bf16.vlgmr.msra.gmra.mrb[124].mxu1 %vm2868_vm13, %v2857_v60 }
 0x340   :  { %3059 = vmatpush1.bf16.msra.mxu1 %v3498_v13 }
 0x341   :  { %3060 = vmatprep.subr.bf16.mxu1 %v3581_v0 }
 0x344   :  { %3061 = vmatpush1.bf16.msra.mxu1 %v3499_v15 }
 0x345   :  { %3062 = vmatprep.subr.bf16.mxu1 %v3581_v0 }
 0x348   :  { %3063 = vmatpush1.bf16.msra.mxu1 %v3500_v57 }
 0x349   :  { %3064 = vmatprep.subr.bf16.mxu1 %v3581_v0 }
 0x34c   :  { %3065 = vmatpush1.bf16.msra.mxu1 %v3501_v16 }
 0x34d   :  { %3066 = vmatprep.subr.bf16.mxu1 %v3581_v0 }
 0x350   :  { %3067 = vmatpush1.bf16.msra.mxu1 %v3502_v41 }
 0x351   :  { %3068 = vmatprep.subr.bf16.mxu1 %v3581_v0 }
 0x354   :  { %3069 = vmatpush1.bf16.msra.mxu1 %v3503_v51 }
 0x355   :  { %3070 = vmatprep.subr.bf16.mxu1 %v3581_v0 }
 0x358   :  { %3071 = vmatpush1.bf16.msra.mxu1 %v3504_v6 }
 0x359   :  { %3072 = vmatprep.subr.bf16.mxu1 %v3581_v0 }
 0x35c   :  { %3073 = vmatpush1.bf16.msra.mxu1 %v3505_v59 }
 0x35d   :  { %3074 = vmatprep.subr.bf16.mxu1 %v3581_v0 }
 0x360   :  { %3075 = vmatpush1.bf16.msra.mxu1 %v3506_v33 }
 0x361   :  { %3076 = vmatprep.subr.bf16.mxu1 %v3581_v0 }
 0x364   :  { %3077 = vmatpush1.bf16.msra.mxu1 %v3507_v42 }
 0x365   :  { %3078 = vmatprep.subr.bf16.mxu1 %v3581_v0 }
 0x368   :  { %3079 = vmatpush1.bf16.msra.mxu1 %v3508_v63 }
 0x369   :  { %3080 = vmatprep.subr.bf16.mxu1 %v3581_v0 }
 0x36c   :  { %3081 = vmatpush1.bf16.msra.mxu1 %v3509_v34 }
 0x36d   :  { %3378 = vmatprep.subr.bf16.mxu1 %v3582_v22 }
 0x412   :  { %v2913_v3 = vpop.f32.mrb[124].mxu1 }
 0x413   :  { %v2922_v8 = vsub.f32 0.0, %v2913_v3  ;;  %v2915_v9 = vpop.f32.mrb[125].mxu1 }
 0x414   :  { %v2923_v20 = vsub.f32 0.0, %v2915_v9  ;;  %v2917_v21 = vpop.f32.mrb[126].mxu1 }
 0x415   :  { %v2926_v17 = vmul.f32 1.442695, %v2922_v8  ;;  %v2924_v12 = vsub.f32 0.0, %v2917_v21  ;;  %v2919_v2 = vpop.f32.mrb[127].mxu1 }
 0x416   :  { %v2928_v23 = vmul.f32 1.442695, %v2923_v20  ;;  %v2925_v14 = vsub.f32 0.0, %v2919_v2 }
 0x417   :  { %3514 = vpow2.f32 %v2926_v17  ;;  %v2930_v54 = vmul.f32 1.442695, %v2924_v12 }
 0x418   :  { %3516 = vpow2.f32 %v2928_v23  ;;  %v2932_v52 = vmul.f32 1.442695, %v2925_v14 }
 0x419   :  { %3518 = vpow2.f32 %v2930_v54 }
 0x41a   :  { %3520 = vpow2.f32 %v2932_v52 }
 0x421   :  { %v3515_v0 = vpop.eup %3514 }
 0x422   :  { %v3517_v24 = vpop.eup %3516  ;;  %v2934_v5 = vadd.f32 1.0, %v3515_v0 }
 0x423   :  { %v3519_v28 = vpop.eup %3518  ;;  %v2935_v56 = vadd.f32 1.0, %v3517_v24 }
 0x424   :  { %v3521_v4 = vpop.eup %3520  ;;  %3522 = vrcp.f32 %v2934_v5  ;;  %v2936_v50 = vadd.f32 1.0, %v3519_v28 }
 0x425   :  { %3524 = vrcp.f32 %v2935_v56  ;;  %v2937_v36 = vadd.f32 1.0, %v3521_v4 }
 0x426   :  { %3526 = vrcp.f32 %v2936_v50 }
 0x427   :  { %3528 = vrcp.f32 %v2937_v36 }
 0x42e   :  { %v3523_v31 = vpop.eup %3522 }
 0x42f   :  { %v3525_v1 = vpop.eup %3524  ;;  %v2946_v25 = vmul.f32 %v3523_v31, %v2701_v19  ;;  %v3353_v19 = vld [vmem:[%s4664_s6] ss:$0 sm:$0xff]  ;;  %s3584_s6 = smov [#allocation8]  }
 0x430   :  { %v3527_v18 = vpop.eup %3526  ;;  %v2947_v27 = vmul.f32 %v3525_v1, %v2943_v47  ;;  %s3196_s11 = sshll.u32 %s3584_s6, 4  ;;  %s3197_s11 = int_to_ptr.vmem [resolvable:$true] %s3196_s11 }
 0x431   :  { %v3529_v37 = vpop.eup %3528  ;;  %v2948_v26 = vmul.f32 %v3527_v18, %v2703_v32  ;;  %s3552_s12 = scalar_lea.vmem %s3197_s11, 256  ;;  %p3557_p9 = scmp.lt.s32.totalorder %s3197_s11, %s3197_s11 }
 0x432   :  { %v2949_v61 = vmul.f32 %v3529_v37, %v2945_v10  ;;  %p3553_p8 = scmp.ne.s32.totalorder %s3197_s11, %s3552_s12  ;;  %p3558_p10 = scmp.lt.s32.totalorder %s3552_s12, %s3552_s12 }
 0x433   :  { %v2950_v29 = vpack.c.bf16 %v2948_v26, %v2946_v25 }
 0x434   :  { %v2951_v11 = vpack.c.bf16 %v2949_v61, %v2947_v27  ;;  %p3559_p11 = por %p3558_p10, %p3557_p9 }
 0x436   :  { %3366 = vmatprep.mubr.msk.bf16.mxu1 %vm202_vm0, %v2951_v11  ;;  %p3560_p12 = pnand %p3559_p11, %p3553_p8 }
 0x437   :  { %3091 = vmatmul.mubr.bf16.vlgmr.msra.gmra.mrb[128].mxu1 %v2950_v29 }
 0x438   :  { %3379 = vmatpush3.bf16.msra.mxu1 %v3510_v58  ;;  %3386 = vmatprep.mubr.msk.bf16.mxu1 %vm3583_vm11, %v3582_v22 }
 0x439   :  { %3380 = vmatprep.subr.bf16.mxu1 %v3582_v22 }
 0x43c   :  { %3381 = vmatpush3.bf16.msra.mxu1 %v3511_v53 }
 0x43d   :  { %3382 = vmatprep.subr.bf16.mxu1 %v3582_v22 }
 0x440   :  { %3383 = vmatpush3.bf16.msra.mxu1 %v3512_v35 }
 0x441   :  { %3384 = vmatprep.subr.bf16.mxu1 %v3582_v22 }
 0x444   :  { %3385 = vmatpush3.bf16.msra.mxu1 %v3513_v40 }
 0x50a   :  { %v3092_v39 = vpop.f32.mrb[128].mxu1 }
 0x50b   :  { %v3093_v32 = vadd.f32 %v3353_v19, %v3092_v39  ;;  %v3094_v30 = vpop.f32.mrb[129].mxu1 }
 0x50c   :  { %v3095_v55 = vpop.f32.mrb[130].mxu1 }
 0x50d   :  { %v3101_v49 = vmul.f32 0.01, %v3093_v32  ;;  %v3096_v43 = vadd.f32 %v3353_v19, %v3095_v55  ;;  %v3097_v44 = vpop.f32.mrb[131].mxu1  ;;  %vm3099_vm14 = vcmp.gt.f32.partialorder %v3093_v32, 0.0 }
 0x50f   :  { %vm3100_vm15 = vcmp.gt.f32.partialorder %v3096_v43, 0.0  ;;  %v3102_v38 = vmul.f32 0.01, %v3096_v43  ;;  %v3103_v45 = vsel %vm3099_vm14, %v3093_v32, %v3101_v49 }
 0x511   :  { %v3104_v46 = vsel %vm3100_vm15, %v3096_v43, %v3102_v38 }
 0x512   :  { %v3105_v62 = vpack.c.bf16 %v3104_v46, %v3103_v45 }
 0x514   :  { %3387 = vmatmul.mubr.msk.bf16.vlgmr.msra.gmra.mrb[132].mxu1 %vm202_vm0, %v3105_v62 }
 0x5e7   :  { %v3182_v48 = vpop.f32.mrb[132].mxu1 }
 0x5e8   :  { %v3183_v13 = vadd.f32 %v3367_v7, %v3182_v48  ;;  %v3388_v60 = vpop.f32.mrb[133].mxu1 }
 0x5e9   :  { %v3185_v15 = vpop.f32.mrb[134].mxu1 }
 0x5ea   :  { %3189 = vst [vmem:[#allocation8] sm:$0xff] %v3183_v13  ;;  %v3186_v57 = vadd.f32 %v3367_v7, %v3185_v15  ;;  %v3389_v16 = vpop.f32.mrb[135].mxu1 }
 0x5ec   :  { %3190 = vst [vmem:[#allocation8 + $0x8] sm:$0xff] %v3186_v57 }
 0x5ed   :  { %3563 = shalt.err (!%p3560_p12)
}
 0x5ee   :  { %s3564_s14 = scalar_lea.hbm %s4667_s9, 256 }
 0x5ef   :  { %p3565_p13 = scmp.ne.s32.totalorder %s4667_s9, %s3564_s14  ;;  %p3568_p0 = scmp.lt.u32.totalorder %s3564_s14, %s4667_s9 }
 0x5f1   :  { %p3570_p1 = pnand %p3568_p0, %p3565_p13 }
 0x5f3   :  { %3573 = shalt.err (!%p3570_p1)
}
 0x5f4   :  { %3202 = dma.vmem_to_hbm [thread:$0]  %s3197_s11, 256, %s4667_s9, [#allocation7], %s3579_s19, %s3579_s19, %s3580_s20  }
 0x5f5   :  { %3576 = dma.done.wait [#allocation7], 256  }
 0x5f6   :  { %3577 = vsyncadd [#allocation7], 4294967040 }
 0x5f7   :  { %3206 = vsyncpa [#allocation6], 1 }
 0x5f8   :  { %3207 = vsyncpa [#allocation7], 1 }

</bundles_post_ra>
